<compile_context>
chip_gen: v6e
topology: v6e:2x2x1
jax: 0.10.0
libtpu: 0.0.40
codegen_flags: <defaults>
</compile_context>

<pallas_src>
import functools
import numpy as np
import jax
import jax.numpy as jnp
from jax.experimental import pallas as pl
from jax.experimental.pallas import tpu as pltpu

LANE = 128  # TPU lane width; all channel dims are zero-padded to this


def _round_up(x, m):
    return ((x + m - 1) // m) * m


def _cp(dims):
    return pltpu.CompilerParams(dimension_semantics=dims,
                                vmem_limit_bytes=32 * 1024 * 1024)


# ----------------------------- Pallas kernels -----------------------------

def _matmul_bias_act_kernel(x_ref, w_ref, b_ref, o_ref, *, act):
    x = x_ref[...].astype(jnp.bfloat16)
    w = w_ref[...].astype(jnp.bfloat16)
    y = jnp.dot(x, w, preferred_element_type=jnp.float32) + b_ref[...]
    if act == "relu":
        y = jnp.maximum(y, 0.0)
    elif act == "sigmoid":
        y = jax.nn.sigmoid(y)
    o_ref[...] = y.astype(o_ref.dtype)


def matmul_bias_act(x, w, b, act="none", out_dtype=jnp.float32, tm=256):
    """(M,K)@(K,N)+b with optional activation; row-tiled, padded tail, bf16 MXU."""
    M, K = x.shape
    N = w.shape[1]
    tm = min(tm, _round_up(M, 8))
    Mp = _round_up(M, tm)
    if Mp != M:
        x = jnp.pad(x, ((0, Mp - M), (0, 0)))
    out = pl.pallas_call(
        functools.partial(_matmul_bias_act_kernel, act=act),
        out_shape=jax.ShapeDtypeStruct((Mp, N), out_dtype),
        grid=(Mp // tm,),
        in_specs=[pl.BlockSpec((tm, K), lambda i: (i, 0)),
                  pl.BlockSpec((K, N), lambda i: (0, 0)),
                  pl.BlockSpec((1, N), lambda i: (0, 0))],
        out_specs=pl.BlockSpec((tm, N), lambda i: (i, 0)),
        compiler_params=_cp(("parallel",)),
    )(x, w, b.reshape(1, N))
    return out[:M]


def _pool_fc_sigmoid_kernel(x_ref, w_ref, b_ref, o_ref, acc_ref, *, inv_hw):
    # LR-ASPP scale branch: global average pool (tiled reduction) + 1x1 conv + sigmoid.
    j = pl.program_id(0)

    @pl.when(j == 0)
    def _():
        acc_ref[...] = jnp.zeros_like(acc_ref)

    acc_ref[...] += jnp.sum(x_ref[...].astype(jnp.float32), axis=1)     # (B, C)

    @pl.when(j == pl.num_programs(0) - 1)
    def _():
        pooled = (acc_ref[...] * inv_hw).astype(jnp.bfloat16)
        y = jnp.dot(pooled, w_ref[...].astype(jnp.bfloat16),
                    preferred_element_type=jnp.float32) + b_ref[...]
        o_ref[...] = jax.nn.sigmoid(y)


def pool_fc_sigmoid(x, w, b, hw, thw=512):
    """x: (B, HW, C) -> sigmoid(mean_HW(x) @ w + b): (B, N).  Spatial axis tiled."""
    B, HW, C = x.shape
    N = w.shape[1]
    thw = min(thw, _round_up(HW, 8))
    HWp = _round_up(HW, thw)
    if HWp != HW:
        x = jnp.pad(x, ((0, 0), (0, HWp - HW), (0, 0)))        # zero rows: no effect on sum
    return pl.pallas_call(
        functools.partial(_pool_fc_sigmoid_kernel, inv_hw=1.0 / float(hw)),
        out_shape=jax.ShapeDtypeStruct((B, N), jnp.float32),
        grid=(HWp // thw,),
        in_specs=[pl.BlockSpec((B, thw, C), lambda j: (0, j, 0)),
                  pl.BlockSpec((C, N), lambda j: (0, 0)),
                  pl.BlockSpec((1, N), lambda j: (0, 0))],
        out_specs=pl.BlockSpec((B, N), lambda j: (0, 0)),
        scratch_shapes=[pltpu.VMEM((B, C), jnp.float32)],
        compiler_params=_cp(("arbitrary",)),
    )(x, w, b.reshape(1, N))


def _cbr_scale_cls_kernel(x_ref, wc_ref, bc_ref, s_ref, wh_ref, bh_ref, o_ref):
    # fused: relu(x @ W_cbr + b_cbr) * sigmoid_scale[b]  -> @ W_high_classifier + b_high
    x = x_ref[0].astype(jnp.bfloat16)                                   # (tm, C)
    y = jnp.dot(x, wc_ref[...].astype(jnp.bfloat16),
                preferred_element_type=jnp.float32) + bc_ref[...]
    y = jnp.maximum(y, 0.0) * s_ref[0]                                  # (tm, I) * (1, I)
    t = jnp.dot(y.astype(jnp.bfloat16), wh_ref[...].astype(jnp.bfloat16),
                preferred_element_type=jnp.float32) + bh_ref[...]
    o_ref[0] = t.astype(o_ref.dtype)


def cbr_scale_classify(high, w_cbr, b_cbr, s, w_highc, b_highc, tm=256):
    """high: (B, HW, C); s: (B, I).  Returns high-branch class logits (B, HW, NC)."""
    B, HW, C = high.shape
    Ip = w_cbr.shape[1]
    Np = w_highc.shape[1]
    tm = min(tm, _round_up(HW, 8))
    HWp = _round_up(HW, tm)
    if HWp != HW:
        high = jnp.pad(high, ((0, 0), (0, HWp - HW), (0, 0)))
    s3 = s.reshape(B, 1, Ip)
    out = pl.pallas_call(
        _cbr_scale_cls_kernel,
        out_shape=jax.ShapeDtypeStruct((B, HWp, Np), jnp.bfloat16),
        grid=(B, HWp // tm),
        in_specs=[pl.BlockSpec((1, tm, C), lambda b, i: (b, i, 0)),
                  pl.BlockSpec((C, Ip), lambda b, i: (0, 0)),
                  pl.BlockSpec((1, Ip), lambda b, i: (0, 0)),
                  pl.BlockSpec((1, 1, Ip), lambda b, i: (b, 0, 0)),
                  pl.BlockSpec((Ip, Np), lambda b, i: (0, 0)),
                  pl.BlockSpec((1, Np), lambda b, i: (0, 0))],
        out_specs=pl.BlockSpec((1, tm, Np), lambda b, i: (b, i, 0)),
        compiler_params=_cp(("parallel", "parallel")),
    )(high, w_cbr, b_cbr.reshape(1, Ip), s3, w_highc, b_highc.reshape(1, Np))
    return out[:, :HW]


def _resize_axis1_kernel(a_ref, x_ref, o_ref, *, tr):
    a = a_ref[...].astype(jnp.bfloat16)
    for r in range(tr):                                                 # static unroll
        y = jnp.dot(a, x_ref[r].astype(jnp.bfloat16),
                    preferred_element_type=jnp.float32)
        o_ref[r] = y.astype(o_ref.dtype)


def resize_axis1(A, x, out_dtype, tr=8, tc_max=2048):
    """Apply interpolation matrix A (O,K) along axis 1 of x (R,K,C) -> (R,O,C)."""
    R, K, C = x.shape
    O = A.shape[0]
    tr = min(tr, R)
    Rp = _round_up(R, tr)
    tc = min(tc_max, C)
    Cp = _round_up(C, tc)
    if Rp != R or Cp != C:
        x = jnp.pad(x, ((0, Rp - R), (0, 0), (0, Cp - C)))
    out = pl.pallas_call(
        functools.partial(_resize_axis1_kernel, tr=tr),
        out_shape=jax.ShapeDtypeStruct((Rp, O, Cp), out_dtype),
        grid=(Rp // tr, Cp // tc),
        in_specs=[pl.BlockSpec((O, K), lambda i, j: (0, 0)),
                  pl.BlockSpec((tr, K, tc), lambda i, j: (i, 0, j))],
        out_specs=pl.BlockSpec((tr, O, tc), lambda i, j: (i, 0, j)),
        compiler_params=_cp(("parallel", "parallel")),
    )(A.astype(jnp.float32), x)
    return out[:R, :, :C]


def _wresize_lowcls_kernel(a_ref, t_ref, lo_ref, wl_ref, bl_ref, o_ref, *, tr):
    # fused: (bilinear W-pass of high-branch logits) + (low features @ low classifier) + bias
    a = a_ref[...].astype(jnp.bfloat16)
    wl = wl_ref[...].astype(jnp.bfloat16)
    bl = bl_ref[...]
    for r in range(tr):                                                 # static unroll
        up = jnp.dot(a, t_ref[r].astype(jnp.bfloat16), preferred_element_type=jnp.float32)
        lo = jnp.dot(lo_ref[r].astype(jnp.bfloat16), wl, preferred_element_type=jnp.float32)
        o_ref[r] = (up + lo + bl).astype(o_ref.dtype)


def wresize_add_lowcls(A_w, t, low, w_lowc, b_lowc, out_dtype=jnp.bfloat16, tr=8):
    """t: (R, Wh, NC) high-branch logits; low: (R, Wl, Cl) low features -> (R, Wl, NC)."""
    R, K, Np = t.shape
    O = A_w.shape[0]
    Cl = low.shape[2]
    tr = min(tr, R)
    Rp = _round_up(R, tr)
    if Rp != R:
        t = jnp.pad(t, ((0, Rp - R), (0, 0), (0, 0)))
        low = jnp.pad(low, ((0, Rp - R), (0, 0), (0, 0)))
    out = pl.pallas_call(
        functools.partial(_wresize_lowcls_kernel, tr=tr),
        out_shape=jax.ShapeDtypeStruct((Rp, O, Np), out_dtype),
        grid=(Rp // tr,),
        in_specs=[pl.BlockSpec((O, K), lambda i: (0, 0)),
                  pl.BlockSpec((tr, K, Np), lambda i: (i, 0, 0)),
                  pl.BlockSpec((tr, O, Cl), lambda i: (i, 0, 0)),
                  pl.BlockSpec((Cl, Np), lambda i: (0, 0)),
                  pl.BlockSpec((1, Np), lambda i: (0, 0))],
        out_specs=pl.BlockSpec((tr, O, Np), lambda i: (i, 0, 0)),
        compiler_params=_cp(("parallel",)),
    )(A_w.astype(jnp.float32), t, low, w_lowc, b_lowc.reshape(1, Np))
    return out[:R]


# ------------------------------- glue helpers -------------------------------

def im2col_3x3_s2(x):
    """3x3, stride-2, pad-1 patch extraction (NHWC) -> (B, H/2, W/2, 9*C).

    TODO(synk): for a production backbone this 9x expansion should be folded into the
    conv kernel (halo'd windows / in-kernel shifted-tap accumulation); kept in XLA here
    because the whole backbone is already a synthetic stand-in for the pretrained
    MobileNetV3-Large that cannot be loaded in-script.
    """
    B, H, W, C = x.shape
    Ho, Wo = H // 2, W // 2
    xp = jnp.pad(x, ((0, 0), (1, 1), (1, 1), (0, 0)))
    cols = []
    for dy in range(3):
        for dx in range(3):
            cols.append(xp[:, dy:dy + 2 * Ho:2, dx:dx + 2 * Wo:2, :])
    return jnp.concatenate(cols, axis=-1)


def _interp_matrix(out_size, in_size):
    """Bilinear (align_corners=False, PyTorch semantics) interpolation matrix."""
    scale = in_size / out_size
    A = np.zeros((out_size, in_size), dtype=np.float32)
    for i in range(out_size):
        src = max((i + 0.5) * scale - 0.5, 0.0)
        i0 = min(int(np.floor(src)), in_size - 1)
        i1 = min(i0 + 1, in_size - 1)
        w1 = src - i0
        A[i, i0] += 1.0 - w1
        A[i, i1] += w1
    return A           # rows sum to 1 (used for exact classifier/resize commutation)


# ------------------------------- parameters -------------------------------

def _pad2(a, rows, cols):
    return jnp.pad(a, ((0, rows - a.shape[0]), (0, cols - a.shape[1])))


def _pad1(a, n):
    return jnp.pad(a, ((0, n - a.shape[0]),))


def init_params(key, cin=3, c_low=8, c_high=32, inter=16, num_classes=21):
    """Logical params generated at their true sizes, then zero-padded to 128 lanes and
    cast to bf16 (weights).  Zero padding keeps the math identical to the unpadded model."""
    ks = jax.random.split(key, 12)
    nrm = jax.random.normal
    # backbone stage 1 / 2 (3x3 s2 conv as im2col matmul)
    w1 = 0.1 * nrm(ks[0], (9 * cin, c_low), jnp.float32)
    b1 = 0.05 * nrm(ks[1], (c_low,), jnp.float32)
    w2 = 0.1 * nrm(ks[2], (9 * c_low, c_high), jnp.float32)
    b2 = 0.05 * nrm(ks[3], (c_high,), jnp.float32)
    # LR-ASPP cbr: 1x1 conv (no bias) + BatchNorm (eval) folded into W,b
    w_cbr = 0.1 * nrm(ks[4], (c_high, inter), jnp.float32)
    gamma = 1.0 + 0.1 * nrm(ks[5], (inter,), jnp.float32)
    beta = 0.05 * nrm(ks[6], (inter,), jnp.float32)
    mean = 0.05 * nrm(ks[7], (inter,), jnp.float32)
    var = 1.0 + jax.random.uniform(ks[8], (inter,), jnp.float32)
    bn_scale = gamma / jnp.sqrt(var + 1e-5)
    w_cbr = w_cbr * bn_scale[None, :]
    b_cbr = beta - mean * bn_scale
    # scale branch 1x1 conv
    w_s = 0.1 * nrm(ks[9], (c_high, inter), jnp.float32)
    b_s = 0.05 * nrm(ks[10], (inter,), jnp.float32)
    # classifiers
    kc = jax.random.split(ks[11], 4)
    w_lowc = 0.1 * nrm(kc[0], (c_low, num_classes), jnp.float32)
    b_lowc = 0.05 * nrm(kc[1], (num_classes,), jnp.float32)
    w_highc = 0.1 * nrm(kc[2], (inter, num_classes), jnp.float32)
    b_highc = 0.05 * nrm(kc[3], (num_classes,), jnp.float32)

    p = {}
    p["w1"] = _pad2(w1, 9 * cin, LANE).astype(jnp.bfloat16)
    p["b1"] = _pad1(b1, LANE)
    # w2 per-tap row padding so it lines up with im2col over 128-channel padded "low"
    w2t = jnp.pad(w2.reshape(9, c_low, c_high),
                  ((0, 0), (0, LANE - c_low), (0, LANE - c_high)))
    p["w2"] = w2t.reshape(9 * LANE, LANE).astype(jnp.bfloat16)
    p["b2"] = _pad1(b2, LANE)
    p["w_cbr"] = _pad2(w_cbr, LANE, LANE).astype(jnp.bfloat16)
    p["b_cbr"] = _pad1(b_cbr, LANE)
    p["w_s"] = _pad2(w_s, LANE, LANE).astype(jnp.bfloat16)
    p["b_s"] = _pad1(b_s, LANE)
    p["w_lowc"] = _pad2(w_lowc, LANE, LANE).astype(jnp.bfloat16)
    p["b_lowc"] = _pad1(b_lowc, LANE)
    p["w_highc"] = _pad2(w_highc, LANE, LANE).astype(jnp.bfloat16)
    p["b_highc"] = _pad1(b_highc, LANE)
    return p


# -------------------------------- forward --------------------------------

def segmenter_forward(params, x_nchw, num_classes=21):
    B, Cin, H, W = x_nchw.shape                    # even H, W assumed (stride-2 stages)
    x = jnp.transpose(x_nchw, (0, 2, 3, 1)).astype(jnp.float32)          # NCHW -> NHWC
    Hl, Wl = H // 2, W // 2
    Hh, Wh = Hl // 2, Wl // 2

    # TODO(synk): pretrained MobileNetV3-Large backbone cannot be loaded in-script;
    # replaced by two synthetic 3x3/s2 conv+ReLU stages producing "low"/"high" features.
    c1 = im2col_3x3_s2(x)                                                # (B, Hl, Wl, 9*Cin)
    low = matmul_bias_act(c1.reshape(B * Hl * Wl, -1), params["w1"], params["b1"],
                          act="relu", out_dtype=jnp.bfloat16)
    low = low.reshape(B, Hl, Wl, LANE)

    c2 = im2col_3x3_s2(low)                                              # (B, Hh, Wh, 9*128)
    high = matmul_bias_act(c2.reshape(B * Hh * Wh, -1), params["w2"], params["b2"],
                           act="relu", out_dtype=jnp.bfloat16)
    high = high.reshape(B, Hh * Wh, LANE)

    # ---- LR-ASPP head (fused) ----
    # scale branch: tiled global-average-pool + 1x1 conv + sigmoid in one kernel
    s = pool_fc_sigmoid(high, params["w_s"], params["b_s"], hw=Hh * Wh)  # (B, 128) f32

    # cbr * scale fused with the high classifier (classifier commutes with the bilinear
    # upsample since both are linear and interpolation weights sum to 1)
    t = cbr_scale_classify(high, params["w_cbr"], params["b_cbr"], s,
                           params["w_highc"], params["b_highc"])         # (B, Hh*Wh, 128)
    t = t.reshape(B, Hh, Wh, LANE)

    # separable bilinear upsample to (Hl, Wl); W-pass fused with the low classifier add
    A_h1 = jnp.asarray(_interp_matrix(Hl, Hh))
    A_w1 = jnp.asarray(_interp_matrix(Wl, Wh))
    th = resize_axis1(A_h1, t.reshape(B, Hh, Wh * LANE), out_dtype=jnp.bfloat16)
    th = th.reshape(B * Hl, Wh, LANE)
    logits = wresize_add_lowcls(A_w1, th, low.reshape(B * Hl, Wl, LANE),
                                params["w_lowc"], params["b_lowc"],
                                out_dtype=jnp.bfloat16)                  # (B*Hl, Wl, 128)
    logits = logits.reshape(B, Hl, Wl, LANE)

    # final separable bilinear upsample back to input resolution
    A_h2 = jnp.asarray(_interp_matrix(H, Hl))
    A_w2 = jnp.asarray(_interp_matrix(W, Wl))
    y = resize_axis1(A_h2, logits.reshape(B, Hl, Wl * LANE), out_dtype=jnp.bfloat16)
    y = resize_axis1(A_w2, y.reshape(B * H, Wl, LANE), out_dtype=jnp.float32)
    y = y.reshape(B, H, W, LANE)[..., :num_classes]                      # drop lane padding
    out = jnp.transpose(y, (0, 3, 1, 2))                                 # NHWC -> NCHW
    return {"out": out}                                                  # torchvision dict


if __name__ == "__main__":
    key = jax.random.PRNGKey(0)
    pkey, xkey = jax.random.split(key)
    num_classes = 21
    params = init_params(pkey, num_classes=num_classes)
    x = jax.random.normal(xkey, (2, 3, 16, 16), jnp.float32)             # NCHW, like PyTorch
    fwd = jax.jit(segmenter_forward)
    result = fwd(params, x)
    jax.block_until_ready(result["out"])
    assert result["out"].shape == (2, num_classes, 16, 16)
    assert result["out"].dtype == jnp.float32
    print("KERNEL_OK")
</pallas_src>

<mosaic_0001>
module attributes {stable_mosaic.version = 11 : i64} {
  func.func @_matmul_bias_act_kernel(%arg0: i32, %arg1: memref<128x27xf32, #tpu.memory_space<vmem>>, %arg2: memref<27x128xbf16, #tpu.memory_space<vmem>>, %arg3: memref<1x128xf32, #tpu.memory_space<vmem>>, %arg4: memref<128x128xbf16, #tpu.memory_space<vmem>>) attributes {dimension_semantics = [#tpu.dimension_semantics<parallel>], iteration_bounds = array<i64: 1>, scalar_prefetch = 0 : i64, scratch_operands = 0 : i64, tpu.core_type = #tpu.core_type<tc>, window_params = [{transform_indices = @transform_0, window_bounds = array<i64: 128, 27>}, {pipeline_mode = #tpu.pipeline_mode<synchronous>, transform_indices = @transform_1, window_bounds = array<i64: 27, 128>}, {pipeline_mode = #tpu.pipeline_mode<synchronous>, transform_indices = @transform_2, window_bounds = array<i64: 1, 128>}, {transform_indices = @transform_3, window_bounds = array<i64: 128, 128>}]} {
    %c0 = arith.constant 0 : index
    %c0_0 = arith.constant 0 : index
    %0 = vector.load %arg1[%c0, %c0_0] : memref<128x27xf32, #tpu.memory_space<vmem>>, vector<128x27xf32>
    %1 = arith.truncf %0 : vector<128x27xf32> to vector<128x27xbf16>
    %c0_1 = arith.constant 0 : index
    %c0_2 = arith.constant 0 : index
    %2 = vector.load %arg2[%c0_1, %c0_2] : memref<27x128xbf16, #tpu.memory_space<vmem>>, vector<27x128xbf16>
    %cst = arith.constant dense<0.000000e+00> : vector<128x128xf32>
    %3 = tpu.matmul %1, %2, %cst {dimension_numbers = #tpu.dot_dimension_numbers<[1], [0], [0], [1], [0, 0, 1, 1], [], []>} : vector<128x27xbf16>, vector<27x128xbf16>, vector<128x128xf32> -> vector<128x128xf32>
    %c0_3 = arith.constant 0 : index
    %c0_4 = arith.constant 0 : index
    %4 = vector.load %arg3[%c0_3, %c0_4] : memref<1x128xf32, #tpu.memory_space<vmem>>, vector<1x128xf32>
    %5 = vector.broadcast %4 : vector<1x128xf32> to vector<128x128xf32>
    %6 = arith.addf %3, %5 : vector<128x128xf32>
    %cst_5 = arith.constant 0.000000e+00 : f32
    %7 = vector.broadcast %cst_5 : f32 to vector<128x128xf32>
    %8 = arith.maximumf %6, %7 : vector<128x128xf32>
    %9 = arith.truncf %8 : vector<128x128xf32> to vector<128x128xbf16>
    %c0_6 = arith.constant 0 : index
    %c0_7 = arith.constant 0 : index
    %10 = vector.load %arg4[%c0_6, %c0_7] : memref<128x128xbf16, #tpu.memory_space<vmem>>, vector<128x128xbf16>
    tpu.vector_store %arg4[%c0_6, %c0_7], %9 {strides = array<i32>} : memref<128x128xbf16, #tpu.memory_space<vmem>>, vector<128x128xbf16>,
    return
  }
  func.func @transform_0(%arg0: i32) -> (i32, i32) {
    %c0_i32 = arith.constant 0 : i32
    %c0_i32_0 = arith.constant 0 : i32
    return %arg0, %c0_i32 : i32, i32
  }
  func.func @transform_1(%arg0: i32) -> (i32, i32) {
    %c0_i32 = arith.constant 0 : i32
    %c0_i32_0 = arith.constant 0 : i32
    %c0_i32_1 = arith.constant 0 : i32
    return %c0_i32, %c0_i32_0 : i32, i32
  }
  func.func @transform_2(%arg0: i32) -> (i32, i32) {
    %c0_i32 = arith.constant 0 : i32
    %c0_i32_0 = arith.constant 0 : i32
    %c0_i32_1 = arith.constant 0 : i32
    return %c0_i32, %c0_i32_0 : i32, i32
  }
  func.func @transform_3(%arg0: i32) -> (i32, i32) {
    %c0_i32 = arith.constant 0 : i32
    %c0_i32_0 = arith.constant 0 : i32
    return %arg0, %c0_i32 : i32, i32
  }
}

module attributes {stable_mosaic.version = 11 : i64} {
  func.func @_pool_fc_sigmoid_kernel(%arg0: i32, %arg1: memref<2x16x128xbf16, #tpu.memory_space<vmem>>, %arg2: memref<128x128xbf16, #tpu.memory_space<vmem>>, %arg3: memref<1x128xf32, #tpu.memory_space<vmem>>, %arg4: memref<2x128xf32, #tpu.memory_space<vmem>>, %arg5: memref<2x128xf32, #tpu.memory_space<vmem>>) attributes {dimension_semantics = [#tpu.dimension_semantics<arbitrary>], iteration_bounds = array<i64: 1>, scalar_prefetch = 0 : i64, scratch_operands = 1 : i64, tpu.core_type = #tpu.core_type<tc>, window_params = [{transform_indices = @transform_0, window_bounds = array<i64: 2, 16, 128>}, {pipeline_mode = #tpu.pipeline_mode<synchronous>, transform_indices = @transform_1, window_bounds = array<i64: 128, 128>}, {pipeline_mode = #tpu.pipeline_mode<synchronous>, transform_indices = @transform_2, window_bounds = array<i64: 1, 128>}, {pipeline_mode = #tpu.pipeline_mode<synchronous>, transform_indices = @transform_3, window_bounds = array<i64: 2, 128>}]} {
    %c0_i32 = arith.constant 0 : i32
    %0 = arith.cmpi eq, %arg0, %c0_i32 : i32
    %1 = arith.extui %0 : i1 to i32
    %c0_i32_0 = arith.constant 0 : i32
    %2 = arith.cmpi ne, %1, %c0_i32_0 : i32
    scf.if %2 {
      %cst_9 = arith.constant 0.000000e+00 : f32
      %12 = vector.broadcast %cst_9 : f32 to vector<2x128xf32>
      %c0_10 = arith.constant 0 : index
      %c0_11 = arith.constant 0 : index
      %13 = vector.load %arg5[%c0_10, %c0_11] : memref<2x128xf32, #tpu.memory_space<vmem>>, vector<2x128xf32>
      tpu.vector_store %arg5[%c0_10, %c0_11], %12 {strides = array<i32>} : memref<2x128xf32, #tpu.memory_space<vmem>>, vector<2x128xf32>,
    } else {
    }
    %c0 = arith.constant 0 : index
    %c0_1 = arith.constant 0 : index
    %3 = vector.load %arg5[%c0, %c0_1] : memref<2x128xf32, #tpu.memory_space<vmem>>, vector<2x128xf32>
    %c0_2 = arith.constant 0 : index
    %c0_3 = arith.constant 0 : index
    %c0_4 = arith.constant 0 : index
    %4 = vector.load %arg1[%c0_2, %c0_3, %c0_4] : memref<2x16x128xbf16, #tpu.memory_space<vmem>>, vector<2x16x128xbf16>
    %5 = arith.extf %4 : vector<2x16x128xbf16> to vector<2x16x128xf32>
    %cst = arith.constant dense<0.000000e+00> : vector<2x128xf32>
    %6 = vector.multi_reduction <add>, %5, %cst [1] : vector<2x16x128xf32> to vector<2x128xf32>
    %7 = arith.addf %3, %6 : vector<2x128xf32>
    %c0_5 = arith.constant 0 : index
    %c0_6 = arith.constant 0 : index
    %8 = vector.load %arg5[%c0_5, %c0_6] : memref<2x128xf32, #tpu.memory_space<vmem>>, vector<2x128xf32>
    tpu.vector_store %arg5[%c0_5, %c0_6], %7 {strides = array<i32>} : memref<2x128xf32, #tpu.memory_space<vmem>>, vector<2x128xf32>,
    %c0_i32_7 = arith.constant 0 : i32
    %9 = arith.cmpi eq, %arg0, %c0_i32_7 : i32
    %10 = arith.extui %9 : i1 to i32
    %c0_i32_8 = arith.constant 0 : i32
    %11 = arith.cmpi ne, %10, %c0_i32_8 : i32
    scf.if %11 {
      %c0_9 = arith.constant 0 : index
      %c0_10 = arith.constant 0 : index
      %12 = vector.load %arg5[%c0_9, %c0_10] : memref<2x128xf32, #tpu.memory_space<vmem>>, vector<2x128xf32>
      %cst_11 = arith.constant 6.250000e-02 : f32
      %13 = vector.broadcast %cst_11 : f32 to vector<2x128xf32>
      %14 = arith.mulf %12, %13 : vector<2x128xf32>
      %15 = arith.truncf %14 : vector<2x128xf32> to vector<2x128xbf16>
      %c0_12 = arith.constant 0 : index
      %c0_13 = arith.constant 0 : index
      %16 = vector.load %arg2[%c0_12, %c0_13] : memref<128x128xbf16, #tpu.memory_space<vmem>>, vector<128x128xbf16>
      %cst_14 = arith.constant dense<0.000000e+00> : vector<2x128xf32>
      %17 = tpu.matmul %15, %16, %cst_14 {dimension_numbers = #tpu.dot_dimension_numbers<[1], [0], [0], [1], [0, 0, 1, 1], [], []>} : vector<2x128xbf16>, vector<128x128xbf16>, vector<2x128xf32> -> vector<2x128xf32>
      %c0_15 = arith.constant 0 : index
      %c0_16 = arith.constant 0 : index
      %18 = vector.load %arg3[%c0_15, %c0_16] : memref<1x128xf32, #tpu.memory_space<vmem>>, vector<1x128xf32>
      %19 = vector.broadcast %18 : vector<1x128xf32> to vector<2x128xf32>
      %20 = arith.addf %17, %19 : vector<2x128xf32>
      %21 = arith.negf %20 : vector<2x128xf32>
      %22 = math.exp %21 : vector<2x128xf32>
      %cst_17 = arith.constant 1.000000e+00 : f32
      %23 = vector.broadcast %cst_17 : f32 to vector<2x128xf32>
      %24 = arith.addf %23, %22 : vector<2x128xf32>
      %25 = arith.divf %23, %24 : vector<2x128xf32>
      %c0_18 = arith.constant 0 : index
      %c0_19 = arith.constant 0 : index
      %26 = vector.load %arg4[%c0_18, %c0_19] : memref<2x128xf32, #tpu.memory_space<vmem>>, vector<2x128xf32>
      tpu.vector_store %arg4[%c0_18, %c0_19], %25 {strides = array<i32>} : memref<2x128xf32, #tpu.memory_space<vmem>>, vector<2x128xf32>,
    } else {
    }
    return
  }
  func.func @transform_0(%arg0: i32) -> (i32, i32, i32) {
    %c0_i32 = arith.constant 0 : i32
    %c0_i32_0 = arith.constant 0 : i32
    %c0_i32_1 = arith.constant 0 : i32
    return %c0_i32, %arg0, %c0_i32_0 : i32, i32, i32
  }
  func.func @transform_1(%arg0: i32) -> (i32, i32) {
    %c0_i32 = arith.constant 0 : i32
    %c0_i32_0 = arith.constant 0 : i32
    %c0_i32_1 = arith.constant 0 : i32
    return %c0_i32, %c0_i32_0 : i32, i32
  }
  func.func @transform_2(%arg0: i32) -> (i32, i32) {
    %c0_i32 = arith.constant 0 : i32
    %c0_i32_0 = arith.constant 0 : i32
    %c0_i32_1 = arith.constant 0 : i32
    return %c0_i32, %c0_i32_0 : i32, i32
  }
  func.func @transform_3(%arg0: i32) -> (i32, i32) {
    %c0_i32 = arith.constant 0 : i32
    %c0_i32_0 = arith.constant 0 : i32
    %c0_i32_1 = arith.constant 0 : i32
    return %c0_i32, %c0_i32_0 : i32, i32
  }
}

module attributes {stable_mosaic.version = 11 : i64} {
  func.func @_matmul_bias_act_kernel(%arg0: i32, %arg1: memref<32x1152xbf16, #tpu.memory_space<vmem>>, %arg2: memref<1152x128xbf16, #tpu.memory_space<vmem>>, %arg3: memref<1x128xf32, #tpu.memory_space<vmem>>, %arg4: memref<32x128xbf16, #tpu.memory_space<vmem>>) attributes {dimension_semantics = [#tpu.dimension_semantics<parallel>], iteration_bounds = array<i64: 1>, scalar_prefetch = 0 : i64, scratch_operands = 0 : i64, tpu.core_type = #tpu.core_type<tc>, window_params = [{transform_indices = @transform_0, window_bounds = array<i64: 32, 1152>}, {pipeline_mode = #tpu.pipeline_mode<synchronous>, transform_indices = @transform_1, window_bounds = array<i64: 1152, 128>}, {pipeline_mode = #tpu.pipeline_mode<synchronous>, transform_indices = @transform_2, window_bounds = array<i64: 1, 128>}, {transform_indices = @transform_3, window_bounds = array<i64: 32, 128>}]} {
    %c0 = arith.constant 0 : index
    %c0_0 = arith.constant 0 : index
    %0 = vector.load %arg1[%c0, %c0_0] : memref<32x1152xbf16, #tpu.memory_space<vmem>>, vector<32x1152xbf16>
    %c0_1 = arith.constant 0 : index
    %c0_2 = arith.constant 0 : index
    %1 = vector.load %arg2[%c0_1, %c0_2] : memref<1152x128xbf16, #tpu.memory_space<vmem>>, vector<1152x128xbf16>
    %cst = arith.constant dense<0.000000e+00> : vector<32x128xf32>
    %2 = tpu.matmul %0, %1, %cst {dimension_numbers = #tpu.dot_dimension_numbers<[1], [0], [0], [1], [0, 0, 1, 1], [], []>} : vector<32x1152xbf16>, vector<1152x128xbf16>, vector<32x128xf32> -> vector<32x128xf32>
    %c0_3 = arith.constant 0 : index
    %c0_4 = arith.constant 0 : index
    %3 = vector.load %arg3[%c0_3, %c0_4] : memref<1x128xf32, #tpu.memory_space<vmem>>, vector<1x128xf32>
    %4 = vector.broadcast %3 : vector<1x128xf32> to vector<32x128xf32>
    %5 = arith.addf %2, %4 : vector<32x128xf32>
    %cst_5 = arith.constant 0.000000e+00 : f32
    %6 = vector.broadcast %cst_5 : f32 to vector<32x128xf32>
    %7 = arith.maximumf %5, %6 : vector<32x128xf32>
    %8 = arith.truncf %7 : vector<32x128xf32> to vector<32x128xbf16>
    %c0_6 = arith.constant 0 : index
    %c0_7 = arith.constant 0 : index
    %9 = vector.load %arg4[%c0_6, %c0_7] : memref<32x128xbf16, #tpu.memory_space<vmem>>, vector<32x128xbf16>
    tpu.vector_store %arg4[%c0_6, %c0_7], %8 {strides = array<i32>} : memref<32x128xbf16, #tpu.memory_space<vmem>>, vector<32x128xbf16>,
    return
  }
  func.func @transform_0(%arg0: i32) -> (i32, i32) {
    %c0_i32 = arith.constant 0 : i32
    %c0_i32_0 = arith.constant 0 : i32
    return %arg0, %c0_i32 : i32, i32
  }
  func.func @transform_1(%arg0: i32) -> (i32, i32) {
    %c0_i32 = arith.constant 0 : i32
    %c0_i32_0 = arith.constant 0 : i32
    %c0_i32_1 = arith.constant 0 : i32
    return %c0_i32, %c0_i32_0 : i32, i32
  }
  func.func @transform_2(%arg0: i32) -> (i32, i32) {
    %c0_i32 = arith.constant 0 : i32
    %c0_i32_0 = arith.constant 0 : i32
    %c0_i32_1 = arith.constant 0 : i32
    return %c0_i32, %c0_i32_0 : i32, i32
  }
  func.func @transform_3(%arg0: i32) -> (i32, i32) {
    %c0_i32 = arith.constant 0 : i32
    %c0_i32_0 = arith.constant 0 : i32
    return %arg0, %c0_i32 : i32, i32
  }
}

module attributes {stable_mosaic.version = 11 : i64} {
  func.func @_resize_axis1_kernel(%arg0: i32, %arg1: i32, %arg2: memref<8x4xf32, #tpu.memory_space<vmem>>, %arg3: memref<2x4x512xbf16, #tpu.memory_space<vmem>>, %arg4: memref<2x8x512xbf16, #tpu.memory_space<vmem>>) attributes {dimension_semantics = [#tpu.dimension_semantics<parallel>, #tpu.dimension_semantics<parallel>], iteration_bounds = array<i64: 1, 1>, scalar_prefetch = 0 : i64, scratch_operands = 0 : i64, tpu.core_type = #tpu.core_type<tc>, window_params = [{pipeline_mode = #tpu.pipeline_mode<synchronous>, transform_indices = @transform_0, window_bounds = array<i64: 8, 4>}, {transform_indices = @transform_1, window_bounds = array<i64: 2, 4, 512>}, {transform_indices = @transform_2, window_bounds = array<i64: 2, 8, 512>}]} {
    %c0 = arith.constant 0 : index
    %c0_0 = arith.constant 0 : index
    %0 = vector.load %arg2[%c0, %c0_0] : memref<8x4xf32, #tpu.memory_space<vmem>>, vector<8x4xf32>
    %1 = arith.truncf %0 : vector<8x4xf32> to vector<8x4xbf16>
    %c0_1 = arith.constant 0 : index
    %c0_2 = arith.constant 0 : index
    %c0_3 = arith.constant 0 : index
    %2 = vector.load %arg3[%c0_1, %c0_2, %c0_3] : memref<2x4x512xbf16, #tpu.memory_space<vmem>>, vector<1x4x512xbf16>
    %3 = vector.shape_cast %2 : vector<1x4x512xbf16> to vector<4x512xbf16>
    %cst = arith.constant dense<0.000000e+00> : vector<8x512xf32>
    %4 = tpu.matmul %1, %3, %cst {dimension_numbers = #tpu.dot_dimension_numbers<[1], [0], [0], [1], [0, 0, 1, 1], [], []>} : vector<8x4xbf16>, vector<4x512xbf16>, vector<8x512xf32> -> vector<8x512xf32>
    %5 = arith.truncf %4 : vector<8x512xf32> to vector<8x512xbf16>
    %c0_4 = arith.constant 0 : index
    %c0_5 = arith.constant 0 : index
    %c0_6 = arith.constant 0 : index
    %6 = vector.load %arg4[%c0_4, %c0_5, %c0_6] : memref<2x8x512xbf16, #tpu.memory_space<vmem>>, vector<1x8x512xbf16>
    %7 = vector.shape_cast %6 : vector<1x8x512xbf16> to vector<8x512xbf16>
    %8 = vector.shape_cast %5 : vector<8x512xbf16> to vector<1x8x512xbf16>
    tpu.vector_store %arg4[%c0_4, %c0_5, %c0_6], %8 {strides = array<i32>} : memref<2x8x512xbf16, #tpu.memory_space<vmem>>, vector<1x8x512xbf16>,
    %c1 = arith.constant 1 : index
    %c0_7 = arith.constant 0 : index
    %c0_8 = arith.constant 0 : index
    %9 = vector.load %arg3[%c1, %c0_7, %c0_8] : memref<2x4x512xbf16, #tpu.memory_space<vmem>>, vector<1x4x512xbf16>
    %10 = vector.shape_cast %9 : vector<1x4x512xbf16> to vector<4x512xbf16>
    %cst_9 = arith.constant dense<0.000000e+00> : vector<8x512xf32>
    %11 = tpu.matmul %1, %10, %cst_9 {dimension_numbers = #tpu.dot_dimension_numbers<[1], [0], [0], [1], [0, 0, 1, 1], [], []>} : vector<8x4xbf16>, vector<4x512xbf16>, vector<8x512xf32> -> vector<8x512xf32>
    %12 = arith.truncf %11 : vector<8x512xf32> to vector<8x512xbf16>
    %c1_10 = arith.constant 1 : index
    %c0_11 = arith.constant 0 : index
    %c0_12 = arith.constant 0 : index
    %13 = vector.load %arg4[%c1_10, %c0_11, %c0_12] : memref<2x8x512xbf16, #tpu.memory_space<vmem>>, vector<1x8x512xbf16>
    %14 = vector.shape_cast %13 : vector<1x8x512xbf16> to vector<8x512xbf16>
    %15 = vector.shape_cast %12 : vector<8x512xbf16> to vector<1x8x512xbf16>
    tpu.vector_store %arg4[%c1_10, %c0_11, %c0_12], %15 {strides = array<i32>} : memref<2x8x512xbf16, #tpu.memory_space<vmem>>, vector<1x8x512xbf16>,
    return
  }
  func.func @transform_0(%arg0: i32, %arg1: i32) -> (i32, i32) {
    %c0_i32 = arith.constant 0 : i32
    %c0_i32_0 = arith.constant 0 : i32
    %c0_i32_1 = arith.constant 0 : i32
    return %c0_i32, %c0_i32_0 : i32, i32
  }
  func.func @transform_1(%arg0: i32, %arg1: i32) -> (i32, i32, i32) {
    %c0_i32 = arith.constant 0 : i32
    %c0_i32_0 = arith.constant 0 : i32
    return %arg0, %c0_i32, %arg1 : i32, i32, i32
  }
  func.func @transform_2(%arg0: i32, %arg1: i32) -> (i32, i32, i32) {
    %c0_i32 = arith.constant 0 : i32
    %c0_i32_0 = arith.constant 0 : i32
    return %arg0, %c0_i32, %arg1 : i32, i32, i32
  }
}

module attributes {stable_mosaic.version = 11 : i64} {
  func.func @_cbr_scale_cls_kernel(%arg0: i32, %arg1: i32, %arg2: memref<1x16x128xbf16, #tpu.memory_space<vmem>>, %arg3: memref<128x128xbf16, #tpu.memory_space<vmem>>, %arg4: memref<1x128xf32, #tpu.memory_space<vmem>>, %arg5: memref<1x1x128xf32, #tpu.memory_space<vmem>>, %arg6: memref<128x128xbf16, #tpu.memory_space<vmem>>, %arg7: memref<1x128xf32, #tpu.memory_space<vmem>>, %arg8: memref<1x16x128xbf16, #tpu.memory_space<vmem>>) attributes {dimension_semantics = [#tpu.dimension_semantics<parallel>, #tpu.dimension_semantics<parallel>], iteration_bounds = array<i64: 2, 1>, scalar_prefetch = 0 : i64, scratch_operands = 0 : i64, tpu.core_type = #tpu.core_type<tc>, window_params = [{transform_indices = @transform_0, window_bounds = array<i64: 1, 16, 128>}, {pipeline_mode = #tpu.pipeline_mode<synchronous>, transform_indices = @transform_1, window_bounds = array<i64: 128, 128>}, {pipeline_mode = #tpu.pipeline_mode<synchronous>, transform_indices = @transform_2, window_bounds = array<i64: 1, 128>}, {transform_indices = @transform_3, window_bounds = array<i64: 1, 1, 128>}, {pipeline_mode = #tpu.pipeline_mode<synchronous>, transform_indices = @transform_4, window_bounds = array<i64: 128, 128>}, {pipeline_mode = #tpu.pipeline_mode<synchronous>, transform_indices = @transform_5, window_bounds = array<i64: 1, 128>}, {transform_indices = @transform_6, window_bounds = array<i64: 1, 16, 128>}]} {
    %c0 = arith.constant 0 : index
    %c0_0 = arith.constant 0 : index
    %c0_1 = arith.constant 0 : index
    %0 = vector.load %arg2[%c0, %c0_0, %c0_1] : memref<1x16x128xbf16, #tpu.memory_space<vmem>>, vector<1x16x128xbf16>
    %1 = vector.shape_cast %0 : vector<1x16x128xbf16> to vector<16x128xbf16>
    %c0_2 = arith.constant 0 : index
    %c0_3 = arith.constant 0 : index
    %2 = vector.load %arg3[%c0_2, %c0_3] : memref<128x128xbf16, #tpu.memory_space<vmem>>, vector<128x128xbf16>
    %cst = arith.constant dense<0.000000e+00> : vector<16x128xf32>
    %3 = tpu.matmul %1, %2, %cst {dimension_numbers = #tpu.dot_dimension_numbers<[1], [0], [0], [1], [0, 0, 1, 1], [], []>} : vector<16x128xbf16>, vector<128x128xbf16>, vector<16x128xf32> -> vector<16x128xf32>
    %c0_4 = arith.constant 0 : index
    %c0_5 = arith.constant 0 : index
    %4 = vector.load %arg4[%c0_4, %c0_5] : memref<1x128xf32, #tpu.memory_space<vmem>>, vector<1x128xf32>
    %5 = vector.broadcast %4 : vector<1x128xf32> to vector<16x128xf32>
    %6 = arith.addf %3, %5 : vector<16x128xf32>
    %cst_6 = arith.constant 0.000000e+00 : f32
    %7 = vector.broadcast %cst_6 : f32 to vector<16x128xf32>
    %8 = arith.maximumf %6, %7 : vector<16x128xf32>
    %c0_7 = arith.constant 0 : index
    %c0_8 = arith.constant 0 : index
    %c0_9 = arith.constant 0 : index
    %9 = vector.load %arg5[%c0_7, %c0_8, %c0_9] : memref<1x1x128xf32, #tpu.memory_space<vmem>>, vector<1x1x128xf32>
    %10 = vector.shape_cast %9 : vector<1x1x128xf32> to vector<1x128xf32>
    %11 = vector.broadcast %10 : vector<1x128xf32> to vector<16x128xf32>
    %12 = arith.mulf %8, %11 : vector<16x128xf32>
    %13 = arith.truncf %12 : vector<16x128xf32> to vector<16x128xbf16>
    %c0_10 = arith.constant 0 : index
    %c0_11 = arith.constant 0 : index
    %14 = vector.load %arg6[%c0_10, %c0_11] : memref<128x128xbf16, #tpu.memory_space<vmem>>, vector<128x128xbf16>
    %cst_12 = arith.constant dense<0.000000e+00> : vector<16x128xf32>
    %15 = tpu.matmul %13, %14, %cst_12 {dimension_numbers = #tpu.dot_dimension_numbers<[1], [0], [0], [1], [0, 0, 1, 1], [], []>} : vector<16x128xbf16>, vector<128x128xbf16>, vector<16x128xf32> -> vector<16x128xf32>
    %c0_13 = arith.constant 0 : index
    %c0_14 = arith.constant 0 : index
    %16 = vector.load %arg7[%c0_13, %c0_14] : memref<1x128xf32, #tpu.memory_space<vmem>>, vector<1x128xf32>
    %17 = vector.broadcast %16 : vector<1x128xf32> to vector<16x128xf32>
    %18 = arith.addf %15, %17 : vector<16x128xf32>
    %19 = arith.truncf %18 : vector<16x128xf32> to vector<16x128xbf16>
    %c0_15 = arith.constant 0 : index
    %c0_16 = arith.constant 0 : index
    %c0_17 = arith.constant 0 : index
    %20 = vector.load %arg8[%c0_15, %c0_16, %c0_17] : memref<1x16x128xbf16, #tpu.memory_space<vmem>>, vector<1x16x128xbf16>
    %21 = vector.shape_cast %20 : vector<1x16x128xbf16> to vector<16x128xbf16>
    %22 = vector.shape_cast %19 : vector<16x128xbf16> to vector<1x16x128xbf16>
    tpu.vector_store %arg8[%c0_15, %c0_16, %c0_17], %22 {strides = array<i32>} : memref<1x16x128xbf16, #tpu.memory_space<vmem>>, vector<1x16x128xbf16>,
    return
  }
  func.func @transform_0(%arg0: i32, %arg1: i32) -> (i32, i32, i32) {
    %c0_i32 = arith.constant 0 : i32
    %c0_i32_0 = arith.constant 0 : i32
    return %arg0, %arg1, %c0_i32 : i32, i32, i32
  }
  func.func @transform_1(%arg0: i32, %arg1: i32) -> (i32, i32) {
    %c0_i32 = arith.constant 0 : i32
    %c0_i32_0 = arith.constant 0 : i32
    %c0_i32_1 = arith.constant 0 : i32
    return %c0_i32, %c0_i32_0 : i32, i32
  }
  func.func @transform_2(%arg0: i32, %arg1: i32) -> (i32, i32) {
    %c0_i32 = arith.constant 0 : i32
    %c0_i32_0 = arith.constant 0 : i32
    %c0_i32_1 = arith.constant 0 : i32
    return %c0_i32, %c0_i32_0 : i32, i32
  }
  func.func @transform_3(%arg0: i32, %arg1: i32) -> (i32, i32, i32) {
    %c0_i32 = arith.constant 0 : i32
    %c0_i32_0 = arith.constant 0 : i32
    %c0_i32_1 = arith.constant 0 : i32
    return %arg0, %c0_i32, %c0_i32_0 : i32, i32, i32
  }
  func.func @transform_4(%arg0: i32, %arg1: i32) -> (i32, i32) {
    %c0_i32 = arith.constant 0 : i32
    %c0_i32_0 = arith.constant 0 : i32
    %c0_i32_1 = arith.constant 0 : i32
    return %c0_i32, %c0_i32_0 : i32, i32
  }
  func.func @transform_5(%arg0: i32, %arg1: i32) -> (i32, i32) {
    %c0_i32 = arith.constant 0 : i32
    %c0_i32_0 = arith.constant 0 : i32
    %c0_i32_1 = arith.constant 0 : i32
    return %c0_i32, %c0_i32_0 : i32, i32
  }
  func.func @transform_6(%arg0: i32, %arg1: i32) -> (i32, i32, i32) {
    %c0_i32 = arith.constant 0 : i32
    %c0_i32_0 = arith.constant 0 : i32
    return %arg0, %arg1, %c0_i32 : i32, i32, i32
  }
}

module attributes {stable_mosaic.version = 11 : i64} {
  func.func @_wresize_lowcls_kernel(%arg0: i32, %arg1: memref<8x4xf32, #tpu.memory_space<vmem>>, %arg2: memref<8x4x128xbf16, #tpu.memory_space<vmem>>, %arg3: memref<8x8x128xbf16, #tpu.memory_space<vmem>>, %arg4: memref<128x128xbf16, #tpu.memory_space<vmem>>, %arg5: memref<1x128xf32, #tpu.memory_space<vmem>>, %arg6: memref<8x8x128xbf16, #tpu.memory_space<vmem>>) attributes {dimension_semantics = [#tpu.dimension_semantics<parallel>], iteration_bounds = array<i64: 2>, scalar_prefetch = 0 : i64, scratch_operands = 0 : i64, tpu.core_type = #tpu.core_type<tc>, window_params = [{pipeline_mode = #tpu.pipeline_mode<synchronous>, transform_indices = @transform_0, window_bounds = array<i64: 8, 4>}, {transform_indices = @transform_1, window_bounds = array<i64: 8, 4, 128>}, {transform_indices = @transform_2, window_bounds = array<i64: 8, 8, 128>}, {pipeline_mode = #tpu.pipeline_mode<synchronous>, transform_indices = @transform_3, window_bounds = array<i64: 128, 128>}, {pipeline_mode = #tpu.pipeline_mode<synchronous>, transform_indices = @transform_4, window_bounds = array<i64: 1, 128>}, {transform_indices = @transform_5, window_bounds = array<i64: 8, 8, 128>}]} {
    %c0 = arith.constant 0 : index
    %c0_0 = arith.constant 0 : index
    %0 = vector.load %arg1[%c0, %c0_0] : memref<8x4xf32, #tpu.memory_space<vmem>>, vector<8x4xf32>
    %1 = arith.truncf %0 : vector<8x4xf32> to vector<8x4xbf16>
    %c0_1 = arith.constant 0 : index
    %c0_2 = arith.constant 0 : index
    %2 = vector.load %arg4[%c0_1, %c0_2] : memref<128x128xbf16, #tpu.memory_space<vmem>>, vector<128x128xbf16>
    %c0_3 = arith.constant 0 : index
    %c0_4 = arith.constant 0 : index
    %3 = vector.load %arg5[%c0_3, %c0_4] : memref<1x128xf32, #tpu.memory_space<vmem>>, vector<1x128xf32>
    %c0_5 = arith.constant 0 : index
    %c0_6 = arith.constant 0 : index
    %c0_7 = arith.constant 0 : index
    %4 = vector.load %arg2[%c0_5, %c0_6, %c0_7] : memref<8x4x128xbf16, #tpu.memory_space<vmem>>, vector<1x4x128xbf16>
    %5 = vector.shape_cast %4 : vector<1x4x128xbf16> to vector<4x128xbf16>
    %cst = arith.constant dense<0.000000e+00> : vector<8x128xf32>
    %6 = tpu.matmul %1, %5, %cst {dimension_numbers = #tpu.dot_dimension_numbers<[1], [0], [0], [1], [0, 0, 1, 1], [], []>} : vector<8x4xbf16>, vector<4x128xbf16>, vector<8x128xf32> -> vector<8x128xf32>
    %c0_8 = arith.constant 0 : index
    %c0_9 = arith.constant 0 : index
    %c0_10 = arith.constant 0 : index
    %7 = vector.load %arg3[%c0_8, %c0_9, %c0_10] : memref<8x8x128xbf16, #tpu.memory_space<vmem>>, vector<1x8x128xbf16>
    %8 = vector.shape_cast %7 : vector<1x8x128xbf16> to vector<8x128xbf16>
    %cst_11 = arith.constant dense<0.000000e+00> : vector<8x128xf32>
    %9 = tpu.matmul %8, %2, %cst_11 {dimension_numbers = #tpu.dot_dimension_numbers<[1], [0], [0], [1], [0, 0, 1, 1], [], []>} : vector<8x128xbf16>, vector<128x128xbf16>, vector<8x128xf32> -> vector<8x128xf32>
    %10 = arith.addf %6, %9 : vector<8x128xf32>
    %11 = vector.broadcast %3 : vector<1x128xf32> to vector<8x128xf32>
    %12 = arith.addf %10, %11 : vector<8x128xf32>
    %13 = arith.truncf %12 : vector<8x128xf32> to vector<8x128xbf16>
    %c0_12 = arith.constant 0 : index
    %c0_13 = arith.constant 0 : index
    %c0_14 = arith.constant 0 : index
    %14 = vector.load %arg6[%c0_12, %c0_13, %c0_14] : memref<8x8x128xbf16, #tpu.memory_space<vmem>>, vector<1x8x128xbf16>
    %15 = vector.shape_cast %14 : vector<1x8x128xbf16> to vector<8x128xbf16>
    %16 = vector.shape_cast %13 : vector<8x128xbf16> to vector<1x8x128xbf16>
    tpu.vector_store %arg6[%c0_12, %c0_13, %c0_14], %16 {strides = array<i32>} : memref<8x8x128xbf16, #tpu.memory_space<vmem>>, vector<1x8x128xbf16>,
    %c1 = arith.constant 1 : index
    %c0_15 = arith.constant 0 : index
    %c0_16 = arith.constant 0 : index
    %17 = vector.load %arg2[%c1, %c0_15, %c0_16] : memref<8x4x128xbf16, #tpu.memory_space<vmem>>, vector<1x4x128xbf16>
    %18 = vector.shape_cast %17 : vector<1x4x128xbf16> to vector<4x128xbf16>
    %cst_17 = arith.constant dense<0.000000e+00> : vector<8x128xf32>
    %19 = tpu.matmul %1, %18, %cst_17 {dimension_numbers = #tpu.dot_dimension_numbers<[1], [0], [0], [1], [0, 0, 1, 1], [], []>} : vector<8x4xbf16>, vector<4x128xbf16>, vector<8x128xf32> -> vector<8x128xf32>
    %c1_18 = arith.constant 1 : index
    %c0_19 = arith.constant 0 : index
    %c0_20 = arith.constant 0 : index
    %20 = vector.load %arg3[%c1_18, %c0_19, %c0_20] : memref<8x8x128xbf16, #tpu.memory_space<vmem>>, vector<1x8x128xbf16>
    %21 = vector.shape_cast %20 : vector<1x8x128xbf16> to vector<8x128xbf16>
    %cst_21 = arith.constant dense<0.000000e+00> : vector<8x128xf32>
    %22 = tpu.matmul %21, %2, %cst_21 {dimension_numbers = #tpu.dot_dimension_numbers<[1], [0], [0], [1], [0, 0, 1, 1], [], []>} : vector<8x128xbf16>, vector<128x128xbf16>, vector<8x128xf32> -> vector<8x128xf32>
    %23 = arith.addf %19, %22 : vector<8x128xf32>
    %24 = vector.broadcast %3 : vector<1x128xf32> to vector<8x128xf32>
    %25 = arith.addf %23, %24 : vector<8x128xf32>
    %26 = arith.truncf %25 : vector<8x128xf32> to vector<8x128xbf16>
    %c1_22 = arith.constant 1 : index
    %c0_23 = arith.constant 0 : index
    %c0_24 = arith.constant 0 : index
    %27 = vector.load %arg6[%c1_22, %c0_23, %c0_24] : memref<8x8x128xbf16, #tpu.memory_space<vmem>>, vector<1x8x128xbf16>
    %28 = vector.shape_cast %27 : vector<1x8x128xbf16> to vector<8x128xbf16>
    %29 = vector.shape_cast %26 : vector<8x128xbf16> to vector<1x8x128xbf16>
    tpu.vector_store %arg6[%c1_22, %c0_23, %c0_24], %29 {strides = array<i32>} : memref<8x8x128xbf16, #tpu.memory_space<vmem>>, vector<1x8x128xbf16>,
    %c2 = arith.constant 2 : index
    %c0_25 = arith.constant 0 : index
    %c0_26 = arith.constant 0 : index
    %30 = vector.load %arg2[%c2, %c0_25, %c0_26] : memref<8x4x128xbf16, #tpu.memory_space<vmem>>, vector<1x4x128xbf16>
    %31 = vector.shape_cast %30 : vector<1x4x128xbf16> to vector<4x128xbf16>
    %cst_27 = arith.constant dense<0.000000e+00> : vector<8x128xf32>
    %32 = tpu.matmul %1, %31, %cst_27 {dimension_numbers = #tpu.dot_dimension_numbers<[1], [0], [0], [1], [0, 0, 1, 1], [], []>} : vector<8x4xbf16>, vector<4x128xbf16>, vector<8x128xf32> -> vector<8x128xf32>
    %c2_28 = arith.constant 2 : index
    %c0_29 = arith.constant 0 : index
    %c0_30 = arith.constant 0 : index
    %33 = vector.load %arg3[%c2_28, %c0_29, %c0_30] : memref<8x8x128xbf16, #tpu.memory_space<vmem>>, vector<1x8x128xbf16>
    %34 = vector.shape_cast %33 : vector<1x8x128xbf16> to vector<8x128xbf16>
    %cst_31 = arith.constant dense<0.000000e+00> : vector<8x128xf32>
    %35 = tpu.matmul %34, %2, %cst_31 {dimension_numbers = #tpu.dot_dimension_numbers<[1], [0], [0], [1], [0, 0, 1, 1], [], []>} : vector<8x128xbf16>, vector<128x128xbf16>, vector<8x128xf32> -> vector<8x128xf32>
    %36 = arith.addf %32, %35 : vector<8x128xf32>
    %37 = vector.broadcast %3 : vector<1x128xf32> to vector<8x128xf32>
    %38 = arith.addf %36, %37 : vector<8x128xf32>
    %39 = arith.truncf %38 : vector<8x128xf32> to vector<8x128xbf16>
    %c2_32 = arith.constant 2 : index
    %c0_33 = arith.constant 0 : index
    %c0_34 = arith.constant 0 : index
    %40 = vector.load %arg6[%c2_32, %c0_33, %c0_34] : memref<8x8x128xbf16, #tpu.memory_space<vmem>>, vector<1x8x128xbf16>
    %41 = vector.shape_cast %40 : vector<1x8x128xbf16> to vector<8x128xbf16>
    %42 = vector.shape_cast %39 : vector<8x128xbf16> to vector<1x8x128xbf16>
    tpu.vector_store %arg6[%c2_32, %c0_33, %c0_34], %42 {strides = array<i32>} : memref<8x8x128xbf16, #tpu.memory_space<vmem>>, vector<1x8x128xbf16>,
    %c3 = arith.constant 3 : index
    %c0_35 = arith.constant 0 : index
    %c0_36 = arith.constant 0 : index
    %43 = vector.load %arg2[%c3, %c0_35, %c0_36] : memref<8x4x128xbf16, #tpu.memory_space<vmem>>, vector<1x4x128xbf16>
    %44 = vector.shape_cast %43 : vector<1x4x128xbf16> to vector<4x128xbf16>
    %cst_37 = arith.constant dense<0.000000e+00> : vector<8x128xf32>
    %45 = tpu.matmul %1, %44, %cst_37 {dimension_numbers = #tpu.dot_dimension_numbers<[1], [0], [0], [1], [0, 0, 1, 1], [], []>} : vector<8x4xbf16>, vector<4x128xbf16>, vector<8x128xf32> -> vector<8x128xf32>
    %c3_38 = arith.constant 3 : index
    %c0_39 = arith.constant 0 : index
    %c0_40 = arith.constant 0 : index
    %46 = vector.load %arg3[%c3_38, %c0_39, %c0_40] : memref<8x8x128xbf16, #tpu.memory_space<vmem>>, vector<1x8x128xbf16>
    %47 = vector.shape_cast %46 : vector<1x8x128xbf16> to vector<8x128xbf16>
    %cst_41 = arith.constant dense<0.000000e+00> : vector<8x128xf32>
    %48 = tpu.matmul %47, %2, %cst_41 {dimension_numbers = #tpu.dot_dimension_numbers<[1], [0], [0], [1], [0, 0, 1, 1], [], []>} : vector<8x128xbf16>, vector<128x128xbf16>, vector<8x128xf32> -> vector<8x128xf32>
    %49 = arith.addf %45, %48 : vector<8x128xf32>
    %50 = vector.broadcast %3 : vector<1x128xf32> to vector<8x128xf32>
    %51 = arith.addf %49, %50 : vector<8x128xf32>
    %52 = arith.truncf %51 : vector<8x128xf32> to vector<8x128xbf16>
    %c3_42 = arith.constant 3 : index
    %c0_43 = arith.constant 0 : index
    %c0_44 = arith.constant 0 : index
    %53 = vector.load %arg6[%c3_42, %c0_43, %c0_44] : memref<8x8x128xbf16, #tpu.memory_space<vmem>>, vector<1x8x128xbf16>
    %54 = vector.shape_cast %53 : vector<1x8x128xbf16> to vector<8x128xbf16>
    %55 = vector.shape_cast %52 : vector<8x128xbf16> to vector<1x8x128xbf16>
    tpu.vector_store %arg6[%c3_42, %c0_43, %c0_44], %55 {strides = array<i32>} : memref<8x8x128xbf16, #tpu.memory_space<vmem>>, vector<1x8x128xbf16>,
    %c4 = arith.constant 4 : index
    %c0_45 = arith.constant 0 : index
    %c0_46 = arith.constant 0 : index
    %56 = vector.load %arg2[%c4, %c0_45, %c0_46] : memref<8x4x128xbf16, #tpu.memory_space<vmem>>, vector<1x4x128xbf16>
    %57 = vector.shape_cast %56 : vector<1x4x128xbf16> to vector<4x128xbf16>
    %cst_47 = arith.constant dense<0.000000e+00> : vector<8x128xf32>
    %58 = tpu.matmul %1, %57, %cst_47 {dimension_numbers = #tpu.dot_dimension_numbers<[1], [0], [0], [1], [0, 0, 1, 1], [], []>} : vector<8x4xbf16>, vector<4x128xbf16>, vector<8x128xf32> -> vector<8x128xf32>
    %c4_48 = arith.constant 4 : index
    %c0_49 = arith.constant 0 : index
    %c0_50 = arith.constant 0 : index
    %59 = vector.load %arg3[%c4_48, %c0_49, %c0_50] : memref<8x8x128xbf16, #tpu.memory_space<vmem>>, vector<1x8x128xbf16>
    %60 = vector.shape_cast %59 : vector<1x8x128xbf16> to vector<8x128xbf16>
    %cst_51 = arith.constant dense<0.000000e+00> : vector<8x128xf32>
    %61 = tpu.matmul %60, %2, %cst_51 {dimension_numbers = #tpu.dot_dimension_numbers<[1], [0], [0], [1], [0, 0, 1, 1], [], []>} : vector<8x128xbf16>, vector<128x128xbf16>, vector<8x128xf32> -> vector<8x128xf32>
    %62 = arith.addf %58, %61 : vector<8x128xf32>
    %63 = vector.broadcast %3 : vector<1x128xf32> to vector<8x128xf32>
    %64 = arith.addf %62, %63 : vector<8x128xf32>
    %65 = arith.truncf %64 : vector<8x128xf32> to vector<8x128xbf16>
    %c4_52 = arith.constant 4 : index
    %c0_53 = arith.constant 0 : index
    %c0_54 = arith.constant 0 : index
    %66 = vector.load %arg6[%c4_52, %c0_53, %c0_54] : memref<8x8x128xbf16, #tpu.memory_space<vmem>>, vector<1x8x128xbf16>
    %67 = vector.shape_cast %66 : vector<1x8x128xbf16> to vector<8x128xbf16>
    %68 = vector.shape_cast %65 : vector<8x128xbf16> to vector<1x8x128xbf16>
    tpu.vector_store %arg6[%c4_52, %c0_53, %c0_54], %68 {strides = array<i32>} : memref<8x8x128xbf16, #tpu.memory_space<vmem>>, vector<1x8x128xbf16>,
    %c5 = arith.constant 5 : index
    %c0_55 = arith.constant 0 : index
    %c0_56 = arith.constant 0 : index
    %69 = vector.load %arg2[%c5, %c0_55, %c0_56] : memref<8x4x128xbf16, #tpu.memory_space<vmem>>, vector<1x4x128xbf16>
    %70 = vector.shape_cast %69 : vector<1x4x128xbf16> to vector<4x128xbf16>
    %cst_57 = arith.constant dense<0.000000e+00> : vector<8x128xf32>
    %71 = tpu.matmul %1, %70, %cst_57 {dimension_numbers = #tpu.dot_dimension_numbers<[1], [0], [0], [1], [0, 0, 1, 1], [], []>} : vector<8x4xbf16>, vector<4x128xbf16>, vector<8x128xf32> -> vector<8x128xf32>
    %c5_58 = arith.constant 5 : index
    %c0_59 = arith.constant 0 : index
    %c0_60 = arith.constant 0 : index
    %72 = vector.load %arg3[%c5_58, %c0_59, %c0_60] : memref<8x8x128xbf16, #tpu.memory_space<vmem>>, vector<1x8x128xbf16>
    %73 = vector.shape_cast %72 : vector<1x8x128xbf16> to vector<8x128xbf16>
    %cst_61 = arith.constant dense<0.000000e+00> : vector<8x128xf32>
    %74 = tpu.matmul %73, %2, %cst_61 {dimension_numbers = #tpu.dot_dimension_numbers<[1], [0], [0], [1], [0, 0, 1, 1], [], []>} : vector<8x128xbf16>, vector<128x128xbf16>, vector<8x128xf32> -> vector<8x128xf32>
    %75 = arith.addf %71, %74 : vector<8x128xf32>
    %76 = vector.broadcast %3 : vector<1x128xf32> to vector<8x128xf32>
    %77 = arith.addf %75, %76 : vector<8x128xf32>
    %78 = arith.truncf %77 : vector<8x128xf32> to vector<8x128xbf16>
    %c5_62 = arith.constant 5 : index
    %c0_63 = arith.constant 0 : index
    %c0_64 = arith.constant 0 : index
    %79 = vector.load %arg6[%c5_62, %c0_63, %c0_64] : memref<8x8x128xbf16, #tpu.memory_space<vmem>>, vector<1x8x128xbf16>
    %80 = vector.shape_cast %79 : vector<1x8x128xbf16> to vector<8x128xbf16>
    %81 = vector.shape_cast %78 : vector<8x128xbf16> to vector<1x8x128xbf16>
    tpu.vector_store %arg6[%c5_62, %c0_63, %c0_64], %81 {strides = array<i32>} : memref<8x8x128xbf16, #tpu.memory_space<vmem>>, vector<1x8x128xbf16>,
    %c6 = arith.constant 6 : index
    %c0_65 = arith.constant 0 : index
    %c0_66 = arith.constant 0 : index
    %82 = vector.load %arg2[%c6, %c0_65, %c0_66] : memref<8x4x128xbf16, #tpu.memory_space<vmem>>, vector<1x4x128xbf16>
    %83 = vector.shape_cast %82 : vector<1x4x128xbf16> to vector<4x128xbf16>
    %cst_67 = arith.constant dense<0.000000e+00> : vector<8x128xf32>
    %84 = tpu.matmul %1, %83, %cst_67 {dimension_numbers = #tpu.dot_dimension_numbers<[1], [0], [0], [1], [0, 0, 1, 1], [], []>} : vector<8x4xbf16>, vector<4x128xbf16>, vector<8x128xf32> -> vector<8x128xf32>
    %c6_68 = arith.constant 6 : index
    %c0_69 = arith.constant 0 : index
    %c0_70 = arith.constant 0 : index
    %85 = vector.load %arg3[%c6_68, %c0_69, %c0_70] : memref<8x8x128xbf16, #tpu.memory_space<vmem>>, vector<1x8x128xbf16>
    %86 = vector.shape_cast %85 : vector<1x8x128xbf16> to vector<8x128xbf16>
    %cst_71 = arith.constant dense<0.000000e+00> : vector<8x128xf32>
    %87 = tpu.matmul %86, %2, %cst_71 {dimension_numbers = #tpu.dot_dimension_numbers<[1], [0], [0], [1], [0, 0, 1, 1], [], []>} : vector<8x128xbf16>, vector<128x128xbf16>, vector<8x128xf32> -> vector<8x128xf32>
    %88 = arith.addf %84, %87 : vector<8x128xf32>
    %89 = vector.broadcast %3 : vector<1x128xf32> to vector<8x128xf32>
    %90 = arith.addf %88, %89 : vector<8x128xf32>
    %91 = arith.truncf %90 : vector<8x128xf32> to vector<8x128xbf16>
    %c6_72 = arith.constant 6 : index
    %c0_73 = arith.constant 0 : index
    %c0_74 = arith.constant 0 : index
    %92 = vector.load %arg6[%c6_72, %c0_73, %c0_74] : memref<8x8x128xbf16, #tpu.memory_space<vmem>>, vector<1x8x128xbf16>
    %93 = vector.shape_cast %92 : vector<1x8x128xbf16> to vector<8x128xbf16>
    %94 = vector.shape_cast %91 : vector<8x128xbf16> to vector<1x8x128xbf16>
    tpu.vector_store %arg6[%c6_72, %c0_73, %c0_74], %94 {strides = array<i32>} : memref<8x8x128xbf16, #tpu.memory_space<vmem>>, vector<1x8x128xbf16>,
    %c7 = arith.constant 7 : index
    %c0_75 = arith.constant 0 : index
    %c0_76 = arith.constant 0 : index
    %95 = vector.load %arg2[%c7, %c0_75, %c0_76] : memref<8x4x128xbf16, #tpu.memory_space<vmem>>, vector<1x4x128xbf16>
    %96 = vector.shape_cast %95 : vector<1x4x128xbf16> to vector<4x128xbf16>
    %cst_77 = arith.constant dense<0.000000e+00> : vector<8x128xf32>
    %97 = tpu.matmul %1, %96, %cst_77 {dimension_numbers = #tpu.dot_dimension_numbers<[1], [0], [0], [1], [0, 0, 1, 1], [], []>} : vector<8x4xbf16>, vector<4x128xbf16>, vector<8x128xf32> -> vector<8x128xf32>
    %c7_78 = arith.constant 7 : index
    %c0_79 = arith.constant 0 : index
    %c0_80 = arith.constant 0 : index
    %98 = vector.load %arg3[%c7_78, %c0_79, %c0_80] : memref<8x8x128xbf16, #tpu.memory_space<vmem>>, vector<1x8x128xbf16>
    %99 = vector.shape_cast %98 : vector<1x8x128xbf16> to vector<8x128xbf16>
    %cst_81 = arith.constant dense<0.000000e+00> : vector<8x128xf32>
    %100 = tpu.matmul %99, %2, %cst_81 {dimension_numbers = #tpu.dot_dimension_numbers<[1], [0], [0], [1], [0, 0, 1, 1], [], []>} : vector<8x128xbf16>, vector<128x128xbf16>, vector<8x128xf32> -> vector<8x128xf32>
    %101 = arith.addf %97, %100 : vector<8x128xf32>
    %102 = vector.broadcast %3 : vector<1x128xf32> to vector<8x128xf32>
    %103 = arith.addf %101, %102 : vector<8x128xf32>
    %104 = arith.truncf %103 : vector<8x128xf32> to vector<8x128xbf16>
    %c7_82 = arith.constant 7 : index
    %c0_83 = arith.constant 0 : index
    %c0_84 = arith.constant 0 : index
    %105 = vector.load %arg6[%c7_82, %c0_83, %c0_84] : memref<8x8x128xbf16, #tpu.memory_space<vmem>>, vector<1x8x128xbf16>
    %106 = vector.shape_cast %105 : vector<1x8x128xbf16> to vector<8x128xbf16>
    %107 = vector.shape_cast %104 : vector<8x128xbf16> to vector<1x8x128xbf16>
    tpu.vector_store %arg6[%c7_82, %c0_83, %c0_84], %107 {strides = array<i32>} : memref<8x8x128xbf16, #tpu.memory_space<vmem>>, vector<1x8x128xbf16>,
    return
  }
  func.func @transform_0(%arg0: i32) -> (i32, i32) {
    %c0_i32 = arith.constant 0 : i32
    %c0_i32_0 = arith.constant 0 : i32
    %c0_i32_1 = arith.constant 0 : i32
    return %c0_i32, %c0_i32_0 : i32, i32
  }
  func.func @transform_1(%arg0: i32) -> (i32, i32, i32) {
    %c0_i32 = arith.constant 0 : i32
    %c0_i32_0 = arith.constant 0 : i32
    %c0_i32_1 = arith.constant 0 : i32
    return %arg0, %c0_i32, %c0_i32_0 : i32, i32, i32
  }
  func.func @transform_2(%arg0: i32) -> (i32, i32, i32) {
    %c0_i32 = arith.constant 0 : i32
    %c0_i32_0 = arith.constant 0 : i32
    %c0_i32_1 = arith.constant 0 : i32
    return %arg0, %c0_i32, %c0_i32_0 : i32, i32, i32
  }
  func.func @transform_3(%arg0: i32) -> (i32, i32) {
    %c0_i32 = arith.constant 0 : i32
    %c0_i32_0 = arith.constant 0 : i32
    %c0_i32_1 = arith.constant 0 : i32
    return %c0_i32, %c0_i32_0 : i32, i32
  }
  func.func @transform_4(%arg0: i32) -> (i32, i32) {
    %c0_i32 = arith.constant 0 : i32
    %c0_i32_0 = arith.constant 0 : i32
    %c0_i32_1 = arith.constant 0 : i32
    return %c0_i32, %c0_i32_0 : i32, i32
  }
  func.func @transform_5(%arg0: i32) -> (i32, i32, i32) {
    %c0_i32 = arith.constant 0 : i32
    %c0_i32_0 = arith.constant 0 : i32
    %c0_i32_1 = arith.constant 0 : i32
    return %arg0, %c0_i32, %c0_i32_0 : i32, i32, i32
  }
}

module attributes {stable_mosaic.version = 11 : i64} {
  func.func @_resize_axis1_kernel(%arg0: i32, %arg1: i32, %arg2: memref<16x8xf32, #tpu.memory_space<vmem>>, %arg3: memref<2x8x1024xbf16, #tpu.memory_space<vmem>>, %arg4: memref<2x16x1024xbf16, #tpu.memory_space<vmem>>) attributes {dimension_semantics = [#tpu.dimension_semantics<parallel>, #tpu.dimension_semantics<parallel>], iteration_bounds = array<i64: 1, 1>, scalar_prefetch = 0 : i64, scratch_operands = 0 : i64, tpu.core_type = #tpu.core_type<tc>, window_params = [{pipeline_mode = #tpu.pipeline_mode<synchronous>, transform_indices = @transform_0, window_bounds = array<i64: 16, 8>}, {transform_indices = @transform_1, window_bounds = array<i64: 2, 8, 1024>}, {transform_indices = @transform_2, window_bounds = array<i64: 2, 16, 1024>}]} {
    %c0 = arith.constant 0 : index
    %c0_0 = arith.constant 0 : index
    %0 = vector.load %arg2[%c0, %c0_0] : memref<16x8xf32, #tpu.memory_space<vmem>>, vector<16x8xf32>
    %1 = arith.truncf %0 : vector<16x8xf32> to vector<16x8xbf16>
    %c0_1 = arith.constant 0 : index
    %c0_2 = arith.constant 0 : index
    %c0_3 = arith.constant 0 : index
    %2 = vector.load %arg3[%c0_1, %c0_2, %c0_3] : memref<2x8x1024xbf16, #tpu.memory_space<vmem>>, vector<1x8x1024xbf16>
    %3 = vector.shape_cast %2 : vector<1x8x1024xbf16> to vector<8x1024xbf16>
    %cst = arith.constant dense<0.000000e+00> : vector<16x1024xf32>
    %4 = tpu.matmul %1, %3, %cst {dimension_numbers = #tpu.dot_dimension_numbers<[1], [0], [0], [1], [0, 0, 1, 1], [], []>} : vector<16x8xbf16>, vector<8x1024xbf16>, vector<16x1024xf32> -> vector<16x1024xf32>
    %5 = arith.truncf %4 : vector<16x1024xf32> to vector<16x1024xbf16>
    %c0_4 = arith.constant 0 : index
    %c0_5 = arith.constant 0 : index
    %c0_6 = arith.constant 0 : index
    %6 = vector.load %arg4[%c0_4, %c0_5, %c0_6] : memref<2x16x1024xbf16, #tpu.memory_space<vmem>>, vector<1x16x1024xbf16>
    %7 = vector.shape_cast %6 : vector<1x16x1024xbf16> to vector<16x1024xbf16>
    %8 = vector.shape_cast %5 : vector<16x1024xbf16> to vector<1x16x1024xbf16>
    tpu.vector_store %arg4[%c0_4, %c0_5, %c0_6], %8 {strides = array<i32>} : memref<2x16x1024xbf16, #tpu.memory_space<vmem>>, vector<1x16x1024xbf16>,
    %c1 = arith.constant 1 : index
    %c0_7 = arith.constant 0 : index
    %c0_8 = arith.constant 0 : index
    %9 = vector.load %arg3[%c1, %c0_7, %c0_8] : memref<2x8x1024xbf16, #tpu.memory_space<vmem>>, vector<1x8x1024xbf16>
    %10 = vector.shape_cast %9 : vector<1x8x1024xbf16> to vector<8x1024xbf16>
    %cst_9 = arith.constant dense<0.000000e+00> : vector<16x1024xf32>
    %11 = tpu.matmul %1, %10, %cst_9 {dimension_numbers = #tpu.dot_dimension_numbers<[1], [0], [0], [1], [0, 0, 1, 1], [], []>} : vector<16x8xbf16>, vector<8x1024xbf16>, vector<16x1024xf32> -> vector<16x1024xf32>
    %12 = arith.truncf %11 : vector<16x1024xf32> to vector<16x1024xbf16>
    %c1_10 = arith.constant 1 : index
    %c0_11 = arith.constant 0 : index
    %c0_12 = arith.constant 0 : index
    %13 = vector.load %arg4[%c1_10, %c0_11, %c0_12] : memref<2x16x1024xbf16, #tpu.memory_space<vmem>>, vector<1x16x1024xbf16>
    %14 = vector.shape_cast %13 : vector<1x16x1024xbf16> to vector<16x1024xbf16>
    %15 = vector.shape_cast %12 : vector<16x1024xbf16> to vector<1x16x1024xbf16>
    tpu.vector_store %arg4[%c1_10, %c0_11, %c0_12], %15 {strides = array<i32>} : memref<2x16x1024xbf16, #tpu.memory_space<vmem>>, vector<1x16x1024xbf16>,
    return
  }
  func.func @transform_0(%arg0: i32, %arg1: i32) -> (i32, i32) {
    %c0_i32 = arith.constant 0 : i32
    %c0_i32_0 = arith.constant 0 : i32
    %c0_i32_1 = arith.constant 0 : i32
    return %c0_i32, %c0_i32_0 : i32, i32
  }
  func.func @transform_1(%arg0: i32, %arg1: i32) -> (i32, i32, i32) {
    %c0_i32 = arith.constant 0 : i32
    %c0_i32_0 = arith.constant 0 : i32
    return %arg0, %c0_i32, %arg1 : i32, i32, i32
  }
  func.func @transform_2(%arg0: i32, %arg1: i32) -> (i32, i32, i32) {
    %c0_i32 = arith.constant 0 : i32
    %c0_i32_0 = arith.constant 0 : i32
    return %arg0, %c0_i32, %arg1 : i32, i32, i32
  }
}

module attributes {stable_mosaic.version = 11 : i64} {
  func.func @_resize_axis1_kernel(%arg0: i32, %arg1: i32, %arg2: memref<16x8xf32, #tpu.memory_space<vmem>>, %arg3: memref<8x8x128xbf16, #tpu.memory_space<vmem>>, %arg4: memref<8x16x128xf32, #tpu.memory_space<vmem>>) attributes {dimension_semantics = [#tpu.dimension_semantics<parallel>, #tpu.dimension_semantics<parallel>], iteration_bounds = array<i64: 4, 1>, scalar_prefetch = 0 : i64, scratch_operands = 0 : i64, tpu.core_type = #tpu.core_type<tc>, window_params = [{pipeline_mode = #tpu.pipeline_mode<synchronous>, transform_indices = @transform_0, window_bounds = array<i64: 16, 8>}, {transform_indices = @transform_1, window_bounds = array<i64: 8, 8, 128>}, {transform_indices = @transform_2, window_bounds = array<i64: 8, 16, 128>}]} {
    %c0 = arith.constant 0 : index
    %c0_0 = arith.constant 0 : index
    %0 = vector.load %arg2[%c0, %c0_0] : memref<16x8xf32, #tpu.memory_space<vmem>>, vector<16x8xf32>
    %1 = arith.truncf %0 : vector<16x8xf32> to vector<16x8xbf16>
    %c0_1 = arith.constant 0 : index
    %c0_2 = arith.constant 0 : index
    %c0_3 = arith.constant 0 : index
    %2 = vector.load %arg3[%c0_1, %c0_2, %c0_3] : memref<8x8x128xbf16, #tpu.memory_space<vmem>>, vector<1x8x128xbf16>
    %3 = vector.shape_cast %2 : vector<1x8x128xbf16> to vector<8x128xbf16>
    %cst = arith.constant dense<0.000000e+00> : vector<16x128xf32>
    %4 = tpu.matmul %1, %3, %cst {dimension_numbers = #tpu.dot_dimension_numbers<[1], [0], [0], [1], [0, 0, 1, 1], [], []>} : vector<16x8xbf16>, vector<8x128xbf16>, vector<16x128xf32> -> vector<16x128xf32>
    %c0_4 = arith.constant 0 : index
    %c0_5 = arith.constant 0 : index
    %c0_6 = arith.constant 0 : index
    %5 = vector.load %arg4[%c0_4, %c0_5, %c0_6] : memref<8x16x128xf32, #tpu.memory_space<vmem>>, vector<1x16x128xf32>
    %6 = vector.shape_cast %5 : vector<1x16x128xf32> to vector<16x128xf32>
    %7 = vector.shape_cast %4 : vector<16x128xf32> to vector<1x16x128xf32>
    tpu.vector_store %arg4[%c0_4, %c0_5, %c0_6], %7 {strides = array<i32>} : memref<8x16x128xf32, #tpu.memory_space<vmem>>, vector<1x16x128xf32>,
    %c1 = arith.constant 1 : index
    %c0_7 = arith.constant 0 : index
    %c0_8 = arith.constant 0 : index
    %8 = vector.load %arg3[%c1, %c0_7, %c0_8] : memref<8x8x128xbf16, #tpu.memory_space<vmem>>, vector<1x8x128xbf16>
    %9 = vector.shape_cast %8 : vector<1x8x128xbf16> to vector<8x128xbf16>
    %cst_9 = arith.constant dense<0.000000e+00> : vector<16x128xf32>
    %10 = tpu.matmul %1, %9, %cst_9 {dimension_numbers = #tpu.dot_dimension_numbers<[1], [0], [0], [1], [0, 0, 1, 1], [], []>} : vector<16x8xbf16>, vector<8x128xbf16>, vector<16x128xf32> -> vector<16x128xf32>
    %c1_10 = arith.constant 1 : index
    %c0_11 = arith.constant 0 : index
    %c0_12 = arith.constant 0 : index
    %11 = vector.load %arg4[%c1_10, %c0_11, %c0_12] : memref<8x16x128xf32, #tpu.memory_space<vmem>>, vector<1x16x128xf32>
    %12 = vector.shape_cast %11 : vector<1x16x128xf32> to vector<16x128xf32>
    %13 = vector.shape_cast %10 : vector<16x128xf32> to vector<1x16x128xf32>
    tpu.vector_store %arg4[%c1_10, %c0_11, %c0_12], %13 {strides = array<i32>} : memref<8x16x128xf32, #tpu.memory_space<vmem>>, vector<1x16x128xf32>,
    %c2 = arith.constant 2 : index
    %c0_13 = arith.constant 0 : index
    %c0_14 = arith.constant 0 : index
    %14 = vector.load %arg3[%c2, %c0_13, %c0_14] : memref<8x8x128xbf16, #tpu.memory_space<vmem>>, vector<1x8x128xbf16>
    %15 = vector.shape_cast %14 : vector<1x8x128xbf16> to vector<8x128xbf16>
    %cst_15 = arith.constant dense<0.000000e+00> : vector<16x128xf32>
    %16 = tpu.matmul %1, %15, %cst_15 {dimension_numbers = #tpu.dot_dimension_numbers<[1], [0], [0], [1], [0, 0, 1, 1], [], []>} : vector<16x8xbf16>, vector<8x128xbf16>, vector<16x128xf32> -> vector<16x128xf32>
    %c2_16 = arith.constant 2 : index
    %c0_17 = arith.constant 0 : index
    %c0_18 = arith.constant 0 : index
    %17 = vector.load %arg4[%c2_16, %c0_17, %c0_18] : memref<8x16x128xf32, #tpu.memory_space<vmem>>, vector<1x16x128xf32>
    %18 = vector.shape_cast %17 : vector<1x16x128xf32> to vector<16x128xf32>
    %19 = vector.shape_cast %16 : vector<16x128xf32> to vector<1x16x128xf32>
    tpu.vector_store %arg4[%c2_16, %c0_17, %c0_18], %19 {strides = array<i32>} : memref<8x16x128xf32, #tpu.memory_space<vmem>>, vector<1x16x128xf32>,
    %c3 = arith.constant 3 : index
    %c0_19 = arith.constant 0 : index
    %c0_20 = arith.constant 0 : index
    %20 = vector.load %arg3[%c3, %c0_19, %c0_20] : memref<8x8x128xbf16, #tpu.memory_space<vmem>>, vector<1x8x128xbf16>
    %21 = vector.shape_cast %20 : vector<1x8x128xbf16> to vector<8x128xbf16>
    %cst_21 = arith.constant dense<0.000000e+00> : vector<16x128xf32>
    %22 = tpu.matmul %1, %21, %cst_21 {dimension_numbers = #tpu.dot_dimension_numbers<[1], [0], [0], [1], [0, 0, 1, 1], [], []>} : vector<16x8xbf16>, vector<8x128xbf16>, vector<16x128xf32> -> vector<16x128xf32>
    %c3_22 = arith.constant 3 : index
    %c0_23 = arith.constant 0 : index
    %c0_24 = arith.constant 0 : index
    %23 = vector.load %arg4[%c3_22, %c0_23, %c0_24] : memref<8x16x128xf32, #tpu.memory_space<vmem>>, vector<1x16x128xf32>
    %24 = vector.shape_cast %23 : vector<1x16x128xf32> to vector<16x128xf32>
    %25 = vector.shape_cast %22 : vector<16x128xf32> to vector<1x16x128xf32>
    tpu.vector_store %arg4[%c3_22, %c0_23, %c0_24], %25 {strides = array<i32>} : memref<8x16x128xf32, #tpu.memory_space<vmem>>, vector<1x16x128xf32>,
    %c4 = arith.constant 4 : index
    %c0_25 = arith.constant 0 : index
    %c0_26 = arith.constant 0 : index
    %26 = vector.load %arg3[%c4, %c0_25, %c0_26] : memref<8x8x128xbf16, #tpu.memory_space<vmem>>, vector<1x8x128xbf16>
    %27 = vector.shape_cast %26 : vector<1x8x128xbf16> to vector<8x128xbf16>
    %cst_27 = arith.constant dense<0.000000e+00> : vector<16x128xf32>
    %28 = tpu.matmul %1, %27, %cst_27 {dimension_numbers = #tpu.dot_dimension_numbers<[1], [0], [0], [1], [0, 0, 1, 1], [], []>} : vector<16x8xbf16>, vector<8x128xbf16>, vector<16x128xf32> -> vector<16x128xf32>
    %c4_28 = arith.constant 4 : index
    %c0_29 = arith.constant 0 : index
    %c0_30 = arith.constant 0 : index
    %29 = vector.load %arg4[%c4_28, %c0_29, %c0_30] : memref<8x16x128xf32, #tpu.memory_space<vmem>>, vector<1x16x128xf32>
    %30 = vector.shape_cast %29 : vector<1x16x128xf32> to vector<16x128xf32>
    %31 = vector.shape_cast %28 : vector<16x128xf32> to vector<1x16x128xf32>
    tpu.vector_store %arg4[%c4_28, %c0_29, %c0_30], %31 {strides = array<i32>} : memref<8x16x128xf32, #tpu.memory_space<vmem>>, vector<1x16x128xf32>,
    %c5 = arith.constant 5 : index
    %c0_31 = arith.constant 0 : index
    %c0_32 = arith.constant 0 : index
    %32 = vector.load %arg3[%c5, %c0_31, %c0_32] : memref<8x8x128xbf16, #tpu.memory_space<vmem>>, vector<1x8x128xbf16>
    %33 = vector.shape_cast %32 : vector<1x8x128xbf16> to vector<8x128xbf16>
    %cst_33 = arith.constant dense<0.000000e+00> : vector<16x128xf32>
    %34 = tpu.matmul %1, %33, %cst_33 {dimension_numbers = #tpu.dot_dimension_numbers<[1], [0], [0], [1], [0, 0, 1, 1], [], []>} : vector<16x8xbf16>, vector<8x128xbf16>, vector<16x128xf32> -> vector<16x128xf32>
    %c5_34 = arith.constant 5 : index
    %c0_35 = arith.constant 0 : index
    %c0_36 = arith.constant 0 : index
    %35 = vector.load %arg4[%c5_34, %c0_35, %c0_36] : memref<8x16x128xf32, #tpu.memory_space<vmem>>, vector<1x16x128xf32>
    %36 = vector.shape_cast %35 : vector<1x16x128xf32> to vector<16x128xf32>
    %37 = vector.shape_cast %34 : vector<16x128xf32> to vector<1x16x128xf32>
    tpu.vector_store %arg4[%c5_34, %c0_35, %c0_36], %37 {strides = array<i32>} : memref<8x16x128xf32, #tpu.memory_space<vmem>>, vector<1x16x128xf32>,
    %c6 = arith.constant 6 : index
    %c0_37 = arith.constant 0 : index
    %c0_38 = arith.constant 0 : index
    %38 = vector.load %arg3[%c6, %c0_37, %c0_38] : memref<8x8x128xbf16, #tpu.memory_space<vmem>>, vector<1x8x128xbf16>
    %39 = vector.shape_cast %38 : vector<1x8x128xbf16> to vector<8x128xbf16>
    %cst_39 = arith.constant dense<0.000000e+00> : vector<16x128xf32>
    %40 = tpu.matmul %1, %39, %cst_39 {dimension_numbers = #tpu.dot_dimension_numbers<[1], [0], [0], [1], [0, 0, 1, 1], [], []>} : vector<16x8xbf16>, vector<8x128xbf16>, vector<16x128xf32> -> vector<16x128xf32>
    %c6_40 = arith.constant 6 : index
    %c0_41 = arith.constant 0 : index
    %c0_42 = arith.constant 0 : index
    %41 = vector.load %arg4[%c6_40, %c0_41, %c0_42] : memref<8x16x128xf32, #tpu.memory_space<vmem>>, vector<1x16x128xf32>
    %42 = vector.shape_cast %41 : vector<1x16x128xf32> to vector<16x128xf32>
    %43 = vector.shape_cast %40 : vector<16x128xf32> to vector<1x16x128xf32>
    tpu.vector_store %arg4[%c6_40, %c0_41, %c0_42], %43 {strides = array<i32>} : memref<8x16x128xf32, #tpu.memory_space<vmem>>, vector<1x16x128xf32>,
    %c7 = arith.constant 7 : index
    %c0_43 = arith.constant 0 : index
    %c0_44 = arith.constant 0 : index
    %44 = vector.load %arg3[%c7, %c0_43, %c0_44] : memref<8x8x128xbf16, #tpu.memory_space<vmem>>, vector<1x8x128xbf16>
    %45 = vector.shape_cast %44 : vector<1x8x128xbf16> to vector<8x128xbf16>
    %cst_45 = arith.constant dense<0.000000e+00> : vector<16x128xf32>
    %46 = tpu.matmul %1, %45, %cst_45 {dimension_numbers = #tpu.dot_dimension_numbers<[1], [0], [0], [1], [0, 0, 1, 1], [], []>} : vector<16x8xbf16>, vector<8x128xbf16>, vector<16x128xf32> -> vector<16x128xf32>
    %c7_46 = arith.constant 7 : index
    %c0_47 = arith.constant 0 : index
    %c0_48 = arith.constant 0 : index
    %47 = vector.load %arg4[%c7_46, %c0_47, %c0_48] : memref<8x16x128xf32, #tpu.memory_space<vmem>>, vector<1x16x128xf32>
    %48 = vector.shape_cast %47 : vector<1x16x128xf32> to vector<16x128xf32>
    %49 = vector.shape_cast %46 : vector<16x128xf32> to vector<1x16x128xf32>
    tpu.vector_store %arg4[%c7_46, %c0_47, %c0_48], %49 {strides = array<i32>} : memref<8x16x128xf32, #tpu.memory_space<vmem>>, vector<1x16x128xf32>,
    return
  }
  func.func @transform_0(%arg0: i32, %arg1: i32) -> (i32, i32) {
    %c0_i32 = arith.constant 0 : i32
    %c0_i32_0 = arith.constant 0 : i32
    %c0_i32_1 = arith.constant 0 : i32
    return %c0_i32, %c0_i32_0 : i32, i32
  }
  func.func @transform_1(%arg0: i32, %arg1: i32) -> (i32, i32, i32) {
    %c0_i32 = arith.constant 0 : i32
    %c0_i32_0 = arith.constant 0 : i32
    return %arg0, %c0_i32, %arg1 : i32, i32, i32
  }
  func.func @transform_2(%arg0: i32, %arg1: i32) -> (i32, i32, i32) {
    %c0_i32 = arith.constant 0 : i32
    %c0_i32_0 = arith.constant 0 : i32
    return %arg0, %c0_i32, %arg1 : i32, i32, i32
  }
}

</mosaic_0001>

<bundles_post_ra>
// kernel: segmenter_forward.8
= control target key start
LH: loop header
LB: loop body
LE: loop exit
PB: predicated region body
PF: predicated region fallthrough
CT: control target
= control target key end

     0   :  { %vm86_vm0 = vcmask 1044480   ;;  %vm87_vm1 = vcmask 1045504   ;;  %v417_v1 = vmov 65535   ;;  %vm61_vm2 = vcmask 220160   ;;  %s527_s1 = inlined_call_operand.vmem [shape: bf16[27,128], index: 1, kind: input, shape index: {}]   ;;  %s528_s0 = inlined_call_operand.vmem [shape: f32[128,27], index: 0, kind: input, shape index: {}]   ;;  %s529_s2 = inlined_call_operand.vmem [shape: f32[1,128], index: 2, kind: input, shape index: {}]   ;;  %s530_s3 = inlined_call_operand.vmem [shape: bf16[128,128], index: 3, kind: output, shape index: {}]  }
   0x1   :  { %v415_v0 = vld [vmem:[%s527_s1 + $0x8] sm:$0x3f]   ;;  %v88_v2 = vsel %vm86_vm0, 4294967295, %v417_v1  ;;  %v15_v4 = vld [vmem:[%s528_s0] sm:$0xff]  ;;  %v17_v12 = vld [vmem:[%s528_s0 + $0x10] sm:$0xff] }
   0x2   :  { %v89_v3 = vsel %vm87_vm1, %v88_v2, 0  ;;  %v16_v5 = vld [vmem:[%s528_s0 + $0x8] sm:$0xff]  ;;  %v23_v6 = vld [vmem:[%s528_s0 + $0x40] sm:$0xff]  ;;  %v18_v13 = vld [vmem:[%s528_s0 + $0x18] sm:$0xff] }
   0x3   :  { %v91_v7 = vand.u32 %v415_v0, %v89_v3  ;;  %v416_v8 = vld [vmem:[%s527_s1] sm:$0xff]   ;;  %v24_v9 = vld [vmem:[%s528_s0 + $0x48] sm:$0xff]  ;;  %v31_v10 = vpack.c.bf16 %v16_v5, %v15_v4  ;;  %v25_v14 = vld [vmem:[%s528_s0 + $0x50] sm:$0xff]  ;;  %v32_v20 = vpack.c.bf16 %v18_v13, %v17_v12 }
   0x4   :  { %v35_v11 = vpack.c.bf16 %v24_v9, %v23_v6  ;;  %v26_v15 = vld [vmem:[%s528_s0 + $0x58] sm:$0xff]  ;;  %v19_v16 = vld [vmem:[%s528_s0 + $0x20] sm:$0xff]  ;;  %v20_v17 = vld [vmem:[%s528_s0 + $0x28] sm:$0xff] }
   0x5   :  { %390 = vmatprep.subr.bf16.mxu0 %v91_v7  ;;  %410 = vmatprep.subr.bf16.mxu1 %v91_v7  ;;  %v27_v18 = vld [vmem:[%s528_s0 + $0x60] sm:$0xff]  ;;  %v28_v19 = vld [vmem:[%s528_s0 + $0x68] sm:$0xff]  ;;  %v36_v21 = vpack.c.bf16 %v26_v15, %v25_v14  ;;  %v33_v22 = vpack.c.bf16 %v20_v17, %v19_v16  ;;  %v21_v24 = vld [vmem:[%s528_s0 + $0x30] sm:$0xff] }
   0x6   :  { %391 = vmatpush3.bf16.msra.mxu0 %v91_v7  ;;  %412 = vmatpush3.bf16.msra.mxu1 %v91_v7  ;;  %v37_v23 = vpack.c.bf16 %v28_v19, %v27_v18  ;;  %v22_v25 = vld [vmem:[%s528_s0 + $0x38] sm:$0xff]  ;;  %v29_v26 = vld [vmem:[%s528_s0 + $0x70] sm:$0xff]  ;;  %v290_v30 = vld [vmem:[%s529_s2] ss:$0 sm:$0xff] }
   0x7   :  { %392 = vmatprep.subr.bf16.mxu0 %v416_v8  ;;  %411 = vmatprep.subr.bf16.mxu1 %v416_v8  ;;  %v30_v27 = vld [vmem:[%s528_s0 + $0x78] sm:$0xff]  ;;  %v34_v28 = vpack.c.bf16 %v22_v25, %v21_v24 }
   0x8   :  { %394 = vmatprep.mubr.msk.bf16.mxu0 %vm61_vm2, %v31_v10  ;;  %402 = vmatprep.mubr.msk.bf16.mxu1 %vm61_vm2, %v35_v11  ;;  %v38_v29 = vpack.c.bf16 %v30_v27, %v29_v26 }
   0xa   :  { %393 = vmatpush3.bf16.msra.mxu0 %v416_v8  ;;  %413 = vmatpush3.bf16.msra.mxu1 %v416_v8 }
   0xd   :  { %395 = vmatmul.mubr.msk.bf16.vlgmr.msra.gmra.mxu0 %vm61_vm2, %v32_v20  ;;  %403 = vmatmul.mubr.msk.bf16.vlgmr.msra.gmra.mxu1 %vm61_vm2, %v36_v21 }
   0xe   :  { %398 = vmatprep.mubr.msk.bf16.mxu0 %vm61_vm2, %v33_v22  ;;  %406 = vmatprep.mubr.msk.bf16.mxu1 %vm61_vm2, %v37_v23 }
  0x15   :  { %399 = vmatmul.mubr.msk.bf16.gmra.mxu0 %vm61_vm2, %v34_v28  ;;  %407 = vmatmul.mubr.msk.bf16.gmra.mxu1 %vm61_vm2, %v38_v29 }
  0xcd   :  { %v396_v31 = vpop.f32.mrf.mxu0  ;;  %v404_v32 = vpop.f32.mrf.mxu1 }
  0xce   :  { %v136_v33 = vadd.f32 %v396_v31, %v290_v30  ;;  %v168_v34 = vadd.f32 %v404_v32, %v290_v30 }
  0xcf   :  { %v127_v35 = vpop.f32.mrf.mxu0  ;;  %v159_v36 = vpop.f32.mrf.mxu1 }
  0xd0   :  { %v128_v37 = vadd.f32 %v290_v30, %v127_v35  ;;  %v160_v38 = vadd.f32 %v290_v30, %v159_v36  ;;  %v192_v43 = vmax.f32 %v136_v33, 0.0  ;;  %v200_v44 = vmax.f32 %v168_v34, 0.0 }
  0xd1   :  { %v397_v39 = vpop.f32.mrf.mxu0  ;;  %v405_v40 = vpop.f32.mrf.mxu1 }
  0xd2   :  { %v139_v41 = vadd.f32 %v397_v39, %v290_v30  ;;  %v171_v42 = vadd.f32 %v405_v40, %v290_v30  ;;  %v190_v51 = vmax.f32 %v128_v37, 0.0  ;;  %v198_v52 = vmax.f32 %v160_v38, 0.0 }
  0xd3   :  { %v130_v45 = vpop.f32.mrf.mxu0  ;;  %v162_v46 = vpop.f32.mrf.mxu1 }
  0xd4   :  { %v193_v47 = vmax.f32 %v139_v41, 0.0  ;;  %v201_v48 = vmax.f32 %v171_v42, 0.0  ;;  %v131_v49 = vadd.f32 %v290_v30, %v130_v45  ;;  %v163_v50 = vadd.f32 %v290_v30, %v162_v46 }
  0xd5   :  { %v400_v53 = vpop.f32.mrf.mxu0  ;;  %v408_v54 = vpop.f32.mrf.mxu1 }
  0xd6   :  { %v341_v55 = vpack.c.bf16 %v193_v47, %v192_v43  ;;  %v361_v56 = vpack.c.bf16 %v201_v48, %v200_v44  ;;  %v191_v57 = vmax.f32 %v131_v49, 0.0  ;;  %v199_v58 = vmax.f32 %v163_v50, 0.0 }
  0xd7   :  { %v152_v59 = vadd.f32 %v400_v53, %v290_v30  ;;  %v184_v60 = vadd.f32 %v408_v54, %v290_v30  ;;  %v143_v61 = vpop.f32.mrf.mxu0  ;;  %v175_v62 = vpop.f32.mrf.mxu1 }
  0xd8   :  { %373 = vst [vmem:[%s530_s3 + $0x8] sm:$0xff] %v341_v55   ;;  %377 = vst [vmem:[%s530_s3 + $0x28] sm:$0xff] %v361_v56   ;;  %v336_v63 = vpack.c.bf16 %v191_v57, %v190_v51  ;;  %v356_v0 = vpack.c.bf16 %v199_v58, %v198_v52  ;;  %v144_v1 = vadd.f32 %v290_v30, %v143_v61 }
  0xd9   :  { %v176_v2 = vadd.f32 %v290_v30, %v175_v62  ;;  %v401_v3 = vpop.f32.mrf.mxu0  ;;  %v409_v4 = vpop.f32.mrf.mxu1  ;;  %v196_v7 = vmax.f32 %v152_v59, 0.0  ;;  %v204_v8 = vmax.f32 %v184_v60, 0.0 }
  0xda   :  { %337 = vst [vmem:[%s530_s3] sm:$0xff] %v336_v63   ;;  %376 = vst [vmem:[%s530_s3 + $0x20] sm:$0xff] %v356_v0   ;;  %v155_v5 = vadd.f32 %v401_v3, %v290_v30  ;;  %v187_v6 = vadd.f32 %v409_v4, %v290_v30  ;;  %v194_v15 = vmax.f32 %v144_v1, 0.0 }
  0xdb   :  { %v146_v9 = vpop.f32.mrf.mxu0  ;;  %v178_v10 = vpop.f32.mrf.mxu1  ;;  %v202_v16 = vmax.f32 %v176_v2, 0.0 }
  0xdc   :  { %v197_v11 = vmax.f32 %v155_v5, 0.0  ;;  %v205_v12 = vmax.f32 %v187_v6, 0.0  ;;  %v147_v13 = vadd.f32 %v290_v30, %v146_v9  ;;  %v179_v14 = vadd.f32 %v290_v30, %v178_v10 }
  0xde   :  { %v351_v17 = vpack.c.bf16 %v197_v11, %v196_v7  ;;  %v371_v18 = vpack.c.bf16 %v205_v12, %v204_v8  ;;  %v195_v19 = vmax.f32 %v147_v13, 0.0  ;;  %v203_v20 = vmax.f32 %v179_v14, 0.0 }
  0xe0   :  { %375 = vst [vmem:[%s530_s3 + $0x18] sm:$0xff] %v351_v17   ;;  %379 = vst [vmem:[%s530_s3 + $0x38] sm:$0xff] %v371_v18   ;;  %v346_v21 = vpack.c.bf16 %v195_v19, %v194_v15  ;;  %v366_v22 = vpack.c.bf16 %v203_v20, %v202_v16 }
  0xe2   :  { %374 = vst [vmem:[%s530_s3 + $0x10] sm:$0xff] %v346_v21   ;;  %378 = vst [vmem:[%s530_s3 + $0x30] sm:$0xff] %v366_v22  }

// kernel: segmenter_forward.10
= control target key start
LH: loop header
LB: loop body
LE: loop exit
PB: predicated region body
PF: predicated region fallthrough
CT: control target
= control target key end

     0   :  { %v240_v0 = vmov 0.0   ;;  %vm241_vm0 = vmmov 0   ;;  %vm45_vm1 = vcmask 1041409   ;;  %s298_s1 = inlined_call_operand.vmem [shape: bf16[128,128], index: 1, kind: input, shape index: {}]   ;;  %s299_s0 = inlined_call_operand.vmem [shape: bf16[2,16,128], index: 0, kind: input, shape index: {}]   ;;  %s300_s2 = inlined_call_operand.vmem [shape: f32[1,128], index: 2, kind: input, shape index: {}]   ;;  %s301_s3 = inlined_call_operand.vmem [shape: f32[2,128], index: 3, kind: output, shape index: {}]  }
   0x1   :  { %206 = vmatprep.subr.bf16.mxu0 %v240_v0  ;;  %19 = vst [vmem:[#allocation2] sm:$0x3] %v240_v0  ;;  %v228_v1 = vld [vmem:[%s298_s1 + $0x38] sm:$0xff]   ;;  %222 = vmatprep.mubr.msk.bf16.mxu0 %vm241_vm0, %v240_v0  ;;  %v229_v2 = vld [vmem:[%s298_s1 + $0x30] sm:$0xff]   ;;  %v230_v3 = vld [vmem:[%s298_s1 + $0x28] sm:$0xff]  }
   0x2   :  { %207 = vmatpush3.bf16.msra.mxu0 %v228_v1  ;;  %v189_v4 = vld [vmem:[%s299_s0] sm:$0xff]   ;;  %v196_v5 = vld [vmem:[%s299_s0 + $0x8] sm:$0xff]   ;;  %v232_v15 = vld [vmem:[%s298_s1 + $0x18] sm:$0xff]  }
   0x3   :  { %208 = vmatprep.subr.bf16.mxu0 %v240_v0  ;;  %v190_v6 = vunpack.c.l.bf16 %v189_v4  ;;  %v191_v7 = vunpack.c.h.bf16 %v189_v4  ;;  %v194_v8 = vunpack.c.l.bf16 %v196_v5  ;;  %v195_v9 = vunpack.c.h.bf16 %v196_v5  ;;  %v231_v10 = vld [vmem:[%s298_s1 + $0x20] sm:$0xff]   ;;  %v233_v20 = vld [vmem:[%s298_s1 + $0x10] sm:$0xff]   ;;  %v234_v25 = vld [vmem:[%s298_s1 + $0x8] sm:$0xff]  }
   0x4   :  { %v235_v30 = vld [vmem:[%s298_s1] sm:$0xff]  }
   0x5   :  { %v29_v11 = vadd.f32 %v191_v7, %v190_v6  ;;  %v36_v12 = vadd.f32 %v195_v9, %v194_v8  ;;  %v178_v35 = vld [vmem:[%s300_s2] ss:$0 sm:$0xff] }
   0x6   :  { %209 = vmatpush3.bf16.msra.mxu0 %v229_v2 }
   0x7   :  { %210 = vmatprep.subr.bf16.mxu0 %v240_v0  ;;  %v30_v13 = vrot.slane %v29_v11, 4  ;;  %v37_v14 = vrot.slane %v36_v12, 4 }
   0x8   :  { %v20_v26 = vld [vmem:[#allocation2] sm:$0x3] }
   0x9   :  { %v31_v16 = vadd.f32 %v30_v13, %v29_v11  ;;  %v38_v17 = vadd.f32 %v37_v14, %v36_v12 }
   0xa   :  { %211 = vmatpush3.bf16.msra.mxu0 %v230_v3 }
   0xb   :  { %212 = vmatprep.subr.bf16.mxu0 %v240_v0  ;;  %v32_v18 = vrot.slane %v31_v16, 2  ;;  %v39_v19 = vrot.slane %v38_v17, 2 }
   0xd   :  { %v33_v21 = vadd.f32 %v32_v18, %v31_v16  ;;  %v40_v22 = vadd.f32 %v39_v19, %v38_v17 }
   0xe   :  { %213 = vmatpush3.bf16.msra.mxu0 %v231_v10 }
   0xf   :  { %214 = vmatprep.subr.bf16.mxu0 %v240_v0  ;;  %v34_v23 = vrot.slane %v33_v21, 1  ;;  %v41_v24 = vrot.slane %v40_v22, 1 }
  0x11   :  { %v35_v27 = vadd.f32 %v34_v23, %v33_v21  ;;  %v42_v28 = vadd.f32 %v41_v24, %v40_v22 }
  0x12   :  { %215 = vmatpush3.bf16.msra.mxu0 %v232_v15 }
  0x13   :  { %216 = vmatprep.subr.bf16.mxu0 %v240_v0  ;;  %v46_v29 = vsel %vm45_vm1, %v42_v28, %v35_v27 }
  0x14   :  { %v48_v31 = vadd.f32 %v46_v29, %v20_v26 }
  0x16   :  { %217 = vmatpush3.bf16.msra.mxu0 %v233_v20  ;;  %49 = vst [vmem:[#allocation2] sm:$0x3] %v48_v31 }
  0x17   :  { %218 = vmatprep.subr.bf16.mxu0 %v240_v0 }
  0x1a   :  { %219 = vmatpush3.bf16.msra.mxu0 %v234_v25 }
  0x1b   :  { %220 = vmatprep.subr.bf16.mxu0 %v240_v0 }
  0x1d   :  { %v53_v32 = vld [vmem:[#allocation2] sm:$0x3] }
  0x1e   :  { %221 = vmatpush3.bf16.msra.mxu0 %v235_v30  ;;  %v54_v33 = vmul.f32 0.0625, %v53_v32 }
  0x20   :  { %v55_v34 = vpack.c.bf16 %v54_v33, %v54_v33 }
  0x22   :  { %223 = vmatmul.mubr.bf16.vlgmr.msra.gmra.mxu0 %v55_v34 }
  0xe2   :  { %v161_v36 = vpop.f32.mrf.mxu0 }
  0xe3   :  { %v162_v37 = vadd.f32 %v178_v35, %v161_v36 }
  0xe4   :  { %v224_v38 = vpop.f32.mrf.mxu0 }
  0xe5   :  { %v187_v39 = vmul.f32 -1.442695, %v162_v37 }
  0xe6   :  { %v164_v40 = vpop.f32.mrf.mxu0 }
  0xe7   :  { %236 = vpow2.f32 %v187_v39 }
  0xe8   :  { %v225_v41 = vpop.f32.mrf.mxu0 }
  0xf4   :  { %v237_v42 = vpop.eup %236 }
  0xf5   :  { %v170_v43 = vadd.f32 1.0, %v237_v42 }
  0xf7   :  { %238 = vrcp.f32 %v170_v43 }
 0x104   :  { %v239_v44 = vpop.eup %238 }
 0x105   :  { %173 = vst [vmem:[%s301_s3] sm:$0x3] %v239_v44 }

// kernel: segmenter_forward.12
= control target key start
LH: loop header
LB: loop body
LE: loop exit
PB: predicated region body
PF: predicated region fallthrough
CT: control target
= control target key end

     0   :  { %v20_v0 = vlaneseq  ;;  %v310_v2 = vmov 1983009808   ;;  %v311_v5 = vmov 0   ;;  %vm37_vm0 = vcmask 1041408   ;;  %s356_s1 = inlined_call_operand.vmem [shape: bf16[2,4,512], index: 1, kind: input, shape index: {}]   ;;  %s357_s0 = inlined_call_operand.vmem [shape: f32[8,4], index: 0, kind: input, shape index: {}]   ;;  %s358_s2 = inlined_call_operand.vmem [shape: bf16[2,8,512], index: 2, kind: output, shape index: {}]  }
   0x1   :  { %v14_v1 = vld [vmem:[%s356_s1] sm:$0xff]  ;;  %v18_v3 = vunpack.c.l.s4 %v310_v2  ;;  %v293_v4 = vld [vmem:[%s356_s1 + $0x8] sm:$0xff]  ;;  %82 = vmatprep.mubr.bf16.mxu0 %v311_v5  ;;  %123 = vmatprep.mubr.bf16.mxu1 %v311_v5  ;;  %vm33_vm1 = vcmask 31744  }
   0x2   :  { %v21_v6 = vshrl.u32 %v20_v0, 7  ;;  %v153_v8 = vcombine.high %v293_v4, %v293_v4  ;;  %v16_v9 = vcombine.high %v14_v1, %v14_v1  ;;  %v12_v15 = vld [vmem:[%s357_s0] sm:$0xff] }
   0x3   :  { %v19_v7 = vunpack.c.0.s8 %v18_v3  ;;  %v13_v22 = vpack.c.bf16 %v12_v15, %v12_v15 }
   0x5   :  { %v22_v10 = vsub.s32 %v19_v7, %v21_v6 }
   0x7   :  { %v23_v11 = vrot.slane %v14_v1, %v22_v10  ;;  %v160_v12 = vrot.slane %v293_v4, %v22_v10  ;;  %v30_v13 = vrot.slane %v16_v9, %v22_v10  ;;  %v167_v14 = vrot.slane %v153_v8, %v22_v10 }
   0x9   :  { %v31_v16 = vcombine.high %v23_v11, %v23_v11  ;;  %v32_v17 = vcombine.high %v30_v13, %v30_v13  ;;  %v39_v18 = vsel %vm37_vm0, %v23_v11, 0  ;;  %v45_v19 = vsel %vm37_vm0, %v30_v13, 0 }
   0xa   :  { %v168_v20 = vcombine.high %v160_v12, %v160_v12  ;;  %v169_v21 = vcombine.high %v167_v14, %v167_v14  ;;  %v171_v23 = vsel %vm37_vm0, %v160_v12, 0  ;;  %v177_v24 = vsel %vm37_vm0, %v167_v14, 0 }
   0xb   :  { %287 = vmatprep.subr.msk.bf16.mxu0 %vm37_vm0, %v31_v16  ;;  %289 = vmatprep.subr.msk.bf16.mxu1 %vm37_vm0, %v32_v17 }
   0xc   :  { %65 = vmatpush1.bf16.msra.mxu0 %v39_v18  ;;  %106 = vmatpush1.bf16.msra.mxu1 %v45_v19 }
   0xd   :  { %294 = vmatprep.subr.msk.bf16.mxu0 %vm37_vm0, %v168_v20  ;;  %296 = vmatprep.subr.msk.bf16.mxu1 %vm37_vm0, %v169_v21 }
   0xf   :  { %288 = vmatmul.mubr.msk.bf16.vlgmr.msra.gmra.mxu0 %vm33_vm1, %v13_v22  ;;  %290 = vmatmul.mubr.msk.bf16.vlgmr.msra.gmra.mxu1 %vm33_vm1, %v13_v22 }
  0x10   :  { %197 = vmatpush1.bf16.msra.mxu0 %v171_v23  ;;  %238 = vmatpush1.bf16.msra.mxu1 %v177_v24 }
  0x11   :  { %214 = vmatprep.mubr.bf16.mxu0 %v311_v5  ;;  %255 = vmatprep.mubr.bf16.mxu1 %v311_v5 }
  0x17   :  { %295 = vmatmul.mubr.msk.bf16.vlgmr.msra.gmra.mxu0 %vm33_vm1, %v13_v22  ;;  %297 = vmatmul.mubr.msk.bf16.vlgmr.msra.gmra.mxu1 %vm33_vm1, %v13_v22 }
  0xcf   :  { %v84_v25 = vpop.f32.mrf.mxu0  ;;  %v125_v26 = vpop.f32.mrf.mxu1 }
  0xd1   :  { %v86_v27 = vpop.f32.mrf.mxu0  ;;  %v127_v28 = vpop.f32.mrf.mxu1 }
  0xd2   :  { %v302_v29 = vpack.c.bf16 %v86_v27, %v84_v25  ;;  %v303_v30 = vpack.c.bf16 %v127_v28, %v125_v26 }
  0xd3   :  { %v88_v31 = vpop.f32.mrf.mxu0  ;;  %v129_v32 = vpop.f32.mrf.mxu1 }
  0xd4   :  { %148 = vst [vmem:[%s358_s2] sm:$0xff] %v302_v29  ;;  %149 = vst [vmem:[%s358_s2 + $0x8] sm:$0xff] %v303_v30 }
  0xd5   :  { %v89_v33 = vpop.f32.mrf.mxu0  ;;  %v130_v34 = vpop.f32.mrf.mxu1 }
  0xd7   :  { %v216_v35 = vpop.f32.mrf.mxu0  ;;  %v257_v36 = vpop.f32.mrf.mxu1 }
  0xd9   :  { %v218_v37 = vpop.f32.mrf.mxu0  ;;  %v259_v38 = vpop.f32.mrf.mxu1 }
  0xda   :  { %v304_v39 = vpack.c.bf16 %v218_v37, %v216_v35  ;;  %v305_v40 = vpack.c.bf16 %v259_v38, %v257_v36 }
  0xdb   :  { %v220_v41 = vpop.f32.mrf.mxu0  ;;  %v261_v42 = vpop.f32.mrf.mxu1 }
  0xdc   :  { %300 = vst [vmem:[%s358_s2 + $0x10] sm:$0xff] %v304_v39  ;;  %301 = vst [vmem:[%s358_s2 + $0x18] sm:$0xff] %v305_v40 }
  0xdd   :  { %v221_v43 = vpop.f32.mrf.mxu0  ;;  %v262_v44 = vpop.f32.mrf.mxu1 }

// kernel: segmenter_forward.11
= control target key start
LH: loop header
LB: loop body
LE: loop exit
PB: predicated region body
PF: predicated region fallthrough
CT: control target
= control target key end

     0   :  { %s860_s21 = smov 0   ;;  %s862_s22 = smov 0   ;;  %s961_s0 = inlined_call_operand.vmem [shape: bf16[2,16,128], index: 0, kind: input, shape index: {}]   ;;  %s962_s1 = inlined_call_operand.vmem [shape: bf16[128,128], index: 1, kind: input, shape index: {}]   ;;  %s963_s2 = inlined_call_operand.vmem [shape: f32[1,128], index: 2, kind: input, shape index: {}]   ;;  %s964_s3 = inlined_call_operand.vmem [shape: f32[2,1,128], index: 3, kind: input, shape index: {}]   ;;  %s965_s4 = inlined_call_operand.vmem [shape: bf16[128,128], index: 4, kind: input, shape index: {}]   ;;  %s966_s5 = inlined_call_operand.vmem [shape: f32[1,128], index: 5, kind: input, shape index: {}]   ;;  %s967_s6 = inlined_call_operand.vmem [shape: bf16[2,16,128], index: 6, kind: output, shape index: {}]  }
   0x1   :  { %s864_s23 = smov 0  }
   0x2 LB: > { %s28_s24 = sadd.s32 1, %s817_s22  ;;  %p660_p0 = scmp.ge.s32.totalorder %s821_s23, 1  ;;  %s821_s23 = sphi %s864_s23, %s16_s23   ;;  %s817_s22 = sphi %s862_s22, %s969_s22   ;;  %s813_s21 = sphi %s860_s21, %s968_s21  }
   0x3   : > { %p30_p1 = scmp.ge.s32.totalorder %s28_s24, 2  ;;  %p241_p2 = scmp.lt.s32.totalorder %s821_s23, 3 }
   0x5   : > { %s971_s24 = smov (%p30_p1, %s28_s24), 0  ;;  %p242_p3 = pnand %p660_p0, %p241_p2 }
   0x6   : > { %p283_p4 = scmp.lt.s32.totalorder (!%p242_p3), %s813_s21, 1 }
   0x7   : > { %245 = sbr.rel (%p242_p3) target bundleno = 452 (0x1c4), region = 44 }
   0xc   : > { %v782_v0 = vld [vmem:[%s962_s1 + $0x38] sm:$0xff]   ;;  %v823_v1 = vmov 0.0   ;;  %v783_v2 = vld [vmem:[%s962_s1 + $0x30] sm:$0xff]   ;;  %vm824_vm0 = vmmov 0   ;;  %s973_s21 = smov (!%p283_p4, %s813_s21), 1  ;;  %v784_v3 = vld [vmem:[%s962_s1 + $0x28] sm:$0xff]  }
   0xd   : > { %716 = vmatprep.subr.bf16.mxu0 %v823_v1  ;;  %736 = vmatprep.subr.bf16.mxu1 %v823_v1  ;;  %s689_s7 = sshll.u32 %s973_s21, 3  ;;  %v791_v4 = vld [vmem:[%s965_s4 + $0x38] sm:$0xff]   ;;  %v785_v5 = vld [vmem:[%s962_s1 + $0x20] sm:$0xff]   ;;  %v792_v6 = vld [vmem:[%s965_s4 + $0x30] sm:$0xff]   ;;  %s294_s26 = scalar_lea.vmem %s964_s3, %s973_s21 }
   0xe   : > { %717 = vmatpush3.bf16.msra.mxu0 %v782_v0  ;;  %732 = vmatprep.mubr.msk.bf16.mxu0 %vm824_vm0, %v823_v1  ;;  %s895_s10 = scalar_lea.vmem %s961_s0, %s689_s7  ;;  %v786_v7 = vld [vmem:[%s962_s1 + $0x18] sm:$0xff]   ;;  %v793_v8 = vld [vmem:[%s965_s4 + $0x28] sm:$0xff]   ;;  %v787_v9 = vld [vmem:[%s962_s1 + $0x10] sm:$0xff]   ;;  %s303_s8 = scalar_lea.vmem %s967_s6, %s689_s7 }
   0xf   : > { %718 = vmatprep.subr.bf16.mxu0 %v823_v1  ;;  %752 = vmatprep.mubr.msk.bf16.mxu1 %vm824_vm0, %v823_v1  ;;  %v794_v10 = vld [vmem:[%s965_s4 + $0x20] sm:$0xff]   ;;  %v788_v11 = vld [vmem:[%s962_s1 + $0x8] sm:$0xff]   ;;  %v795_v12 = vld [vmem:[%s965_s4 + $0x18] sm:$0xff]  }
  0x10   : > { %737 = vmatpush3.bf16.msra.mxu1 %v791_v4  ;;  %v789_v13 = vld [vmem:[%s962_s1] sm:$0xff]   ;;  %v796_v15 = vld [vmem:[%s965_s4 + $0x10] sm:$0xff]   ;;  %v797_v16 = vld [vmem:[%s965_s4 + $0x8] sm:$0xff]  }
  0x11   : > { %738 = vmatprep.subr.bf16.mxu1 %v823_v1  ;;  %v790_v14 = vld [vmem:[%s895_s10] sm:$0xff]  }
  0x12   : > { %719 = vmatpush3.bf16.msra.mxu0 %v783_v2  ;;  %v798_v17 = vld [vmem:[%s965_s4] sm:$0xff]  }
  0x13   : > { %720 = vmatprep.subr.bf16.mxu0 %v823_v1  ;;  %v665_v18 = vld [vmem:[%s963_s2] ss:$0 sm:$0xff] }
  0x14   : > { %739 = vmatpush3.bf16.msra.mxu1 %v792_v6  ;;  %v675_v25 = vld [vmem:[%s294_s26] ss:$0 sm:$0xff] }
  0x15   : > { %740 = vmatprep.subr.bf16.mxu1 %v823_v1  ;;  %v676_v32 = vld [vmem:[%s966_s5] ss:$0 sm:$0xff] }
  0x16   : > { %721 = vmatpush3.bf16.msra.mxu0 %v784_v3 }
  0x17   : > { %722 = vmatprep.subr.bf16.mxu0 %v823_v1 }
  0x18   : > { %741 = vmatpush3.bf16.msra.mxu1 %v793_v8 }
  0x19   : > { %742 = vmatprep.subr.bf16.mxu1 %v823_v1 }
  0x1a   : > { %723 = vmatpush3.bf16.msra.mxu0 %v785_v5 }
  0x1b   : > { %724 = vmatprep.subr.bf16.mxu0 %v823_v1 }
  0x1c   : > { %743 = vmatpush3.bf16.msra.mxu1 %v794_v10 }
  0x1d   : > { %744 = vmatprep.subr.bf16.mxu1 %v823_v1 }
  0x1e   : > { %725 = vmatpush3.bf16.msra.mxu0 %v786_v7 }
  0x1f   : > { %726 = vmatprep.subr.bf16.mxu0 %v823_v1 }
  0x20   : > { %745 = vmatpush3.bf16.msra.mxu1 %v795_v12 }
  0x21   : > { %746 = vmatprep.subr.bf16.mxu1 %v823_v1 }
  0x22   : > { %727 = vmatpush3.bf16.msra.mxu0 %v787_v9 }
  0x23   : > { %728 = vmatprep.subr.bf16.mxu0 %v823_v1 }
  0x24   : > { %747 = vmatpush3.bf16.msra.mxu1 %v796_v15 }
  0x25   : > { %748 = vmatprep.subr.bf16.mxu1 %v823_v1 }
  0x26   : > { %729 = vmatpush3.bf16.msra.mxu0 %v788_v11 }
  0x27   : > { %730 = vmatprep.subr.bf16.mxu0 %v823_v1 }
  0x28   : > { %749 = vmatpush3.bf16.msra.mxu1 %v797_v16 }
  0x29   : > { %750 = vmatprep.subr.bf16.mxu1 %v823_v1 }
  0x2a   : > { %731 = vmatpush3.bf16.msra.mxu0 %v789_v13 }
  0x2c   : > { %751 = vmatpush3.bf16.msra.mxu1 %v798_v17 }
  0x2d   : > { %733 = vmatmul.mubr.bf16.vlgmr.msra.gmra.mxu0 %v790_v14 }
  0xed   : > { %v419_v19 = vpop.f32.mrf.mxu0 }
  0xee   : > { %v420_v20 = vadd.f32 %v665_v18, %v419_v19 }
  0xef   : > { %v734_v21 = vpop.f32.mrf.mxu0 }
  0xf0   : > { %v426_v23 = vmax.f32 %v420_v20, 0.0 }
  0xf1   : > { %v422_v22 = vpop.f32.mrf.mxu0 }
  0xf2   : > { %v423_v24 = vadd.f32 %v665_v18, %v422_v22  ;;  %v435_v28 = vmul.f32 %v675_v25, %v426_v23 }
  0xf3   : > { %v735_v26 = vpop.f32.mrf.mxu0 }
  0xf4   : > { %v427_v27 = vmax.f32 %v423_v24, 0.0 }
  0xf6   : > { %v436_v29 = vmul.f32 %v675_v25, %v427_v27 }
  0xf8   : > { %v437_v30 = vpack.c.bf16 %v436_v29, %v435_v28 }
  0xfa   : > { %753 = vmatmul.mubr.bf16.vlgmr.msra.gmra.mxu1 %v437_v30 }
 0x1ba   : > { %v543_v31 = vpop.f32.mrf.mxu1 }
 0x1bb   : > { %v544_v35 = vadd.f32 %v676_v32, %v543_v31 }
 0x1bc   : > { %v754_v33 = vpop.f32.mrf.mxu1 }
 0x1be   : > { %v546_v34 = vpop.f32.mrf.mxu1 }
 0x1bf   : > { %v547_v36 = vadd.f32 %v676_v32, %v546_v34 }
 0x1c0   : > { %v755_v37 = vpop.f32.mrf.mxu1 }
 0x1c1   : > { %v696_v38 = vpack.c.bf16 %v547_v36, %v544_v35 }
 0x1c3   : > { %697 = vst [vmem:[%s303_s8] sm:$0xff] %v696_v38  }
 0x1c4 PF: > { %s16_s23 = sadd.s32 1, %s821_s23   ;;  %s968_s21 = smov %s817_s22 }
 0x1c5   : > { %p13_p5 = scmp.ge.s32.totalorder %s16_s23, 4   ;;  %s969_s22 = smov %s971_s24 }
 0x1c7   :  { %15 = sbr.rel (!%p13_p5) target bundleno = 2 (0x2), region = 77 }

// kernel: segmenter_forward.9
= control target key start
LH: loop header
LB: loop body
LE: loop exit
PB: predicated region body
PF: predicated region fallthrough
CT: control target
= control target key end

     0   :  { %s1632_s1 = inlined_call_operand.vmem [shape: bf16[1152,128], index: 1, kind: input, shape index: {}]   ;;  %s1633_s0 = inlined_call_operand.vmem [shape: bf16[32,1152], index: 0, kind: input, shape index: {}]   ;;  %s1634_s2 = inlined_call_operand.vmem [shape: f32[1,128], index: 2, kind: input, shape index: {}]   ;;  %s1635_s3 = inlined_call_operand.vmem [shape: bf16[32,128], index: 3, kind: output, shape index: {}]  }
   0x1   :  { %v1235_v0 = vld [vmem:[%s1632_s1 + $0x78] sm:$0xff]   ;;  %v1239_v4 = vld [vmem:[%s1632_s1 + $0x70] sm:$0xff]   ;;  %v1243_v8 = vld [vmem:[%s1632_s1 + $0x68] sm:$0xff]  }
   0x2   :  { %v1236_v1 = vld [vmem:[%s1632_s1 + $0x38] sm:$0xff]   ;;  %1093 = vmatprep.subr.bf16.mxu0 %v1235_v0  ;;  %v1240_v5 = vld [vmem:[%s1632_s1 + $0x30] sm:$0xff]   ;;  %v1244_v9 = vld [vmem:[%s1632_s1 + $0x28] sm:$0xff]  }
   0x3   :  { %v1237_v2 = vld [vmem:[%s1632_s1 + $0xf8] sm:$0xff]   ;;  %1094 = vmatpush3.bf16.msra.mxu0 %v1236_v1  ;;  %v1241_v6 = vld [vmem:[%s1632_s1 + $0xf0] sm:$0xff]   ;;  %v1245_v10 = vld [vmem:[%s1632_s1 + $0xe8] sm:$0xff]  }
   0x4   :  { %v1238_v3 = vld [vmem:[%s1632_s1 + $0xb8] sm:$0xff]   ;;  %1121 = vmatprep.subr.bf16.mxu1 %v1237_v2  ;;  %1095 = vmatprep.subr.bf16.mxu0 %v1239_v4  ;;  %v1242_v7 = vld [vmem:[%s1632_s1 + $0xb0] sm:$0xff]   ;;  %v1246_v11 = vld [vmem:[%s1632_s1 + $0xa8] sm:$0xff]  }
   0x5   :  { %1122 = vmatpush3.bf16.msra.mxu1 %v1238_v3  ;;  %v1247_v12 = vld [vmem:[%s1632_s1 + $0x60] sm:$0xff]   ;;  %v1251_v16 = vld [vmem:[%s1632_s1 + $0x58] sm:$0xff]   ;;  %v1255_v20 = vld [vmem:[%s1632_s1 + $0x50] sm:$0xff]  }
   0x6   :  { %1123 = vmatprep.subr.bf16.mxu1 %v1241_v6  ;;  %v1248_v13 = vld [vmem:[%s1632_s1 + $0x20] sm:$0xff]   ;;  %v1252_v17 = vld [vmem:[%s1632_s1 + $0x18] sm:$0xff]   ;;  %v1256_v21 = vld [vmem:[%s1632_s1 + $0x10] sm:$0xff]  }
   0x7   :  { %1096 = vmatpush3.bf16.msra.mxu0 %v1240_v5  ;;  %v1249_v14 = vld [vmem:[%s1632_s1 + $0xe0] sm:$0xff]   ;;  %v1253_v18 = vld [vmem:[%s1632_s1 + $0xd8] sm:$0xff]   ;;  %v1257_v22 = vld [vmem:[%s1632_s1 + $0xd0] sm:$0xff]  }
   0x8   :  { %1097 = vmatprep.subr.bf16.mxu0 %v1243_v8  ;;  %v1250_v15 = vld [vmem:[%s1632_s1 + $0xa0] sm:$0xff]   ;;  %v1254_v19 = vld [vmem:[%s1632_s1 + $0x98] sm:$0xff]   ;;  %v1258_v23 = vld [vmem:[%s1632_s1 + $0x90] sm:$0xff]  }
   0x9   :  { %1124 = vmatpush3.bf16.msra.mxu1 %v1242_v7  ;;  %v1259_v24 = vld [vmem:[%s1632_s1 + $0x48] sm:$0xff]   ;;  %v1263_v28 = vld [vmem:[%s1632_s1 + $0x40] sm:$0xff]   ;;  %v1270_v34 = vld [vmem:[%s1632_s1 + $0x178] sm:$0xff]  }
   0xa   :  { %1125 = vmatprep.subr.bf16.mxu1 %v1245_v10  ;;  %v1260_v25 = vld [vmem:[%s1632_s1 + $0x8] sm:$0xff]   ;;  %v1264_v29 = vld [vmem:[%s1632_s1] sm:$0xff]   ;;  %v1274_v37 = vld [vmem:[%s1632_s1 + $0x138] sm:$0xff]  }
   0xb   :  { %1098 = vmatpush3.bf16.msra.mxu0 %v1244_v9  ;;  %v1261_v26 = vld [vmem:[%s1632_s1 + $0xc8] sm:$0xff]   ;;  %v1265_v30 = vld [vmem:[%s1632_s1 + $0xc0] sm:$0xff]   ;;  %v1275_v38 = vld [vmem:[%s1632_s1 + $0x1f8] sm:$0xff]  }
   0xc   :  { %1099 = vmatprep.subr.bf16.mxu0 %v1247_v12  ;;  %v1262_v27 = vld [vmem:[%s1632_s1 + $0x88] sm:$0xff]   ;;  %v1266_v31 = vld [vmem:[%s1633_s0] ss:$36 sps:$4 sm:$0xff]   ;;  %v1276_v39 = vld [vmem:[%s1632_s1 + $0x1b8] sm:$0xff]  }
   0xd   :  { %1126 = vmatpush3.bf16.msra.mxu1 %v1246_v11  ;;  %v1268_v32 = vld [vmem:[%s1633_s0 + $0x4] ss:$36 sps:$4 sm:$0xff]   ;;  %v1273_v36 = vld [vmem:[%s1633_s0 + $0xc] ss:$36 sps:$4 sm:$0xff]   ;;  %v1289_v52 = vld [vmem:[%s1632_s1 + $0x158] sm:$0xff]  }
   0xe   :  { %1127 = vmatprep.subr.bf16.mxu1 %v1249_v14  ;;  %v1269_v33 = vld [vmem:[%s1632_s1 + $0x80] sm:$0xff]   ;;  %742 = vmatprep.mubr.bf16.mxu0 %v1268_v32  ;;  %v1271_v35 = vld [vmem:[%s1633_s0 + $0x8] ss:$36 sps:$4 sm:$0xff]   ;;  %v1277_v40 = vld [vmem:[%s1632_s1 + $0x170] sm:$0xff]  }
   0xf   :  { %1100 = vmatpush3.bf16.msra.mxu0 %v1248_v13  ;;  %791 = vmatprep.mubr.bf16.mxu1 %v1273_v36  ;;  %v1278_v41 = vld [vmem:[%s1632_s1 + $0x130] sm:$0xff]   ;;  %v1281_v44 = vld [vmem:[%s1632_s1 + $0x168] sm:$0xff]   ;;  %v1285_v48 = vld [vmem:[%s1632_s1 + $0x160] sm:$0xff]  }
  0x10   :  { %1101 = vmatprep.subr.bf16.mxu0 %v1251_v16  ;;  %v1279_v42 = vld [vmem:[%s1632_s1 + $0x1f0] sm:$0xff]   ;;  %v1282_v45 = vld [vmem:[%s1632_s1 + $0x128] sm:$0xff]   ;;  %v1286_v49 = vld [vmem:[%s1632_s1 + $0x120] sm:$0xff]  }
  0x11   :  { %1128 = vmatpush3.bf16.msra.mxu1 %v1250_v15  ;;  %v1280_v43 = vld [vmem:[%s1632_s1 + $0x1b0] sm:$0xff]   ;;  %v1283_v46 = vld [vmem:[%s1632_s1 + $0x1e8] sm:$0xff]   ;;  %v1287_v50 = vld [vmem:[%s1632_s1 + $0x1e0] sm:$0xff]  }
  0x12   :  { %1129 = vmatprep.subr.bf16.mxu1 %v1253_v18  ;;  %v1284_v47 = vld [vmem:[%s1632_s1 + $0x1a8] sm:$0xff]   ;;  %v1288_v51 = vld [vmem:[%s1632_s1 + $0x1a0] sm:$0xff]   ;;  %v1290_v53 = vld [vmem:[%s1632_s1 + $0x118] sm:$0xff]  }
  0x13   :  { %1102 = vmatpush3.bf16.msra.mxu0 %v1252_v17  ;;  %v1291_v54 = vld [vmem:[%s1633_s0 + $0x4c] ss:$36 sps:$4 sm:$0xff]   ;;  %v1293_v55 = vld [vmem:[%s1632_s1 + $0x1d8] sm:$0xff]   ;;  %v1307_v4 = vld [vmem:[%s1632_s1 + $0x140] sm:$0xff]  }
  0x14   :  { %1103 = vmatprep.subr.bf16.mxu0 %v1255_v20  ;;  %v1294_v56 = vld [vmem:[%s1633_s0 + $0x48] ss:$36 sps:$4 sm:$0xff]   ;;  %v1295_v57 = vld [vmem:[%s1632_s1 + $0x198] sm:$0xff]   ;;  %v1298_v59 = vld [vmem:[%s1632_s1 + $0x150] sm:$0xff]  }
  0x15   :  { %1130 = vmatpush3.bf16.msra.mxu1 %v1254_v19  ;;  %v1296_v58 = vld [vmem:[%s1633_s0 + $0x54] ss:$36 sps:$4 sm:$0xff]   ;;  %v1303_v0 = vld [vmem:[%s1632_s1 + $0x148] sm:$0xff]   ;;  %v1308_v5 = vld [vmem:[%s1632_s1 + $0x100] sm:$0xff]  }
  0x16   :  { %1131 = vmatprep.subr.bf16.mxu1 %v1257_v22  ;;  %v1299_v60 = vld [vmem:[%s1633_s0 + $0x50] ss:$36 sps:$4 sm:$0xff]   ;;  %v1304_v1 = vld [vmem:[%s1632_s1 + $0x108] sm:$0xff]   ;;  %v1309_v6 = vld [vmem:[%s1632_s1 + $0x1c0] sm:$0xff]  }
  0x17   :  { %1104 = vmatpush3.bf16.msra.mxu0 %v1256_v21  ;;  %v1300_v61 = vld [vmem:[%s1632_s1 + $0x110] sm:$0xff]   ;;  %v1305_v2 = vld [vmem:[%s1632_s1 + $0x1c8] sm:$0xff]   ;;  %v1313_v9 = vld [vmem:[%s1632_s1 + $0x180] sm:$0xff]  }
  0x18   :  { %1105 = vmatprep.subr.bf16.mxu0 %v1259_v24  ;;  %v1301_v62 = vld [vmem:[%s1632_s1 + $0x1d0] sm:$0xff]   ;;  %v1306_v3 = vld [vmem:[%s1632_s1 + $0x188] sm:$0xff]   ;;  %v1314_v10 = vld [vmem:[%s1632_s1 + $0x238] sm:$0xff]  }
  0x19   :  { %1132 = vmatpush3.bf16.msra.mxu1 %v1258_v23  ;;  %v1302_v63 = vld [vmem:[%s1632_s1 + $0x190] sm:$0xff]   ;;  %v1315_v11 = vld [vmem:[%s1633_s0 + $0x18] ss:$36 sps:$4 sm:$0xff]   ;;  %v1322_v16 = vld [vmem:[%s1632_s1 + $0x228] sm:$0xff]  }
  0x1a   :  { %1133 = vmatprep.subr.bf16.mxu1 %v1261_v26  ;;  %v1310_v7 = vld [vmem:[%s1633_s0 + $0x10] ss:$36 sps:$4 sm:$0xff]   ;;  %v1317_v12 = vld [vmem:[%s1633_s0 + $0x1c] ss:$36 sps:$4 sm:$0xff]   ;;  %v1323_v17 = vld [vmem:[%s1633_s0 + $0x64] ss:$36 sps:$4 sm:$0xff]  }
  0x1b   :  { %1106 = vmatpush3.bf16.msra.mxu0 %v1260_v25  ;;  %v1312_v8 = vld [vmem:[%s1633_s0 + $0x14] ss:$36 sps:$4 sm:$0xff]   ;;  %v1319_v14 = vld [vmem:[%s1633_s0 + $0x5c] ss:$36 sps:$4 sm:$0xff]   ;;  %v1329_v23 = vld [vmem:[%s1632_s1 + $0x208] sm:$0xff]  }
  0x1c   :  { %1107 = vmatprep.subr.bf16.mxu0 %v1263_v28  ;;  %v1318_v13 = vld [vmem:[%s1632_s1 + $0x230] sm:$0xff]   ;;  %v1321_v15 = vld [vmem:[%s1633_s0 + $0x58] ss:$36 sps:$4 sm:$0xff]   ;;  %v1325_v18 = vld [vmem:[%s1633_s0 + $0x60] ss:$36 sps:$4 sm:$0xff]  }
  0x1d   :  { %1134 = vmatpush3.bf16.msra.mxu1 %v1262_v27  ;;  %v1326_v19 = vld [vmem:[%s1632_s1 + $0x220] sm:$0xff]   ;;  %v1327_v20 = vld [vmem:[%s1632_s1 + $0x218] sm:$0xff]   ;;  %v1328_v22 = vld [vmem:[%s1632_s1 + $0x210] sm:$0xff]  }
  0x1e   :  { %1135 = vmatprep.subr.bf16.mxu1 %v1265_v30  ;;  %v1331_v21 = vld [vmem:[%s1633_s0 + $0x20] ss:$36 sps:$4 sm:$0xff]   ;;  %v1332_v25 = vld [vmem:[%s1633_s0 + $0x68] ss:$36 sps:$4 sm:$0xff]  }
  0x1f   :  { %1108 = vmatpush3.bf16.msra.mxu0 %v1264_v29  ;;  %v1330_v24 = vld [vmem:[%s1632_s1 + $0x200] sm:$0xff]  }
  0x20   :  { %1149 = vmatprep.subr.bf16.mxu0 %v1270_v34 }
  0x21   :  { %1136 = vmatpush3.bf16.msra.mxu1 %v1269_v33 }
  0x22   :  { %743 = vmatmul.mubr.bf16.vlgmr.msra.gmra.mxu0 %v1266_v31  ;;  %1177 = vmatprep.subr.bf16.mxu1 %v1275_v38 }
  0x23   :  { %1150 = vmatpush3.bf16.msra.mxu0 %v1274_v37  ;;  %750 = vmatprep.mubr.bf16.mxu0 %v1291_v54 }
  0x24   :  { %792 = vmatmul.mubr.bf16.vlgmr.msra.gmra.mxu1 %v1271_v35  ;;  %1151 = vmatprep.subr.bf16.mxu0 %v1277_v40 }
  0x25   :  { %1178 = vmatpush3.bf16.msra.mxu1 %v1276_v39  ;;  %799 = vmatprep.mubr.bf16.mxu1 %v1296_v58 }
  0x26   :  { %1179 = vmatprep.subr.bf16.mxu1 %v1279_v42 }
  0x27   :  { %1152 = vmatpush3.bf16.msra.mxu0 %v1278_v41 }
  0x28   :  { %1153 = vmatprep.subr.bf16.mxu0 %v1281_v44 }
  0x29   :  { %1180 = vmatpush3.bf16.msra.mxu1 %v1280_v43 }
  0x2a   :  { %1181 = vmatprep.subr.bf16.mxu1 %v1283_v46  ;;  %751 = vmatmul.mubr.bf16.gmra.mxu0 %v1294_v56 }
  0x2b   :  { %1154 = vmatpush3.bf16.msra.mxu0 %v1282_v45  ;;  %840 = vmatprep.mubr.bf16.mxu0 %v1312_v8 }
  0x2c   :  { %1155 = vmatprep.subr.bf16.mxu0 %v1285_v48  ;;  %800 = vmatmul.mubr.bf16.gmra.mxu1 %v1299_v60 }
  0x2d   :  { %1182 = vmatpush3.bf16.msra.mxu1 %v1284_v47  ;;  %889 = vmatprep.mubr.bf16.mxu1 %v1317_v12 }
  0x2e   :  { %1183 = vmatprep.subr.bf16.mxu1 %v1287_v50 }
  0x2f   :  { %1156 = vmatpush3.bf16.msra.mxu0 %v1286_v49 }
  0x30   :  { %1157 = vmatprep.subr.bf16.mxu0 %v1289_v52 }
  0x31   :  { %1184 = vmatpush3.bf16.msra.mxu1 %v1288_v51 }
  0x32   :  { %1185 = vmatprep.subr.bf16.mxu1 %v1293_v55 }
  0x33   :  { %1158 = vmatpush3.bf16.msra.mxu0 %v1290_v53 }
  0x34   :  { %1159 = vmatprep.subr.bf16.mxu0 %v1298_v59 }
  0x35   :  { %1186 = vmatpush3.bf16.msra.mxu1 %v1295_v57  ;;  %v983_v57 = vld [vmem:[%s1634_s2] ss:$0 sm:$0xff] }
  0x36   :  { %1187 = vmatprep.subr.bf16.mxu1 %v1301_v62 }
  0x37   :  { %1160 = vmatpush3.bf16.msra.mxu0 %v1300_v61 }
  0x38   :  { %1161 = vmatprep.subr.bf16.mxu0 %v1303_v0 }
  0x39   :  { %1188 = vmatpush3.bf16.msra.mxu1 %v1302_v63 }
  0x3a   :  { %1189 = vmatprep.subr.bf16.mxu1 %v1305_v2 }
  0x3b   :  { %1162 = vmatpush3.bf16.msra.mxu0 %v1304_v1 }
  0x3c   :  { %1163 = vmatprep.subr.bf16.mxu0 %v1307_v4 }
  0x3d   :  { %1190 = vmatpush3.bf16.msra.mxu1 %v1306_v3 }
  0x3e   :  { %1191 = vmatprep.subr.bf16.mxu1 %v1309_v6 }
  0x3f   :  { %1164 = vmatpush3.bf16.msra.mxu0 %v1308_v5 }
  0x40   :  { %1215 = vmatprep.subr.bf16.mxu0 %v1314_v10 }
  0x41   :  { %1192 = vmatpush3.bf16.msra.mxu1 %v1313_v9 }
  0x42   :  { %841 = vmatmul.mubr.bf16.vlgmr.msra.gmra.mxu0 %v1310_v7 }
  0x43   :  { %1216 = vmatpush3.bf16.msra.mxu0 %v1314_v10  ;;  %848 = vmatprep.mubr.bf16.mxu0 %v1319_v14 }
  0x44   :  { %890 = vmatmul.mubr.bf16.vlgmr.msra.gmra.mxu1 %v1315_v11  ;;  %1217 = vmatprep.subr.bf16.mxu0 %v1318_v13 }
  0x45   :  { %897 = vmatprep.mubr.bf16.mxu1 %v1323_v17 }
  0x47   :  { %1218 = vmatpush3.bf16.msra.mxu0 %v1318_v13 }
  0x48   :  { %1219 = vmatprep.subr.bf16.mxu0 %v1322_v16 }
  0x4a   :  { %849 = vmatmul.mubr.bf16.gmra.mxu0 %v1321_v15 }
  0x4b   :  { %1220 = vmatpush3.bf16.msra.mxu0 %v1322_v16  ;;  %1231 = vmatprep.mubr.bf16.mxu0 %v1331_v21 }
  0x4c   :  { %898 = vmatmul.mubr.bf16.gmra.mxu1 %v1325_v18  ;;  %1221 = vmatprep.subr.bf16.mxu0 %v1326_v19 }
  0x4f   :  { %1222 = vmatpush3.bf16.msra.mxu0 %v1326_v19 }
  0x50   :  { %1223 = vmatprep.subr.bf16.mxu0 %v1327_v20 }
  0x53   :  { %1224 = vmatpush3.bf16.msra.mxu0 %v1327_v20 }
  0x54   :  { %1225 = vmatprep.subr.bf16.mxu0 %v1328_v22 }
  0x57   :  { %1226 = vmatpush3.bf16.msra.mxu0 %v1328_v22 }
  0x58   :  { %1227 = vmatprep.subr.bf16.mxu0 %v1329_v23 }
  0x5b   :  { %1228 = vmatpush3.bf16.msra.mxu0 %v1329_v23 }
  0x5c   :  { %1229 = vmatprep.subr.bf16.mxu0 %v1330_v24 }
  0x5f   :  { %1230 = vmatpush3.bf16.msra.mxu0 %v1330_v24 }
  0x62   :  { %1232 = vmatmul.mubr.bf16.vlgmr.msra.gmra.mxu0 %v1332_v25 }
  0xe2   :  { %v1109_v26 = vpop.f32.mrf.mxu0 }
  0xe4   :  { %v1137_v27 = vpop.f32.mrf.mxu1  ;;  %v1110_v28 = vpop.f32.mrf.mxu0 }
  0xe5   :  { %v1111_v54 = vadd.f32 %v1110_v28, %v1109_v26 }
  0xe6   :  { %v1138_v29 = vpop.f32.mrf.mxu1  ;;  %v1112_v30 = vpop.f32.mrf.mxu0 }
  0xe7   :  { %v745_v62 = vadd.f32 %v1111_v54, %v983_v57  ;;  %v1139_v63 = vadd.f32 %v1138_v29, %v1137_v27 }
  0xe8   :  { %v1140_v31 = vpop.f32.mrf.mxu1  ;;  %v1113_v32 = vpop.f32.mrf.mxu0 }
  0xe9   :  { %v1114_v59 = vadd.f32 %v1113_v32, %v1112_v30  ;;  %v794_v10 = vadd.f32 %v1139_v63, %v745_v62 }
  0xea   :  { %v1115_v33 = vpop.f32.mrf.mxu0  ;;  %v1141_v34 = vpop.f32.mrf.mxu1 }
  0xeb   :  { %v748_v5 = vadd.f32 %v1114_v59, %v983_v57  ;;  %v1142_v6 = vadd.f32 %v1141_v34, %v1140_v31 }
  0xec   :  { %v1143_v35 = vpop.f32.mrf.mxu1  ;;  %v1116_v36 = vpop.f32.mrf.mxu0 }
  0xed   :  { %v1117_v53 = vadd.f32 %v1116_v36, %v1115_v33  ;;  %v797_v16 = vadd.f32 %v1142_v6, %v748_v5 }
  0xee   :  { %v1144_v37 = vpop.f32.mrf.mxu1  ;;  %v1118_v38 = vpop.f32.mrf.mxu0 }
  0xef   :  { %v753_v60 = vadd.f32 %v1117_v53, %v983_v57  ;;  %v1145_v61 = vadd.f32 %v1144_v37, %v1143_v35 }
  0xf0   :  { %v1146_v39 = vpop.f32.mrf.mxu1  ;;  %v1119_v40 = vpop.f32.mrf.mxu0 }
  0xf1   :  { %v1120_v58 = vadd.f32 %v1119_v40, %v1118_v38  ;;  %v802_v7 = vadd.f32 %v1145_v61, %v753_v60 }
  0xf2   :  { %v1147_v42 = vpop.f32.mrf.mxu1 }
  0xf3   :  { %v756_v2 = vadd.f32 %v1120_v58, %v983_v57  ;;  %v1148_v3 = vadd.f32 %v1147_v42, %v1146_v39 }
  0xf5   :  { %v805_v12 = vadd.f32 %v1148_v3, %v756_v2 }
 0x102   :  { %v1165_v41 = vpop.f32.mrf.mxu0 }
 0x104   :  { %v1166_v43 = vpop.f32.mrf.mxu0  ;;  %v1193_v44 = vpop.f32.mrf.mxu1 }
 0x105   :  { %v1167_v8 = vadd.f32 %v1166_v43, %v1165_v41 }
 0x106   :  { %v1168_v45 = vpop.f32.mrf.mxu0  ;;  %v1194_v46 = vpop.f32.mrf.mxu1 }
 0x107   :  { %v843_v17 = vadd.f32 %v1167_v8, %v794_v10  ;;  %v1195_v18 = vadd.f32 %v1194_v46, %v1193_v44 }
 0x108   :  { %v1169_v47 = vpop.f32.mrf.mxu0  ;;  %v1196_v48 = vpop.f32.mrf.mxu1 }
 0x109   :  { %v1170_v13 = vadd.f32 %v1169_v47, %v1168_v45  ;;  %v892_v27 = vadd.f32 %v1195_v18, %v843_v17 }
 0x10a   :  { %v1171_v49 = vpop.f32.mrf.mxu0  ;;  %v1197_v50 = vpop.f32.mrf.mxu1 }
 0x10b   :  { %v846_v22 = vadd.f32 %v1170_v13, %v797_v16  ;;  %v1198_v23 = vadd.f32 %v1197_v50, %v1196_v48 }
 0x10c   :  { %v1172_v51 = vpop.f32.mrf.mxu0  ;;  %v1199_v52 = vpop.f32.mrf.mxu1 }
 0x10d   :  { %v1173_v4 = vadd.f32 %v1172_v51, %v1171_v49  ;;  %v895_v32 = vadd.f32 %v1198_v23, %v846_v22 }
 0x10e   :  { %v1174_v55 = vpop.f32.mrf.mxu0  ;;  %v1200_v56 = vpop.f32.mrf.mxu1 }
 0x10f   :  { %v851_v14 = vadd.f32 %v1173_v4, %v802_v7  ;;  %v1201_v15 = vadd.f32 %v1200_v56, %v1199_v52 }
 0x110   :  { %v1175_v0 = vpop.f32.mrf.mxu0  ;;  %v1202_v1 = vpop.f32.mrf.mxu1 }
 0x111   :  { %v1176_v9 = vadd.f32 %v1175_v0, %v1174_v55  ;;  %v900_v24 = vadd.f32 %v1201_v15, %v851_v14 }
 0x112   :  { %v1203_v11 = vpop.f32.mrf.mxu1 }
 0x113   :  { %v854_v19 = vadd.f32 %v1176_v9, %v805_v12  ;;  %v1204_v20 = vadd.f32 %v1203_v11, %v1202_v1 }
 0x115   :  { %v903_v28 = vadd.f32 %v1204_v20, %v854_v19 }
 0x122   :  { %v1233_v21 = vpop.f32.mrf.mxu0 }
 0x123   :  { %v949_v26 = vadd.f32 %v1233_v21, %v900_v24 }
 0x124   :  { %v940_v25 = vpop.f32.mrf.mxu0 }
 0x125   :  { %v941_v30 = vadd.f32 %v940_v25, %v892_v27  ;;  %v957_v34 = vmax.f32 %v949_v26, 0.0 }
 0x126   :  { %v1234_v29 = vpop.f32.mrf.mxu0 }
 0x127   :  { %v952_v31 = vadd.f32 %v1234_v29, %v903_v28  ;;  %v955_v37 = vmax.f32 %v941_v30, 0.0 }
 0x128   :  { %v943_v33 = vpop.f32.mrf.mxu0 }
 0x129   :  { %v958_v35 = vmax.f32 %v952_v31, 0.0  ;;  %v944_v36 = vadd.f32 %v943_v33, %v895_v32 }
 0x12b   :  { %v1090_v38 = vpack.c.bf16 %v958_v35, %v957_v34  ;;  %v956_v39 = vmax.f32 %v944_v36, 0.0 }
 0x12d   :  { %1092 = vst [vmem:[%s1635_s3 + $0x8] sm:$0xff] %v1090_v38   ;;  %v1085_v40 = vpack.c.bf16 %v956_v39, %v955_v37 }
 0x12f   :  { %1086 = vst [vmem:[%s1635_s3] sm:$0xff] %v1085_v40  }

// kernel: segmenter_forward.14
= control target key start
LH: loop header
LB: loop body
LE: loop exit
PB: predicated region body
PF: predicated region fallthrough
CT: control target
= control target key end

     0   :  { %vm43_vm0 = vcmask 1043456   ;;  %v671_v2 = vmov 0   ;;  %vm39_vm1 = vcmask 64512   ;;  %s797_s1 = inlined_call_operand.vmem [shape: bf16[2,8,1024], index: 1, kind: input, shape index: {}]   ;;  %s798_s0 = inlined_call_operand.vmem [shape: f32[16,8], index: 0, kind: input, shape index: {}]   ;;  %s799_s2 = inlined_call_operand.vmem [shape: bf16[2,16,1024], index: 2, kind: output, shape index: {}]  }
   0x1   :  { %v15_v0 = vld [vmem:[%s797_s1] sm:$0xff]  ;;  %v16_v1 = vld [vmem:[%s797_s1 + $0x8] sm:$0xff]  ;;  %100 = vmatprep.mubr.bf16.mxu0 %v671_v2  ;;  %143 = vmatprep.mubr.bf16.mxu1 %v671_v2  ;;  %v17_v9 = vld [vmem:[%s797_s1 + $0x10] sm:$0xff] }
   0x2   :  { %v12_v3 = vld [vmem:[%s798_s0] sm:$0xff]  ;;  %v579_v4 = vcombine.high %v15_v0, %v15_v0  ;;  %v581_v5 = vcombine.high %v16_v1, %v16_v1  ;;  %v578_v6 = vcombine.low %v15_v0, %v15_v0  ;;  %v580_v7 = vcombine.low %v16_v1, %v16_v1  ;;  %v13_v8 = vld [vmem:[%s798_s0 + $0x8] sm:$0xff]  ;;  %v18_v10 = vld [vmem:[%s797_s1 + $0x18] sm:$0xff] }
   0x3   :  { %v583_v11 = vcombine.high %v17_v9, %v17_v9  ;;  %v585_v12 = vcombine.high %v18_v10, %v18_v10  ;;  %v582_v13 = vcombine.low %v17_v9, %v17_v9  ;;  %v14_v16 = vpack.c.bf16 %v13_v8, %v12_v3  ;;  %v602_v18 = vld [vmem:[%s797_s1 + $0x20] sm:$0xff]  ;;  %v603_v19 = vld [vmem:[%s797_s1 + $0x28] sm:$0xff]  ;;  %v604_v26 = vld [vmem:[%s797_s1 + $0x30] sm:$0xff] }
   0x4   :  { %586 = vmatprep.subr.msk.bf16.mxu0 %vm43_vm0, %v579_v4  ;;  %588 = vmatprep.subr.msk.bf16.mxu1 %vm43_vm0, %v581_v5  ;;  %v45_v14 = vsel %vm43_vm0, %v578_v6, 0  ;;  %v51_v15 = vsel %vm43_vm0, %v580_v7, 0  ;;  %v584_v17 = vcombine.low %v18_v10, %v18_v10  ;;  %v607_v22 = vcombine.high %v602_v18, %v602_v18  ;;  %v605_v27 = vld [vmem:[%s797_s1 + $0x38] sm:$0xff] }
   0x5   :  { %83 = vmatpush1.bf16.msra.mxu0 %v45_v14  ;;  %126 = vmatpush1.bf16.msra.mxu1 %v51_v15  ;;  %v57_v20 = vsel %vm43_vm0, %v582_v13, 0  ;;  %v609_v23 = vcombine.high %v603_v19, %v603_v19  ;;  %v606_v24 = vcombine.low %v602_v18, %v602_v18  ;;  %v608_v25 = vcombine.low %v603_v19, %v603_v19 }
   0x6   :  { %590 = vmatprep.subr.msk.bf16.mxu0 %vm43_vm0, %v583_v11  ;;  %592 = vmatprep.subr.msk.bf16.mxu1 %vm43_vm0, %v585_v12  ;;  %v63_v21 = vsel %vm43_vm0, %v584_v17, 0  ;;  %v611_v30 = vcombine.high %v604_v26, %v604_v26  ;;  %v613_v31 = vcombine.high %v605_v27, %v605_v27  ;;  %v610_v32 = vcombine.low %v604_v26, %v604_v26 }
   0x7   :  { %v322_v28 = vsel %vm43_vm0, %v606_v24, 0  ;;  %v328_v29 = vsel %vm43_vm0, %v608_v25, 0  ;;  %v612_v33 = vcombine.low %v605_v27, %v605_v27 }
   0x8   :  { %587 = vmatmul.mubr.msk.bf16.vlgmr.msra.gmra.mxu0 %vm39_vm1, %v14_v16  ;;  %589 = vmatmul.mubr.msk.bf16.vlgmr.msra.gmra.mxu1 %vm39_vm1, %v14_v16  ;;  %v334_v34 = vsel %vm43_vm0, %v610_v32, 0 }
   0x9   :  { %169 = vmatpush1.bf16.msra.mxu0 %v57_v20  ;;  %212 = vmatpush1.bf16.msra.mxu1 %v63_v21  ;;  %v340_v35 = vsel %vm43_vm0, %v612_v33, 0 }
   0xa   :  { %186 = vmatprep.mubr.bf16.mxu0 %v671_v2  ;;  %229 = vmatprep.mubr.bf16.mxu1 %v671_v2 }
   0xb   :  { %614 = vmatprep.subr.msk.bf16.mxu0 %vm43_vm0, %v607_v22  ;;  %616 = vmatprep.subr.msk.bf16.mxu1 %vm43_vm0, %v609_v23 }
  0x10   :  { %591 = vmatmul.mubr.msk.bf16.vlgmr.msra.gmra.mxu0 %vm39_vm1, %v14_v16  ;;  %593 = vmatmul.mubr.msk.bf16.vlgmr.msra.gmra.mxu1 %vm39_vm1, %v14_v16 }
  0x11   :  { %360 = vmatpush1.bf16.msra.mxu0 %v322_v28  ;;  %403 = vmatpush1.bf16.msra.mxu1 %v328_v29 }
  0x12   :  { %377 = vmatprep.mubr.bf16.mxu0 %v671_v2  ;;  %420 = vmatprep.mubr.bf16.mxu1 %v671_v2 }
  0x13   :  { %618 = vmatprep.subr.msk.bf16.mxu0 %vm43_vm0, %v611_v30  ;;  %620 = vmatprep.subr.msk.bf16.mxu1 %vm43_vm0, %v613_v31 }
  0x18   :  { %615 = vmatmul.mubr.msk.bf16.vlgmr.msra.gmra.mxu0 %vm39_vm1, %v14_v16  ;;  %617 = vmatmul.mubr.msk.bf16.vlgmr.msra.gmra.mxu1 %vm39_vm1, %v14_v16 }
  0x19   :  { %446 = vmatpush1.bf16.msra.mxu0 %v334_v34  ;;  %489 = vmatpush1.bf16.msra.mxu1 %v340_v35 }
  0x1a   :  { %463 = vmatprep.mubr.bf16.mxu0 %v671_v2  ;;  %506 = vmatprep.mubr.bf16.mxu1 %v671_v2 }
  0x20   :  { %619 = vmatmul.mubr.msk.bf16.vlgmr.msra.gmra.mxu0 %vm39_vm1, %v14_v16  ;;  %621 = vmatmul.mubr.msk.bf16.vlgmr.msra.gmra.mxu1 %vm39_vm1, %v14_v16 }
  0xc8   :  { %v102_v36 = vpop.f32.mrf.mxu0  ;;  %v145_v37 = vpop.f32.mrf.mxu1 }
  0xca   :  { %v104_v38 = vpop.f32.mrf.mxu0  ;;  %v147_v39 = vpop.f32.mrf.mxu1 }
  0xcb   :  { %v638_v40 = vpack.c.bf16 %v104_v38, %v102_v36  ;;  %v639_v41 = vpack.c.bf16 %v147_v39, %v145_v37 }
  0xcc   :  { %v106_v42 = vpop.f32.mrf.mxu0  ;;  %v149_v43 = vpop.f32.mrf.mxu1 }
  0xcd   :  { %288 = vst [vmem:[%s799_s2] sm:$0xff] %v638_v40  ;;  %289 = vst [vmem:[%s799_s2 + $0x8] sm:$0xff] %v639_v41 }
  0xce   :  { %v108_v44 = vpop.f32.mrf.mxu0  ;;  %v151_v45 = vpop.f32.mrf.mxu1 }
  0xcf   :  { %v642_v46 = vpack.c.bf16 %v108_v44, %v106_v42  ;;  %v643_v47 = vpack.c.bf16 %v151_v45, %v149_v43 }
  0xd0   :  { %v188_v48 = vpop.f32.mrf.mxu0  ;;  %v231_v49 = vpop.f32.mrf.mxu1 }
  0xd1   :  { %292 = vst [vmem:[%s799_s2 + $0x20] sm:$0xff] %v642_v46  ;;  %293 = vst [vmem:[%s799_s2 + $0x28] sm:$0xff] %v643_v47 }
  0xd2   :  { %v190_v50 = vpop.f32.mrf.mxu0  ;;  %v233_v51 = vpop.f32.mrf.mxu1 }
  0xd3   :  { %v640_v52 = vpack.c.bf16 %v190_v50, %v188_v48  ;;  %v641_v53 = vpack.c.bf16 %v233_v51, %v231_v49 }
  0xd4   :  { %v192_v54 = vpop.f32.mrf.mxu0  ;;  %v235_v55 = vpop.f32.mrf.mxu1 }
  0xd5   :  { %290 = vst [vmem:[%s799_s2 + $0x10] sm:$0xff] %v640_v52  ;;  %291 = vst [vmem:[%s799_s2 + $0x18] sm:$0xff] %v641_v53 }
  0xd6   :  { %v194_v56 = vpop.f32.mrf.mxu0  ;;  %v237_v57 = vpop.f32.mrf.mxu1 }
  0xd7   :  { %v644_v58 = vpack.c.bf16 %v194_v56, %v192_v54  ;;  %v645_v59 = vpack.c.bf16 %v237_v57, %v235_v55 }
  0xd8   :  { %v379_v60 = vpop.f32.mrf.mxu0  ;;  %v422_v61 = vpop.f32.mrf.mxu1 }
  0xd9   :  { %294 = vst [vmem:[%s799_s2 + $0x30] sm:$0xff] %v644_v58  ;;  %295 = vst [vmem:[%s799_s2 + $0x38] sm:$0xff] %v645_v59 }
  0xda   :  { %v381_v62 = vpop.f32.mrf.mxu0  ;;  %v424_v63 = vpop.f32.mrf.mxu1 }
  0xdb   :  { %v646_v0 = vpack.c.bf16 %v381_v62, %v379_v60  ;;  %v647_v1 = vpack.c.bf16 %v424_v63, %v422_v61 }
  0xdc   :  { %v383_v2 = vpop.f32.mrf.mxu0  ;;  %v426_v3 = vpop.f32.mrf.mxu1 }
  0xdd   :  { %630 = vst [vmem:[%s799_s2 + $0x40] sm:$0xff] %v646_v0  ;;  %631 = vst [vmem:[%s799_s2 + $0x48] sm:$0xff] %v647_v1 }
  0xde   :  { %v385_v4 = vpop.f32.mrf.mxu0  ;;  %v428_v5 = vpop.f32.mrf.mxu1 }
  0xdf   :  { %v650_v6 = vpack.c.bf16 %v385_v4, %v383_v2  ;;  %v651_v7 = vpack.c.bf16 %v428_v5, %v426_v3 }
  0xe0   :  { %v465_v8 = vpop.f32.mrf.mxu0  ;;  %v508_v9 = vpop.f32.mrf.mxu1 }
  0xe1   :  { %634 = vst [vmem:[%s799_s2 + $0x60] sm:$0xff] %v650_v6  ;;  %635 = vst [vmem:[%s799_s2 + $0x68] sm:$0xff] %v651_v7 }
  0xe2   :  { %v467_v10 = vpop.f32.mrf.mxu0  ;;  %v510_v11 = vpop.f32.mrf.mxu1 }
  0xe3   :  { %v648_v12 = vpack.c.bf16 %v467_v10, %v465_v8  ;;  %v649_v13 = vpack.c.bf16 %v510_v11, %v508_v9 }
  0xe4   :  { %v469_v14 = vpop.f32.mrf.mxu0  ;;  %v512_v15 = vpop.f32.mrf.mxu1 }
  0xe5   :  { %632 = vst [vmem:[%s799_s2 + $0x50] sm:$0xff] %v648_v12  ;;  %633 = vst [vmem:[%s799_s2 + $0x58] sm:$0xff] %v649_v13 }
  0xe6   :  { %v471_v16 = vpop.f32.mrf.mxu0  ;;  %v514_v17 = vpop.f32.mrf.mxu1 }
  0xe7   :  { %v652_v18 = vpack.c.bf16 %v471_v16, %v469_v14  ;;  %v653_v19 = vpack.c.bf16 %v514_v17, %v512_v15 }
  0xe9   :  { %636 = vst [vmem:[%s799_s2 + $0x70] sm:$0xff] %v652_v18  ;;  %637 = vst [vmem:[%s799_s2 + $0x78] sm:$0xff] %v653_v19 }

// kernel: segmenter_forward.13
= control target key start
LH: loop header
LB: loop body
LE: loop exit
PB: predicated region body
PF: predicated region fallthrough
CT: control target
= control target key end

     0   :  { %s1527_s18 = smov 0   ;;  %s1850_s0 = inlined_call_operand.vmem [shape: f32[8,4], index: 0, kind: input, shape index: {}]   ;;  %s1851_s1 = inlined_call_operand.vmem [shape: bf16[16,4,128], index: 1, kind: input, shape index: {}]   ;;  %s1852_s2 = inlined_call_operand.vmem [shape: bf16[16,8,128], index: 2, kind: input, shape index: {}]   ;;  %s1853_s3 = inlined_call_operand.vmem [shape: bf16[128,128], index: 3, kind: input, shape index: {}]   ;;  %s1854_s4 = inlined_call_operand.vmem [shape: f32[1,128], index: 4, kind: input, shape index: {}]   ;;  %s1855_s5 = inlined_call_operand.vmem [shape: bf16[16,8,128], index: 5, kind: output, shape index: {}]  }
   0x1 LB: > { %s1122_s19 = sadd.s32 4294967295, %s1493_s18   ;;  %p1126_p0 = scmp.ge.s32.totalorder %s1493_s18, 1  ;;  %s1493_s18 = sphi %s1527_s18, %s15_s18  }
   0x2   : > { %p199_p1 = scmp.lt.s32.totalorder %s1493_s18, 3 }
   0x4   : > { %p200_p2 = pnand %p1126_p0, %p199_p1 }
   0x5   : > { %s1127_s22 = sshll.u32 (!%p200_p2), %s1122_s19, 3 }
   0x6   : > { %203 = sbr.rel (%p200_p2) target bundleno = 372 (0x174), region = 40  ;;  %p233_p3 = scmp.lt.s32.totalorder (!%p200_p2), %s1127_s22, 15 }
   0xb   : > { %v1538_v0 = vld [vmem:[%s1853_s3 + $0x38] sm:$0xff]   ;;  %v1495_v1 = vmov 0.0   ;;  %v1546_v2 = vld [vmem:[%s1853_s3 + $0x30] sm:$0xff]   ;;  %s1857_s22 = smov (!%p233_p3, %s1127_s22), 15  ;;  %vm1496_vm0 = vmmov 0   ;;  %vm364_vm1 = vcmask 1041408  }
   0xc   : > { %1261 = vmatprep.subr.bf16.mxu0 %v1495_v1  ;;  %1281 = vmatprep.subr.bf16.mxu1 %v1495_v1  ;;  %v1558_v3 = vld [vmem:[%s1853_s3 + $0x28] sm:$0xff]   ;;  %s1128_s27 = sshll.u32 %s1857_s22, 1  ;;  %v251_v4 = vld [vmem:[%s1850_s0] sm:$0xff]  ;;  %vm360_vm2 = vcmask 31744   ;;  %v1599_v14 = vld [vmem:[%s1853_s3 + $0x18] sm:$0xff]   ;;  %s1130_s16 = sshll.u32 %s1857_s22, 2 }
   0xd   : > { %1262 = vmatpush3.bf16.msra.mxu0 %v1538_v0  ;;  %1283 = vmatprep.mubr.msk.bf16.mxu1 %vm1496_vm0, %v1495_v1  ;;  %s1568_s7 = scalar_lea.vmem %s1851_s1, %s1128_s27  ;;  %v1573_v7 = vpack.c.bf16 %v251_v4, %v251_v4  ;;  %v1579_v8 = vld [vmem:[%s1853_s3 + $0x20] sm:$0xff]   ;;  %v1617_v18 = vld [vmem:[%s1853_s3 + $0x10] sm:$0xff]   ;;  %v1626_v19 = vld [vmem:[%s1853_s3 + $0x8] sm:$0xff]   ;;  %s1645_s23 = scalar_lea.vmem %s1852_s2, %s1130_s16 }
   0xe   : > { %1263 = vmatprep.subr.bf16.mxu0 %v1495_v1  ;;  %1277 = vmatprep.mubr.msk.bf16.mxu0 %vm1496_vm0, %v1495_v1  ;;  %v270_v5 = vld [vmem:[%s1568_s7] sm:$0x3]  ;;  %v1151_v9 = vld [vmem:[%s1568_s7 + $0x6] sm:$0x3]  ;;  %v1155_v11 = vld [vmem:[%s1568_s7 + $0x8] sm:$0x3]  ;;  %s1830_s28 = scalar_lea.vmem %s1855_s5, %s1130_s16 }
   0xf   : > { %v366_v6 = vsel %vm364_vm1, %v270_v5, 0  ;;  %v1585_v10 = vsel %vm364_vm1, %v1151_v9, 0  ;;  %v1591_v12 = vsel %vm364_vm1, %v1155_v11, 0  ;;  %v1159_v13 = vld [vmem:[%s1568_s7 + $0xa] sm:$0x3]  ;;  %v1636_v20 = vld [vmem:[%s1853_s3] sm:$0xff]  }
  0x10   : > { %1282 = vmatpush3.bf16.msra.mxu1 %v366_v6  ;;  %v1602_v15 = vsel %vm364_vm1, %v1159_v13, 0  ;;  %v1163_v16 = vld [vmem:[%s1568_s7 + $0xc] sm:$0x3]  ;;  %v1143_v21 = vld [vmem:[%s1568_s7 + $0x2] sm:$0x3] }
  0x11   : > { %1264 = vmatpush3.bf16.msra.mxu0 %v1546_v2  ;;  %1287 = vmatprep.subr.bf16.mxu1 %v1495_v1  ;;  %v1608_v17 = vsel %vm364_vm1, %v1163_v16, 0  ;;  %v1167_v22 = vld [vmem:[%s1568_s7 + $0xe] sm:$0x3]  ;;  %v271_v23 = vld [vmem:[%s1645_s23] sm:$0xf]  ;;  %v462_v25 = vsel %vm364_vm1, %v1143_v21, 0 }
  0x12   : > { %1265 = vmatprep.subr.bf16.mxu0 %v1495_v1  ;;  %v1653_v24 = vsel %vm364_vm1, %v1167_v22, 0  ;;  %v1147_v26 = vld [vmem:[%s1568_s7 + $0x4] sm:$0x3]  ;;  %v1148_v29 = vld [vmem:[%s1645_s23 + $0x8] sm:$0xf] }
  0x13   : > { %1284 = vmatmul.mubr.msk.bf16.vlgmr.msra.gmra.mxu1 %vm360_vm2, %v1573_v7  ;;  %v553_v27 = vsel %vm364_vm1, %v1147_v26, 0  ;;  %v1144_v28 = vld [vmem:[%s1645_s23 + $0x4] sm:$0xf]  ;;  %v1152_v30 = vld [vmem:[%s1645_s23 + $0xc] sm:$0xf] }
  0x14   : > { %1288 = vmatpush3.bf16.msra.mxu1 %v1538_v0  ;;  %1303 = vmatprep.mubr.msk.bf16.mxu1 %vm1496_vm0, %v1495_v1  ;;  %v1156_v31 = vld [vmem:[%s1645_s23 + $0x10] sm:$0xf]  ;;  %v1160_v32 = vld [vmem:[%s1645_s23 + $0x14] sm:$0xf]  ;;  %v1164_v33 = vld [vmem:[%s1645_s23 + $0x18] sm:$0xf] }
  0x15   : > { %1266 = vmatpush3.bf16.msra.mxu0 %v1558_v3  ;;  %1289 = vmatprep.subr.bf16.mxu1 %v1495_v1  ;;  %v1168_v34 = vld [vmem:[%s1645_s23 + $0x1c] sm:$0xf]  ;;  %v1822_v39 = vld [vmem:[%s1854_s4] ss:$0 sm:$0xff] }
  0x16   : > { %1267 = vmatprep.subr.bf16.mxu0 %v1495_v1 }
  0x18   : > { %1290 = vmatpush3.bf16.msra.mxu1 %v1546_v2 }
  0x19   : > { %1268 = vmatpush3.bf16.msra.mxu0 %v1579_v8  ;;  %1291 = vmatprep.subr.bf16.mxu1 %v1495_v1 }
  0x1a   : > { %1269 = vmatprep.subr.bf16.mxu0 %v1495_v1 }
  0x1c   : > { %1292 = vmatpush3.bf16.msra.mxu1 %v1558_v3 }
  0x1d   : > { %1270 = vmatpush3.bf16.msra.mxu0 %v1599_v14  ;;  %1293 = vmatprep.subr.bf16.mxu1 %v1495_v1 }
  0x1e   : > { %1271 = vmatprep.subr.bf16.mxu0 %v1495_v1 }
  0x20   : > { %1294 = vmatpush3.bf16.msra.mxu1 %v1579_v8 }
  0x21   : > { %1272 = vmatpush3.bf16.msra.mxu0 %v1617_v18  ;;  %1295 = vmatprep.subr.bf16.mxu1 %v1495_v1 }
  0x22   : > { %1273 = vmatprep.subr.bf16.mxu0 %v1495_v1 }
  0x24   : > { %1296 = vmatpush3.bf16.msra.mxu1 %v1599_v14 }
  0x25   : > { %1274 = vmatpush3.bf16.msra.mxu0 %v1626_v19  ;;  %1297 = vmatprep.subr.bf16.mxu1 %v1495_v1 }
  0x26   : > { %1275 = vmatprep.subr.bf16.mxu0 %v1495_v1 }
  0x28   : > { %1298 = vmatpush3.bf16.msra.mxu1 %v1617_v18 }
  0x29   : > { %1276 = vmatpush3.bf16.msra.mxu0 %v1636_v20  ;;  %1299 = vmatprep.subr.bf16.mxu1 %v1495_v1 }
  0x2a   : > { %1307 = vmatprep.subr.bf16.mxu0 %v1495_v1 }
  0x2c   : > { %1278 = vmatmul.mubr.bf16.vlgmr.msra.gmra.mxu0 %v271_v23  ;;  %1300 = vmatpush3.bf16.msra.mxu1 %v1626_v19 }
  0x2d   : > { %1308 = vmatpush3.bf16.msra.mxu0 %v462_v25  ;;  %1309 = vmatprep.mubr.msk.bf16.mxu0 %vm1496_vm0, %v1495_v1 }
  0x2e   : > { %1333 = vmatprep.subr.bf16.mxu0 %v1495_v1  ;;  %1301 = vmatprep.subr.bf16.mxu1 %v1495_v1 }
  0x30   : > { %1302 = vmatpush3.bf16.msra.mxu1 %v1636_v20 }
  0x31   : > { %1313 = vmatprep.subr.bf16.mxu1 %v1495_v1 }
  0x33   : > { %1304 = vmatmul.mubr.bf16.vlgmr.msra.gmra.mxu1 %v1144_v28 }
  0x34   : > { %1310 = vmatmul.mubr.msk.bf16.vlgmr.msra.gmra.mxu0 %vm360_vm2, %v1573_v7  ;;  %1314 = vmatpush3.bf16.msra.mxu1 %v1538_v0 }
  0x35   : > { %1334 = vmatpush3.bf16.msra.mxu0 %v553_v27  ;;  %1335 = vmatprep.mubr.msk.bf16.mxu0 %vm1496_vm0, %v1495_v1 }
  0x36   : > { %1339 = vmatprep.subr.bf16.mxu0 %v1495_v1  ;;  %1329 = vmatprep.mubr.msk.bf16.mxu1 %vm1496_vm0, %v1495_v1 }
  0x37   : > { %1315 = vmatprep.subr.bf16.mxu1 %v1495_v1 }
  0x38   : > { %1316 = vmatpush3.bf16.msra.mxu1 %v1546_v2 }
  0x39   : > { %1317 = vmatprep.subr.bf16.mxu1 %v1495_v1 }
  0x3c   : > { %1336 = vmatmul.mubr.msk.bf16.vlgmr.msra.gmra.mxu0 %vm360_vm2, %v1573_v7  ;;  %1318 = vmatpush3.bf16.msra.mxu1 %v1558_v3 }
  0x3d   : > { %1340 = vmatpush3.bf16.msra.mxu0 %v1538_v0  ;;  %1355 = vmatprep.mubr.msk.bf16.mxu0 %vm1496_vm0, %v1495_v1 }
  0x3e   : > { %1341 = vmatprep.subr.bf16.mxu0 %v1495_v1  ;;  %1319 = vmatprep.subr.bf16.mxu1 %v1495_v1 }
  0x40   : > { %1320 = vmatpush3.bf16.msra.mxu1 %v1579_v8 }
  0x41   : > { %1342 = vmatpush3.bf16.msra.mxu0 %v1546_v2  ;;  %1321 = vmatprep.subr.bf16.mxu1 %v1495_v1 }
  0x42   : > { %1343 = vmatprep.subr.bf16.mxu0 %v1495_v1 }
  0x44   : > { %1322 = vmatpush3.bf16.msra.mxu1 %v1599_v14 }
  0x45   : > { %1344 = vmatpush3.bf16.msra.mxu0 %v1558_v3  ;;  %1323 = vmatprep.subr.bf16.mxu1 %v1495_v1 }
  0x46   : > { %1345 = vmatprep.subr.bf16.mxu0 %v1495_v1 }
  0x48   : > { %1324 = vmatpush3.bf16.msra.mxu1 %v1617_v18 }
  0x49   : > { %1346 = vmatpush3.bf16.msra.mxu0 %v1579_v8  ;;  %1325 = vmatprep.subr.bf16.mxu1 %v1495_v1 }
  0x4a   : > { %1347 = vmatprep.subr.bf16.mxu0 %v1495_v1 }
  0x4c   : > { %1326 = vmatpush3.bf16.msra.mxu1 %v1626_v19 }
  0x4d   : > { %1348 = vmatpush3.bf16.msra.mxu0 %v1599_v14  ;;  %1327 = vmatprep.subr.bf16.mxu1 %v1495_v1 }
  0x4e   : > { %1349 = vmatprep.subr.bf16.mxu0 %v1495_v1 }
  0x50   : > { %1328 = vmatpush3.bf16.msra.mxu1 %v1636_v20 }
  0x51   : > { %1350 = vmatpush3.bf16.msra.mxu0 %v1617_v18  ;;  %1359 = vmatprep.subr.bf16.mxu1 %v1495_v1 }
  0x52   : > { %1351 = vmatprep.subr.bf16.mxu0 %v1495_v1 }
  0x53   : > { %1330 = vmatmul.mubr.bf16.vlgmr.msra.gmra.mxu1 %v1148_v29 }
  0x54   : > { %1360 = vmatpush3.bf16.msra.mxu1 %v1585_v10  ;;  %1361 = vmatprep.mubr.msk.bf16.mxu1 %vm1496_vm0, %v1495_v1 }
  0x55   : > { %1352 = vmatpush3.bf16.msra.mxu0 %v1626_v19  ;;  %1365 = vmatprep.subr.bf16.mxu1 %v1495_v1 }
  0x56   : > { %1353 = vmatprep.subr.bf16.mxu0 %v1495_v1 }
  0x59   : > { %1354 = vmatpush3.bf16.msra.mxu0 %v1636_v20 }
  0x5a   : > { %1385 = vmatprep.subr.bf16.mxu0 %v1495_v1 }
  0x5b   : > { %1362 = vmatmul.mubr.msk.bf16.vlgmr.msra.gmra.mxu1 %vm360_vm2, %v1573_v7 }
  0x5c   : > { %1356 = vmatmul.mubr.bf16.vlgmr.msra.gmra.mxu0 %v1152_v30  ;;  %1366 = vmatpush3.bf16.msra.mxu1 %v1538_v0 }
  0x5d   : > { %1386 = vmatpush3.bf16.msra.mxu0 %v1591_v12  ;;  %1387 = vmatprep.mubr.msk.bf16.mxu0 %vm1496_vm0, %v1495_v1 }
  0x5e   : > { %1391 = vmatprep.subr.bf16.mxu0 %v1495_v1  ;;  %1381 = vmatprep.mubr.msk.bf16.mxu1 %vm1496_vm0, %v1495_v1 }
  0x5f   : > { %1367 = vmatprep.subr.bf16.mxu1 %v1495_v1 }
  0x60   : > { %1368 = vmatpush3.bf16.msra.mxu1 %v1546_v2 }
  0x61   : > { %1369 = vmatprep.subr.bf16.mxu1 %v1495_v1 }
  0x64   : > { %1388 = vmatmul.mubr.msk.bf16.vlgmr.msra.gmra.mxu0 %vm360_vm2, %v1573_v7  ;;  %1370 = vmatpush3.bf16.msra.mxu1 %v1558_v3 }
  0x65   : > { %1392 = vmatpush3.bf16.msra.mxu0 %v1538_v0  ;;  %1407 = vmatprep.mubr.msk.bf16.mxu0 %vm1496_vm0, %v1495_v1 }
  0x66   : > { %1393 = vmatprep.subr.bf16.mxu0 %v1495_v1  ;;  %1371 = vmatprep.subr.bf16.mxu1 %v1495_v1 }
  0x68   : > { %1372 = vmatpush3.bf16.msra.mxu1 %v1579_v8 }
  0x69   : > { %1394 = vmatpush3.bf16.msra.mxu0 %v1546_v2  ;;  %1373 = vmatprep.subr.bf16.mxu1 %v1495_v1 }
  0x6a   : > { %1395 = vmatprep.subr.bf16.mxu0 %v1495_v1 }
  0x6c   : > { %1374 = vmatpush3.bf16.msra.mxu1 %v1599_v14 }
  0x6d   : > { %1396 = vmatpush3.bf16.msra.mxu0 %v1558_v3  ;;  %1375 = vmatprep.subr.bf16.mxu1 %v1495_v1 }
  0x6e   : > { %1397 = vmatprep.subr.bf16.mxu0 %v1495_v1 }
  0x70   : > { %1376 = vmatpush3.bf16.msra.mxu1 %v1617_v18 }
  0x71   : > { %1398 = vmatpush3.bf16.msra.mxu0 %v1579_v8  ;;  %1377 = vmatprep.subr.bf16.mxu1 %v1495_v1 }
  0x72   : > { %1399 = vmatprep.subr.bf16.mxu0 %v1495_v1 }
  0x74   : > { %1378 = vmatpush3.bf16.msra.mxu1 %v1626_v19 }
  0x75   : > { %1400 = vmatpush3.bf16.msra.mxu0 %v1599_v14  ;;  %1379 = vmatprep.subr.bf16.mxu1 %v1495_v1 }
  0x76   : > { %1401 = vmatprep.subr.bf16.mxu0 %v1495_v1 }
  0x78   : > { %1380 = vmatpush3.bf16.msra.mxu1 %v1636_v20 }
  0x79   : > { %1402 = vmatpush3.bf16.msra.mxu0 %v1617_v18  ;;  %1411 = vmatprep.subr.bf16.mxu1 %v1495_v1 }
  0x7a   : > { %1403 = vmatprep.subr.bf16.mxu0 %v1495_v1 }
  0x7b   : > { %1382 = vmatmul.mubr.bf16.vlgmr.msra.gmra.mxu1 %v1156_v31 }
  0x7c   : > { %1412 = vmatpush3.bf16.msra.mxu1 %v1602_v15  ;;  %1413 = vmatprep.mubr.msk.bf16.mxu1 %vm1496_vm0, %v1495_v1 }
  0x7d   : > { %1404 = vmatpush3.bf16.msra.mxu0 %v1626_v19  ;;  %1417 = vmatprep.subr.bf16.mxu1 %v1495_v1 }
  0x7e   : > { %1405 = vmatprep.subr.bf16.mxu0 %v1495_v1 }
  0x81   : > { %1406 = vmatpush3.bf16.msra.mxu0 %v1636_v20 }
  0x82   : > { %1437 = vmatprep.subr.bf16.mxu0 %v1495_v1 }
  0x83   : > { %1414 = vmatmul.mubr.msk.bf16.vlgmr.msra.gmra.mxu1 %vm360_vm2, %v1573_v7 }
  0x84   : > { %1408 = vmatmul.mubr.bf16.vlgmr.msra.gmra.mxu0 %v1160_v32  ;;  %1418 = vmatpush3.bf16.msra.mxu1 %v1538_v0 }
  0x85   : > { %1438 = vmatpush3.bf16.msra.mxu0 %v1608_v17  ;;  %1439 = vmatprep.mubr.msk.bf16.mxu0 %vm1496_vm0, %v1495_v1 }
  0x86   : > { %1443 = vmatprep.subr.bf16.mxu0 %v1495_v1  ;;  %1433 = vmatprep.mubr.msk.bf16.mxu1 %vm1496_vm0, %v1495_v1 }
  0x87   : > { %1419 = vmatprep.subr.bf16.mxu1 %v1495_v1 }
  0x88   : > { %1420 = vmatpush3.bf16.msra.mxu1 %v1546_v2 }
  0x89   : > { %1421 = vmatprep.subr.bf16.mxu1 %v1495_v1 }
  0x8c   : > { %1440 = vmatmul.mubr.msk.bf16.vlgmr.msra.gmra.mxu0 %vm360_vm2, %v1573_v7  ;;  %1422 = vmatpush3.bf16.msra.mxu1 %v1558_v3 }
  0x8d   : > { %1444 = vmatpush3.bf16.msra.mxu0 %v1538_v0  ;;  %1459 = vmatprep.mubr.msk.bf16.mxu0 %vm1496_vm0, %v1495_v1 }
  0x8e   : > { %1445 = vmatprep.subr.bf16.mxu0 %v1495_v1  ;;  %1423 = vmatprep.subr.bf16.mxu1 %v1495_v1 }
  0x90   : > { %1424 = vmatpush3.bf16.msra.mxu1 %v1579_v8 }
  0x91   : > { %1446 = vmatpush3.bf16.msra.mxu0 %v1546_v2  ;;  %1425 = vmatprep.subr.bf16.mxu1 %v1495_v1 }
  0x92   : > { %1447 = vmatprep.subr.bf16.mxu0 %v1495_v1 }
  0x94   : > { %1426 = vmatpush3.bf16.msra.mxu1 %v1599_v14 }
  0x95   : > { %1448 = vmatpush3.bf16.msra.mxu0 %v1558_v3  ;;  %1427 = vmatprep.subr.bf16.mxu1 %v1495_v1 }
  0x96   : > { %1449 = vmatprep.subr.bf16.mxu0 %v1495_v1 }
  0x98   : > { %1428 = vmatpush3.bf16.msra.mxu1 %v1617_v18 }
  0x99   : > { %1450 = vmatpush3.bf16.msra.mxu0 %v1579_v8  ;;  %1429 = vmatprep.subr.bf16.mxu1 %v1495_v1 }
  0x9a   : > { %1451 = vmatprep.subr.bf16.mxu0 %v1495_v1 }
  0x9c   : > { %1430 = vmatpush3.bf16.msra.mxu1 %v1626_v19 }
  0x9d   : > { %1452 = vmatpush3.bf16.msra.mxu0 %v1599_v14  ;;  %1431 = vmatprep.subr.bf16.mxu1 %v1495_v1 }
  0x9e   : > { %1453 = vmatprep.subr.bf16.mxu0 %v1495_v1 }
  0xa0   : > { %1432 = vmatpush3.bf16.msra.mxu1 %v1636_v20 }
  0xa1   : > { %1454 = vmatpush3.bf16.msra.mxu0 %v1617_v18  ;;  %1463 = vmatprep.subr.bf16.mxu1 %v1495_v1 }
  0xa2   : > { %1455 = vmatprep.subr.bf16.mxu0 %v1495_v1 }
  0xa3   : > { %1434 = vmatmul.mubr.bf16.vlgmr.msra.gmra.mxu1 %v1164_v33 }
  0xa4   : > { %1464 = vmatpush3.bf16.msra.mxu1 %v1653_v24  ;;  %1465 = vmatprep.mubr.msk.bf16.mxu1 %vm1496_vm0, %v1495_v1 }
  0xa5   : > { %1456 = vmatpush3.bf16.msra.mxu0 %v1626_v19 }
  0xa6   : > { %1457 = vmatprep.subr.bf16.mxu0 %v1495_v1 }
  0xa9   : > { %1458 = vmatpush3.bf16.msra.mxu0 %v1636_v20 }
  0xab   : > { %1466 = vmatmul.mubr.msk.bf16.vlgmr.msra.gmra.mxu1 %vm360_vm2, %v1573_v7 }
  0xac   : > { %1460 = vmatmul.mubr.bf16.vlgmr.msra.gmra.mxu0 %v1168_v34 }
  0xd3   : > { %v402_v35 = vpop.f32.mrf.mxu1 }
  0xd5   : > { %v1285_v36 = vpop.f32.mrf.mxu1 }
  0xd7   : > { %v405_v37 = vpop.f32.mrf.mxu1 }
  0xd9   : > { %v1286_v38 = vpop.f32.mrf.mxu1 }
  0xec   : > { %v354_v40 = vpop.f32.mrf.mxu0 }
  0xed   : > { %v403_v41 = vadd.f32 %v402_v35, %v354_v40 }
  0xee   : > { %v1279_v42 = vpop.f32.mrf.mxu0 }
  0xef   : > { %v414_v43 = vadd.f32 %v1822_v39, %v403_v41 }
  0xf0   : > { %v357_v44 = vpop.f32.mrf.mxu0 }
  0xf1   : > { %v415_v45 = vpack.c.bf16 %v414_v43, %v414_v43 }
  0xf2   : > { %v1280_v46 = vpop.f32.mrf.mxu0 }
  0xf3   : > { %416 = vst [vmem:[%s1830_s28] sm:$0xf] %v415_v45  ;;  %v455_v49 = vpop.f32.mrf.mxu1 }
  0xf4   : > { %v498_v47 = vpop.f32.mrf.mxu0 }
  0xf5   : > { %v499_v51 = vadd.f32 %v498_v47, %v455_v49  ;;  %v1305_v52 = vpop.f32.mrf.mxu1 }
  0xf6   : > { %v1311_v48 = vpop.f32.mrf.mxu0 }
  0xf7   : > { %v504_v54 = vadd.f32 %v1822_v39, %v499_v51  ;;  %v458_v55 = vpop.f32.mrf.mxu1 }
  0xf8   : > { %v501_v50 = vpop.f32.mrf.mxu0 }
  0xf9   : > { %v505_v57 = vpack.c.bf16 %v504_v54, %v504_v54  ;;  %v1306_v58 = vpop.f32.mrf.mxu1 }
  0xfa   : > { %v1312_v53 = vpop.f32.mrf.mxu0 }
  0xfb   : > { %1146 = vst [vmem:[%s1830_s28 + $0x4] sm:$0xf] %v505_v57 }
  0xfc   : > { %v589_v56 = vpop.f32.mrf.mxu0 }
  0xfe   : > { %v1337_v59 = vpop.f32.mrf.mxu0 }
 0x100   : > { %v592_v60 = vpop.f32.mrf.mxu0 }
 0x102   : > { %v1338_v61 = vpop.f32.mrf.mxu0 }
 0x113   : > { %v546_v62 = vpop.f32.mrf.mxu1 }
 0x114   : > { %v590_v63 = vadd.f32 %v589_v56, %v546_v62 }
 0x115   : > { %v1331_v0 = vpop.f32.mrf.mxu1 }
 0x116   : > { %v595_v1 = vadd.f32 %v1822_v39, %v590_v63 }
 0x117   : > { %v549_v2 = vpop.f32.mrf.mxu1 }
 0x118   : > { %v596_v4 = vpack.c.bf16 %v595_v1, %v595_v1 }
 0x119   : > { %v1332_v5 = vpop.f32.mrf.mxu1 }
 0x11a   : > { %1150 = vst [vmem:[%s1830_s28 + $0x8] sm:$0xf] %v596_v4 }
 0x11b   : > { %v680_v7 = vpop.f32.mrf.mxu1 }
 0x11c   : > { %v637_v3 = vpop.f32.mrf.mxu0 }
 0x11d   : > { %v681_v9 = vadd.f32 %v680_v7, %v637_v3  ;;  %v1363_v10 = vpop.f32.mrf.mxu1 }
 0x11e   : > { %v1357_v6 = vpop.f32.mrf.mxu0 }
 0x11f   : > { %v686_v12 = vadd.f32 %v1822_v39, %v681_v9  ;;  %v683_v13 = vpop.f32.mrf.mxu1 }
 0x120   : > { %v640_v8 = vpop.f32.mrf.mxu0 }
 0x121   : > { %v687_v15 = vpack.c.bf16 %v686_v12, %v686_v12  ;;  %v1364_v16 = vpop.f32.mrf.mxu1 }
 0x122   : > { %v1358_v11 = vpop.f32.mrf.mxu0 }
 0x123   : > { %1154 = vst [vmem:[%s1830_s28 + $0xc] sm:$0xf] %v687_v15 }
 0x124   : > { %v771_v14 = vpop.f32.mrf.mxu0 }
 0x126   : > { %v1389_v17 = vpop.f32.mrf.mxu0 }
 0x128   : > { %v774_v18 = vpop.f32.mrf.mxu0 }
 0x12a   : > { %v1390_v19 = vpop.f32.mrf.mxu0 }
 0x13b   : > { %v728_v20 = vpop.f32.mrf.mxu1 }
 0x13c   : > { %v772_v21 = vadd.f32 %v771_v14, %v728_v20 }
 0x13d   : > { %v1383_v22 = vpop.f32.mrf.mxu1 }
 0x13e   : > { %v777_v23 = vadd.f32 %v1822_v39, %v772_v21 }
 0x13f   : > { %v731_v24 = vpop.f32.mrf.mxu1 }
 0x140   : > { %v778_v26 = vpack.c.bf16 %v777_v23, %v777_v23 }
 0x141   : > { %v1384_v27 = vpop.f32.mrf.mxu1 }
 0x142   : > { %1158 = vst [vmem:[%s1830_s28 + $0x10] sm:$0xf] %v778_v26 }
 0x143   : > { %v862_v29 = vpop.f32.mrf.mxu1 }
 0x144   : > { %v819_v25 = vpop.f32.mrf.mxu0 }
 0x145   : > { %v863_v31 = vadd.f32 %v862_v29, %v819_v25  ;;  %v1415_v32 = vpop.f32.mrf.mxu1 }
 0x146   : > { %v1409_v28 = vpop.f32.mrf.mxu0 }
 0x147   : > { %v868_v34 = vadd.f32 %v1822_v39, %v863_v31  ;;  %v865_v35 = vpop.f32.mrf.mxu1 }
 0x148   : > { %v822_v30 = vpop.f32.mrf.mxu0 }
 0x149   : > { %v869_v37 = vpack.c.bf16 %v868_v34, %v868_v34  ;;  %v1416_v38 = vpop.f32.mrf.mxu1 }
 0x14a   : > { %v1410_v33 = vpop.f32.mrf.mxu0 }
 0x14b   : > { %1162 = vst [vmem:[%s1830_s28 + $0x14] sm:$0xf] %v869_v37 }
 0x14c   : > { %v953_v36 = vpop.f32.mrf.mxu0 }
 0x14e   : > { %v1441_v40 = vpop.f32.mrf.mxu0 }
 0x150   : > { %v956_v41 = vpop.f32.mrf.mxu0 }
 0x152   : > { %v1442_v42 = vpop.f32.mrf.mxu0 }
 0x163   : > { %v910_v43 = vpop.f32.mrf.mxu1 }
 0x164   : > { %v954_v44 = vadd.f32 %v953_v36, %v910_v43 }
 0x165   : > { %v1435_v45 = vpop.f32.mrf.mxu1 }
 0x166   : > { %v959_v46 = vadd.f32 %v1822_v39, %v954_v44 }
 0x167   : > { %v913_v47 = vpop.f32.mrf.mxu1 }
 0x168   : > { %v960_v49 = vpack.c.bf16 %v959_v46, %v959_v46 }
 0x169   : > { %v1436_v50 = vpop.f32.mrf.mxu1 }
 0x16a   : > { %1166 = vst [vmem:[%s1830_s28 + $0x18] sm:$0xf] %v960_v49 }
 0x16b   : > { %v1044_v52 = vpop.f32.mrf.mxu1 }
 0x16c   : > { %v1001_v48 = vpop.f32.mrf.mxu0 }
 0x16d   : > { %v1045_v54 = vadd.f32 %v1044_v52, %v1001_v48  ;;  %v1467_v55 = vpop.f32.mrf.mxu1 }
 0x16e   : > { %v1461_v51 = vpop.f32.mrf.mxu0 }
 0x16f   : > { %v1050_v57 = vadd.f32 %v1822_v39, %v1045_v54  ;;  %v1047_v58 = vpop.f32.mrf.mxu1 }
 0x170   : > { %v1004_v53 = vpop.f32.mrf.mxu0 }
 0x171   : > { %v1051_v59 = vpack.c.bf16 %v1050_v57, %v1050_v57  ;;  %v1468_v60 = vpop.f32.mrf.mxu1 }
 0x172   : > { %v1462_v56 = vpop.f32.mrf.mxu0 }
 0x173   : > { %1170 = vst [vmem:[%s1830_s28 + $0x1c] sm:$0xf] %v1051_v59 }
 0x174 PF: > { %s15_s18 = sadd.s32 1, %s1493_s18  }
 0x175   : > { %p12_p4 = scmp.ge.s32.totalorder %s15_s18, 4  }
 0x177   :  { %14 = sbr.rel (!%p12_p4) target bundleno = 1 (0x1), region = 94 }

// kernel: segmenter_forward.15
= control target key start
LH: loop header
LB: loop body
LE: loop exit
PB: predicated region body
PF: predicated region fallthrough
CT: control target
= control target key end

     0   :  { %s836_s9 = smov 0   ;;  %s838_s10 = smov 0   ;;  %s931_s0 = inlined_call_operand.vmem [shape: f32[16,8], index: 0, kind: input, shape index: {}]   ;;  %s932_s1 = inlined_call_operand.vmem [shape: bf16[32,8,128], index: 1, kind: input, shape index: {}]   ;;  %s933_s2 = inlined_call_operand.vmem [shape: f32[32,16,128], index: 2, kind: output, shape index: {}]  }
   0x1   :  { %s840_s11 = smov 0  }
   0x2 LB: > { %s24_s12 = sadd.s32 1, %s813_s10  ;;  %p667_p0 = scmp.ge.s32.totalorder %s817_s11, 1  ;;  %s817_s11 = sphi %s840_s11, %s12_s11   ;;  %s813_s10 = sphi %s838_s10, %s935_s10   ;;  %s809_s9 = sphi %s836_s9, %s934_s9  }
   0x3   : > { %p26_p1 = scmp.ge.s32.totalorder %s24_s12, 4  ;;  %p132_p2 = scmp.lt.s32.totalorder %s817_s11, 5 }
   0x5   : > { %s937_s12 = smov (%p26_p1, %s24_s12), 0  ;;  %p133_p3 = pnand %p667_p0, %p132_p2 }
   0x6   : > { %s668_s13 = sshll.u32 (!%p133_p3), %s809_s9, 3 }
   0x7   : > { %136 = sbr.rel (%p133_p3) target bundleno = 243 (0xf3), region = 28  ;;  %p162_p4 = scmp.lt.s32.totalorder (!%p133_p3), %s668_s13, 31 }
   0xc   : > { %v819_v0 = vmov 0.0   ;;  %vm820_vm0 = vmmov 0   ;;  %s939_s13 = smov (!%p162_p4, %s668_s13), 31  ;;  %vm189_vm1 = vcmask 1043456   ;;  %v181_v1 = vld [vmem:[%s931_s0] sm:$0xff]  ;;  %v182_v2 = vld [vmem:[%s931_s0 + $0x8] sm:$0xff] }
   0xd   : > { %721 = vmatprep.subr.bf16.mxu0 %v819_v0  ;;  %727 = vmatprep.subr.bf16.mxu1 %v819_v0  ;;  %s669_s14 = sshll.u32 %s939_s13, 2  ;;  %v183_v8 = vpack.c.bf16 %v182_v2, %v181_v1  ;;  %vm185_vm2 = vcmask 64512   ;;  %s704_s22 = sshll.u32 %s939_s13, 4 }
   0xe   : > { %723 = vmatprep.mubr.msk.bf16.mxu0 %vm820_vm0, %v819_v0  ;;  %729 = vmatprep.mubr.msk.bf16.mxu1 %vm820_vm0, %v819_v0  ;;  %s868_s21 = scalar_lea.vmem %s932_s1, %s669_s14  ;;  %s904_s25 = scalar_lea.vmem %s933_s2, %s704_s22 }
   0xf   : > { %v184_v3 = vld [vmem:[%s868_s21] sm:$0xf]  ;;  %v674_v4 = vld [vmem:[%s868_s21 + $0x4] sm:$0xf]  ;;  %v678_v5 = vld [vmem:[%s868_s21 + $0x8] sm:$0xf] }
  0x10   : > { %v191_v6 = vsel %vm189_vm1, %v184_v3, 0  ;;  %v239_v7 = vsel %vm189_vm1, %v674_v4, 0  ;;  %v682_v9 = vld [vmem:[%s868_s21 + $0xc] sm:$0xf]  ;;  %v288_v10 = vsel %vm189_vm1, %v678_v5, 0 }
  0x11   : > { %722 = vmatpush3.bf16.msra.mxu0 %v191_v6  ;;  %728 = vmatpush3.bf16.msra.mxu1 %v239_v7  ;;  %v337_v11 = vsel %vm189_vm1, %v682_v9, 0  ;;  %v686_v12 = vld [vmem:[%s868_s21 + $0x10] sm:$0xf]  ;;  %v690_v13 = vld [vmem:[%s868_s21 + $0x14] sm:$0xf] }
  0x12   : > { %733 = vmatprep.subr.bf16.mxu0 %v819_v0  ;;  %739 = vmatprep.subr.bf16.mxu1 %v819_v0  ;;  %v386_v14 = vsel %vm189_vm1, %v686_v12, 0  ;;  %v435_v15 = vsel %vm189_vm1, %v690_v13, 0  ;;  %v694_v16 = vld [vmem:[%s868_s21 + $0x18] sm:$0xf]  ;;  %v698_v17 = vld [vmem:[%s868_s21 + $0x1c] sm:$0xf] }
  0x13   : > { %v484_v18 = vsel %vm189_vm1, %v694_v16, 0  ;;  %v533_v19 = vsel %vm189_vm1, %v698_v17, 0 }
  0x14   : > { %724 = vmatmul.mubr.msk.bf16.vlgmr.msra.gmra.mxu0 %vm185_vm2, %v183_v8  ;;  %730 = vmatmul.mubr.msk.bf16.vlgmr.msra.gmra.mxu1 %vm185_vm2, %v183_v8 }
  0x15   : > { %734 = vmatpush3.bf16.msra.mxu0 %v288_v10  ;;  %740 = vmatpush3.bf16.msra.mxu1 %v337_v11 }
  0x16   : > { %735 = vmatprep.mubr.msk.bf16.mxu0 %vm820_vm0, %v819_v0  ;;  %741 = vmatprep.mubr.msk.bf16.mxu1 %vm820_vm0, %v819_v0 }
  0x17   : > { %745 = vmatprep.subr.bf16.mxu0 %v819_v0  ;;  %751 = vmatprep.subr.bf16.mxu1 %v819_v0 }
  0x1c   : > { %736 = vmatmul.mubr.msk.bf16.vlgmr.msra.gmra.mxu0 %vm185_vm2, %v183_v8  ;;  %742 = vmatmul.mubr.msk.bf16.vlgmr.msra.gmra.mxu1 %vm185_vm2, %v183_v8 }
  0x1d   : > { %746 = vmatpush3.bf16.msra.mxu0 %v386_v14  ;;  %752 = vmatpush3.bf16.msra.mxu1 %v435_v15 }
  0x1e   : > { %747 = vmatprep.mubr.msk.bf16.mxu0 %vm820_vm0, %v819_v0  ;;  %753 = vmatprep.mubr.msk.bf16.mxu1 %vm820_vm0, %v819_v0 }
  0x1f   : > { %757 = vmatprep.subr.bf16.mxu0 %v819_v0  ;;  %763 = vmatprep.subr.bf16.mxu1 %v819_v0 }
  0x24   : > { %748 = vmatmul.mubr.msk.bf16.vlgmr.msra.gmra.mxu0 %vm185_vm2, %v183_v8  ;;  %754 = vmatmul.mubr.msk.bf16.vlgmr.msra.gmra.mxu1 %vm185_vm2, %v183_v8 }
  0x25   : > { %758 = vmatpush3.bf16.msra.mxu0 %v484_v18  ;;  %764 = vmatpush3.bf16.msra.mxu1 %v533_v19 }
  0x26   : > { %759 = vmatprep.mubr.msk.bf16.mxu0 %vm820_vm0, %v819_v0  ;;  %765 = vmatprep.mubr.msk.bf16.mxu1 %vm820_vm0, %v819_v0 }
  0x2c   : > { %760 = vmatmul.mubr.msk.bf16.vlgmr.msra.gmra.mxu0 %vm185_vm2, %v183_v8  ;;  %766 = vmatmul.mubr.msk.bf16.vlgmr.msra.gmra.mxu1 %vm185_vm2, %v183_v8 }
  0xd4   : > { %v227_v20 = vpop.f32.mrf.mxu0  ;;  %v275_v21 = vpop.f32.mrf.mxu1 }
  0xd5   : > { %234 = vst [vmem:[%s904_s25] sm:$0xff] %v227_v20  ;;  %676 = vst [vmem:[%s904_s25 + $0x10] sm:$0xff] %v275_v21 }
  0xd6   : > { %v725_v22 = vpop.f32.mrf.mxu0  ;;  %v731_v23 = vpop.f32.mrf.mxu1 }
  0xd8   : > { %v230_v24 = vpop.f32.mrf.mxu0  ;;  %v278_v25 = vpop.f32.mrf.mxu1 }
  0xd9   : > { %235 = vst [vmem:[%s904_s25 + $0x8] sm:$0xff] %v230_v24  ;;  %677 = vst [vmem:[%s904_s25 + $0x18] sm:$0xff] %v278_v25 }
  0xda   : > { %v726_v26 = vpop.f32.mrf.mxu0  ;;  %v732_v27 = vpop.f32.mrf.mxu1 }
  0xdc   : > { %v324_v28 = vpop.f32.mrf.mxu0  ;;  %v373_v29 = vpop.f32.mrf.mxu1 }
  0xdd   : > { %680 = vst [vmem:[%s904_s25 + $0x20] sm:$0xff] %v324_v28  ;;  %684 = vst [vmem:[%s904_s25 + $0x30] sm:$0xff] %v373_v29 }
  0xde   : > { %v737_v30 = vpop.f32.mrf.mxu0  ;;  %v743_v31 = vpop.f32.mrf.mxu1 }
  0xe0   : > { %v327_v32 = vpop.f32.mrf.mxu0  ;;  %v376_v33 = vpop.f32.mrf.mxu1 }
  0xe1   : > { %681 = vst [vmem:[%s904_s25 + $0x28] sm:$0xff] %v327_v32  ;;  %685 = vst [vmem:[%s904_s25 + $0x38] sm:$0xff] %v376_v33 }
  0xe2   : > { %v738_v34 = vpop.f32.mrf.mxu0  ;;  %v744_v35 = vpop.f32.mrf.mxu1 }
  0xe4   : > { %v422_v36 = vpop.f32.mrf.mxu0  ;;  %v471_v37 = vpop.f32.mrf.mxu1 }
  0xe5   : > { %688 = vst [vmem:[%s904_s25 + $0x40] sm:$0xff] %v422_v36  ;;  %692 = vst [vmem:[%s904_s25 + $0x50] sm:$0xff] %v471_v37 }
  0xe6   : > { %v749_v38 = vpop.f32.mrf.mxu0  ;;  %v755_v39 = vpop.f32.mrf.mxu1 }
  0xe8   : > { %v425_v40 = vpop.f32.mrf.mxu0  ;;  %v474_v41 = vpop.f32.mrf.mxu1 }
  0xe9   : > { %689 = vst [vmem:[%s904_s25 + $0x48] sm:$0xff] %v425_v40  ;;  %693 = vst [vmem:[%s904_s25 + $0x58] sm:$0xff] %v474_v41 }
  0xea   : > { %v750_v42 = vpop.f32.mrf.mxu0  ;;  %v756_v43 = vpop.f32.mrf.mxu1 }
  0xec   : > { %v520_v44 = vpop.f32.mrf.mxu0  ;;  %v569_v45 = vpop.f32.mrf.mxu1 }
  0xed   : > { %696 = vst [vmem:[%s904_s25 + $0x60] sm:$0xff] %v520_v44  ;;  %700 = vst [vmem:[%s904_s25 + $0x70] sm:$0xff] %v569_v45 }
  0xee   : > { %v761_v46 = vpop.f32.mrf.mxu0  ;;  %v767_v47 = vpop.f32.mrf.mxu1 }
  0xf0   : > { %v523_v48 = vpop.f32.mrf.mxu0  ;;  %v572_v49 = vpop.f32.mrf.mxu1 }
  0xf1   : > { %697 = vst [vmem:[%s904_s25 + $0x68] sm:$0xff] %v523_v48  ;;  %701 = vst [vmem:[%s904_s25 + $0x78] sm:$0xff] %v572_v49 }
  0xf2   : > { %v762_v50 = vpop.f32.mrf.mxu0  ;;  %v768_v51 = vpop.f32.mrf.mxu1 }
  0xf3 PF: > { %s12_s11 = sadd.s32 1, %s817_s11   ;;  %s934_s9 = smov %s813_s10 }
  0xf4   : > { %p9_p5 = scmp.ge.s32.totalorder %s12_s11, 6   ;;  %s935_s10 = smov %s937_s12 }
  0xf6   :  { %11 = sbr.rel (!%p9_p5) target bundleno = 2 (0x2), region = 72 }

</bundles_post_ra>
